<compile_context>
chip_gen: v5e
topology: v5e:2x2
jax: 0.10.0
libtpu: 0.0.40
codegen_flags: <defaults>
</compile_context>

<pallas_src>
import functools

import jax
import jax.numpy as jnp
from jax.experimental import pallas as pl
from jax.experimental.pallas import tpu as pltpu

_VMEM_LIMIT = 32 * 1024 * 1024  # explicit, safe on v5e/v6e/v7x


def _pick_block_rows(n, cap):
    """Largest divisor of n <= cap that is sublane-friendly (multiple of 8);
    falls back to n itself (full-dim blocks are always legal)."""
    if n <= cap:
        return n
    for d in range(cap, 0, -1):
        if n % d == 0 and d % 8 == 0:
            return d
    return n


def _pick_chunk(n, cap):
    """Largest divisor of n <= cap (used on a leading, non-tiled dim)."""
    for d in range(min(n, cap), 0, -1):
        if n % d == 0:
            return d
    return 1


# ---------------------------------------------------------------------------
# Pallas kernels
# ---------------------------------------------------------------------------
def _input_proj_kernel(x_ref, w_ih_ref, b_ref, gx_ref):
    """gx[g] = x @ W_ih[g] + (b_ih + b_hh)[g] for the 4 gates, per row block.

    x_ref:    (rows, In)        f32/bf16 input rows (time-major flattened)
    w_ih_ref: (4, In, H)        bf16 per-gate weights
    b_ref:    (4, 1, H)         f32 combined bias
    gx_ref:   (4, rows, H)      f32 output gate pre-activations (x part)
    """
    x = x_ref[...].astype(w_ih_ref.dtype)            # bf16 for the MXU
    for g in range(4):                               # static unroll over gates
        gx_ref[g] = (jnp.dot(x, w_ih_ref[g],
                             preferred_element_type=jnp.float32)
                     + b_ref[g])


def _lstm_recurrent_kernel(gx_ref, w_hh_ref, out_ref, h_scr, c_scr, *,
                           emit_sequence):
    """Tc time steps of the LSTM recurrence.

    gx_ref:   (4, Tc, B, H) f32  precomputed x @ W_ih + bias for this chunk
    w_hh_ref: (4, H, H)     bf16 per-gate hidden weights (resident)
    out_ref:  (Tc, B, H) bf16 if emit_sequence else (B, H) f32
    h_scr/c_scr: (B, H) f32 state, persistent across grid steps.
    """
    t = pl.program_id(0)

    @pl.when(t == 0)
    def _():
        h_scr[...] = jnp.zeros_like(h_scr)
        c_scr[...] = jnp.zeros_like(c_scr)

    tc = gx_ref.shape[1]
    w_i, w_f, w_g, w_o = (w_hh_ref[0], w_hh_ref[1], w_hh_ref[2], w_hh_ref[3])

    h = h_scr[...]
    c = c_scr[...]
    for s in range(tc):                              # static unroll over chunk
        hm = h.astype(w_i.dtype)                     # bf16 only for the MXU
        gi = gx_ref[0, s] + jnp.dot(hm, w_i, preferred_element_type=jnp.float32)
        gf = gx_ref[1, s] + jnp.dot(hm, w_f, preferred_element_type=jnp.float32)
        gg = gx_ref[2, s] + jnp.dot(hm, w_g, preferred_element_type=jnp.float32)
        go = gx_ref[3, s] + jnp.dot(hm, w_o, preferred_element_type=jnp.float32)
        i_gate = jax.nn.sigmoid(gi)                  # elementwise math in f32
        f_gate = jax.nn.sigmoid(gf)
        g_gate = jnp.tanh(gg)
        o_gate = jax.nn.sigmoid(go)
        c = f_gate * c + i_gate * g_gate
        h = o_gate * jnp.tanh(c)
        if emit_sequence:
            out_ref[s] = h.astype(out_ref.dtype)

    h_scr[...] = h
    c_scr[...] = c
    if not emit_sequence:
        # Final layer: only the last hidden state is consumed downstream.
        out_ref[...] = h.astype(out_ref.dtype)


# ---------------------------------------------------------------------------
# Pallas wrappers
# ---------------------------------------------------------------------------
def input_projection(x2d, w_ih, b, *, block_rows=512):
    """(R, In) @ (4, In, H) + bias -> (4, R, H), R = T*B (time-major rows)."""
    R, In = x2d.shape
    H = w_ih.shape[-1]
    rb = _pick_block_rows(R, block_rows)
    return pl.pallas_call(
        _input_proj_kernel,
        out_shape=jax.ShapeDtypeStruct((4, R, H), jnp.float32),
        grid=(R // rb,),
        in_specs=[
            pl.BlockSpec((rb, In), lambda r: (r, 0)),
            pl.BlockSpec((4, In, H), lambda r: (0, 0, 0)),
            pl.BlockSpec((4, 1, H), lambda r: (0, 0, 0)),
        ],
        out_specs=pl.BlockSpec((4, rb, H), lambda r: (0, r, 0)),
        compiler_params=pltpu.CompilerParams(
            dimension_semantics=("parallel",),
            vmem_limit_bytes=_VMEM_LIMIT),
    )(x2d, w_ih, b)


def lstm_recurrence(gx, w_hh, *, emit_sequence, seq_dtype=jnp.bfloat16,
                    max_chunk=32):
    """Run the recurrence over gx (4, T, B, H); chunk Tc steps per grid iter."""
    _, T, B, H = gx.shape
    tc = _pick_chunk(T, max_chunk)
    kernel = functools.partial(_lstm_recurrent_kernel,
                               emit_sequence=emit_sequence)
    if emit_sequence:
        out_shape = jax.ShapeDtypeStruct((T, B, H), seq_dtype)
        out_spec = pl.BlockSpec((tc, B, H), lambda t: (t, 0, 0))
    else:
        out_shape = jax.ShapeDtypeStruct((B, H), jnp.float32)
        out_spec = pl.BlockSpec((B, H), lambda t: (0, 0))   # resident output
    return pl.pallas_call(
        kernel,
        out_shape=out_shape,
        grid=(T // tc,),
        in_specs=[
            pl.BlockSpec((4, tc, B, H), lambda t: (0, t, 0, 0)),
            pl.BlockSpec((4, H, H), lambda t: (0, 0, 0)),
        ],
        out_specs=out_spec,
        scratch_shapes=[
            pltpu.VMEM((B, H), jnp.float32),   # h state
            pltpu.VMEM((B, H), jnp.float32),   # c state
        ],
        compiler_params=pltpu.CompilerParams(
            dimension_semantics=("arbitrary",),  # time is sequential
            vmem_limit_bytes=_VMEM_LIMIT),
    )(gx, w_hh)


# ---------------------------------------------------------------------------
# Parameters & model forward
# ---------------------------------------------------------------------------
def init_params(key, input_size, hidden_size, num_stacked_layers):
    """Deterministic init mirroring nn.LSTM / nn.Linear shapes & gate order."""
    H = hidden_size
    bound = float(H) ** -0.5
    layers = []
    for layer in range(num_stacked_layers):
        in_sz = input_size if layer == 0 else H
        key, k1, k2, k3, k4 = jax.random.split(key, 5)
        w_ih = jax.random.uniform(k1, (4 * H, in_sz), jnp.float32, -bound, bound)
        w_hh = jax.random.uniform(k2, (4 * H, H), jnp.float32, -bound, bound)
        b_ih = jax.random.uniform(k3, (4 * H,), jnp.float32, -bound, bound)
        b_hh = jax.random.uniform(k4, (4 * H,), jnp.float32, -bound, bound)
        # Per-gate, pre-transposed, bf16 weights for the MXU.
        w_ih_g = jnp.transpose(w_ih.reshape(4, H, in_sz), (0, 2, 1)).astype(jnp.bfloat16)
        w_hh_g = jnp.transpose(w_hh.reshape(4, H, H), (0, 2, 1)).astype(jnp.bfloat16)
        b_g = (b_ih + b_hh).reshape(4, 1, H)            # combined bias, f32
        layers.append((w_ih_g, w_hh_g, b_g))
    key, k5, k6 = jax.random.split(key, 3)
    fc_w = jax.random.uniform(k5, (1, H), jnp.float32, -bound, bound)
    fc_b = jax.random.uniform(k6, (1,), jnp.float32, -bound, bound)
    return {"lstm": layers, "fc_w_t": jnp.transpose(fc_w), "fc_b": fc_b[None, :]}


@jax.jit
def lstm_model_forward(x, params):
    """x: (B, T, D) float32 -> (B, 1) float32. Matches the PyTorch forward."""
    B, T, _ = x.shape
    seq = jnp.transpose(x, (1, 0, 2))                   # time-major (T, B, D)
    n_layers = len(params["lstm"])
    h_last = None
    # TODO(synk): for larger stacks, fuse all layers into one kernel with the
    # inter-layer sequence held in VMEM scratch to avoid HBM round trips.
    for idx, (w_ih, w_hh, b) in enumerate(params["lstm"]):
        In = w_ih.shape[1]
        H = w_hh.shape[-1]
        # Hoisted input projection: one big matmul over the whole sequence.
        gx = input_projection(seq.reshape(T * B, In), w_ih, b)   # (4, T*B, H)
        gx = gx.reshape(4, T, B, H)
        is_last = idx == n_layers - 1
        out = lstm_recurrence(gx, w_hh, emit_sequence=not is_last)
        if is_last:
            h_last = out                                 # (B, H) f32
        else:
            seq = out                                    # (T, B, H) bf16
    # Final Linear(H, 1): too small for a dedicated kernel -> leave to XLA.
    return h_last @ params["fc_w_t"] + params["fc_b"]


# ---------------------------------------------------------------------------
# Pure-JAX reference (same numerics: bf16 matmuls, f32 accumulation/state)
# ---------------------------------------------------------------------------
@jax.jit
def _reference_forward(x, params):
    B, T, _ = x.shape
    seq = jnp.transpose(x, (1, 0, 2))
    n_layers = len(params["lstm"])
    h_last = None
    for idx, (w_ih, w_hh, b) in enumerate(params["lstm"]):
        In = w_ih.shape[1]
        H = w_hh.shape[-1]
        x2d = seq.reshape(T * B, In).astype(jnp.bfloat16)
        gx = jnp.stack(
            [jnp.dot(x2d, w_ih[g], preferred_element_type=jnp.float32
                     ).reshape(T, B, H) + b[g] for g in range(4)],
            axis=1)                                      # (T, 4, B, H)

        def step(carry, gx_t, w_hh=w_hh):
            h, c = carry
            hm = h.astype(jnp.bfloat16)
            gi = gx_t[0] + jnp.dot(hm, w_hh[0], preferred_element_type=jnp.float32)
            gf = gx_t[1] + jnp.dot(hm, w_hh[1], preferred_element_type=jnp.float32)
            gg = gx_t[2] + jnp.dot(hm, w_hh[2], preferred_element_type=jnp.float32)
            go = gx_t[3] + jnp.dot(hm, w_hh[3], preferred_element_type=jnp.float32)
            i = jax.nn.sigmoid(gi)
            f = jax.nn.sigmoid(gf)
            g = jnp.tanh(gg)
            o = jax.nn.sigmoid(go)
            c = f * c + i * g
            h = o * jnp.tanh(c)
            return (h, c), h

        init = (jnp.zeros((B, H), jnp.float32), jnp.zeros((B, H), jnp.float32))
        (h_fin, _), hs = jax.lax.scan(step, init, gx)
        if idx == n_layers - 1:
            h_last = h_fin
        else:
            seq = hs.astype(jnp.bfloat16)
    return h_last @ params["fc_w_t"] + params["fc_b"]


if __name__ == "__main__":
    B, T, D, H, L = 2, 8, 4, 32, 2

    key = jax.random.PRNGKey(0)
    key, kx, kp = jax.random.split(key, 3)
    x = jax.random.normal(kx, (B, T, D), jnp.float32)
    params = init_params(kp, input_size=D, hidden_size=H,
                         num_stacked_layers=L)

    out = jax.block_until_ready(lstm_model_forward(x, params))
    assert out.shape == (B, 1), out.shape

    ref = jax.block_until_ready(_reference_forward(x, params))
    err = float(jnp.max(jnp.abs(out - ref)))
    assert err < 2e-2, (err, out, ref)

    print("KERNEL_OK")
</pallas_src>

<mosaic_0001>
module attributes {stable_mosaic.version = 11 : i64} {
  func.func @_input_proj_kernel(%arg0: i32, %arg1: memref<16x32xbf16, #tpu.memory_space<vmem>>, %arg2: memref<4x32x32xbf16, #tpu.memory_space<vmem>>, %arg3: memref<4x1x32xf32, #tpu.memory_space<vmem>>, %arg4: memref<4x16x32xf32, #tpu.memory_space<vmem>>) attributes {dimension_semantics = [#tpu.dimension_semantics<parallel>], iteration_bounds = array<i64: 1>, scalar_prefetch = 0 : i64, scratch_operands = 0 : i64, tpu.core_type = #tpu.core_type<tc>, window_params = [{transform_indices = @transform_0, window_bounds = array<i64: 16, 32>}, {pipeline_mode = #tpu.pipeline_mode<synchronous>, transform_indices = @transform_1, window_bounds = array<i64: 4, 32, 32>}, {pipeline_mode = #tpu.pipeline_mode<synchronous>, transform_indices = @transform_2, window_bounds = array<i64: 4, 1, 32>}, {transform_indices = @transform_3, window_bounds = array<i64: 4, 16, 32>}]} {
    %c0 = arith.constant 0 : index
    %c0_0 = arith.constant 0 : index
    %0 = vector.load %arg1[%c0, %c0_0] : memref<16x32xbf16, #tpu.memory_space<vmem>>, vector<16x32xbf16>
    %c0_1 = arith.constant 0 : index
    %c0_2 = arith.constant 0 : index
    %c0_3 = arith.constant 0 : index
    %1 = vector.load %arg2[%c0_1, %c0_2, %c0_3] : memref<4x32x32xbf16, #tpu.memory_space<vmem>>, vector<1x32x32xbf16>
    %2 = vector.shape_cast %1 : vector<1x32x32xbf16> to vector<32x32xbf16>
    %cst = arith.constant dense<0.000000e+00> : vector<16x32xf32>
    %3 = tpu.matmul %0, %2, %cst {dimension_numbers = #tpu.dot_dimension_numbers<[1], [0], [0], [1], [0, 0, 1, 1], [], []>} : vector<16x32xbf16>, vector<32x32xbf16>, vector<16x32xf32> -> vector<16x32xf32>
    %c0_4 = arith.constant 0 : index
    %c0_5 = arith.constant 0 : index
    %c0_6 = arith.constant 0 : index
    %4 = vector.load %arg3[%c0_4, %c0_5, %c0_6] : memref<4x1x32xf32, #tpu.memory_space<vmem>>, vector<1x1x32xf32>
    %5 = vector.shape_cast %4 : vector<1x1x32xf32> to vector<1x32xf32>
    %6 = vector.broadcast %5 : vector<1x32xf32> to vector<16x32xf32>
    %7 = arith.addf %3, %6 : vector<16x32xf32>
    %c0_7 = arith.constant 0 : index
    %c0_8 = arith.constant 0 : index
    %c0_9 = arith.constant 0 : index
    %8 = vector.load %arg4[%c0_7, %c0_8, %c0_9] : memref<4x16x32xf32, #tpu.memory_space<vmem>>, vector<1x16x32xf32>
    %9 = vector.shape_cast %8 : vector<1x16x32xf32> to vector<16x32xf32>
    %10 = vector.shape_cast %7 : vector<16x32xf32> to vector<1x16x32xf32>
    tpu.vector_store %arg4[%c0_7, %c0_8, %c0_9], %10 {strides = array<i32>} : memref<4x16x32xf32, #tpu.memory_space<vmem>>, vector<1x16x32xf32>,
    %c1 = arith.constant 1 : index
    %c0_10 = arith.constant 0 : index
    %c0_11 = arith.constant 0 : index
    %11 = vector.load %arg2[%c1, %c0_10, %c0_11] : memref<4x32x32xbf16, #tpu.memory_space<vmem>>, vector<1x32x32xbf16>
    %12 = vector.shape_cast %11 : vector<1x32x32xbf16> to vector<32x32xbf16>
    %cst_12 = arith.constant dense<0.000000e+00> : vector<16x32xf32>
    %13 = tpu.matmul %0, %12, %cst_12 {dimension_numbers = #tpu.dot_dimension_numbers<[1], [0], [0], [1], [0, 0, 1, 1], [], []>} : vector<16x32xbf16>, vector<32x32xbf16>, vector<16x32xf32> -> vector<16x32xf32>
    %c1_13 = arith.constant 1 : index
    %c0_14 = arith.constant 0 : index
    %c0_15 = arith.constant 0 : index
    %14 = vector.load %arg3[%c1_13, %c0_14, %c0_15] : memref<4x1x32xf32, #tpu.memory_space<vmem>>, vector<1x1x32xf32>
    %15 = vector.shape_cast %14 : vector<1x1x32xf32> to vector<1x32xf32>
    %16 = vector.broadcast %15 : vector<1x32xf32> to vector<16x32xf32>
    %17 = arith.addf %13, %16 : vector<16x32xf32>
    %c1_16 = arith.constant 1 : index
    %c0_17 = arith.constant 0 : index
    %c0_18 = arith.constant 0 : index
    %18 = vector.load %arg4[%c1_16, %c0_17, %c0_18] : memref<4x16x32xf32, #tpu.memory_space<vmem>>, vector<1x16x32xf32>
    %19 = vector.shape_cast %18 : vector<1x16x32xf32> to vector<16x32xf32>
    %20 = vector.shape_cast %17 : vector<16x32xf32> to vector<1x16x32xf32>
    tpu.vector_store %arg4[%c1_16, %c0_17, %c0_18], %20 {strides = array<i32>} : memref<4x16x32xf32, #tpu.memory_space<vmem>>, vector<1x16x32xf32>,
    %c2 = arith.constant 2 : index
    %c0_19 = arith.constant 0 : index
    %c0_20 = arith.constant 0 : index
    %21 = vector.load %arg2[%c2, %c0_19, %c0_20] : memref<4x32x32xbf16, #tpu.memory_space<vmem>>, vector<1x32x32xbf16>
    %22 = vector.shape_cast %21 : vector<1x32x32xbf16> to vector<32x32xbf16>
    %cst_21 = arith.constant dense<0.000000e+00> : vector<16x32xf32>
    %23 = tpu.matmul %0, %22, %cst_21 {dimension_numbers = #tpu.dot_dimension_numbers<[1], [0], [0], [1], [0, 0, 1, 1], [], []>} : vector<16x32xbf16>, vector<32x32xbf16>, vector<16x32xf32> -> vector<16x32xf32>
    %c2_22 = arith.constant 2 : index
    %c0_23 = arith.constant 0 : index
    %c0_24 = arith.constant 0 : index
    %24 = vector.load %arg3[%c2_22, %c0_23, %c0_24] : memref<4x1x32xf32, #tpu.memory_space<vmem>>, vector<1x1x32xf32>
    %25 = vector.shape_cast %24 : vector<1x1x32xf32> to vector<1x32xf32>
    %26 = vector.broadcast %25 : vector<1x32xf32> to vector<16x32xf32>
    %27 = arith.addf %23, %26 : vector<16x32xf32>
    %c2_25 = arith.constant 2 : index
    %c0_26 = arith.constant 0 : index
    %c0_27 = arith.constant 0 : index
    %28 = vector.load %arg4[%c2_25, %c0_26, %c0_27] : memref<4x16x32xf32, #tpu.memory_space<vmem>>, vector<1x16x32xf32>
    %29 = vector.shape_cast %28 : vector<1x16x32xf32> to vector<16x32xf32>
    %30 = vector.shape_cast %27 : vector<16x32xf32> to vector<1x16x32xf32>
    tpu.vector_store %arg4[%c2_25, %c0_26, %c0_27], %30 {strides = array<i32>} : memref<4x16x32xf32, #tpu.memory_space<vmem>>, vector<1x16x32xf32>,
    %c3 = arith.constant 3 : index
    %c0_28 = arith.constant 0 : index
    %c0_29 = arith.constant 0 : index
    %31 = vector.load %arg2[%c3, %c0_28, %c0_29] : memref<4x32x32xbf16, #tpu.memory_space<vmem>>, vector<1x32x32xbf16>
    %32 = vector.shape_cast %31 : vector<1x32x32xbf16> to vector<32x32xbf16>
    %cst_30 = arith.constant dense<0.000000e+00> : vector<16x32xf32>
    %33 = tpu.matmul %0, %32, %cst_30 {dimension_numbers = #tpu.dot_dimension_numbers<[1], [0], [0], [1], [0, 0, 1, 1], [], []>} : vector<16x32xbf16>, vector<32x32xbf16>, vector<16x32xf32> -> vector<16x32xf32>
    %c3_31 = arith.constant 3 : index
    %c0_32 = arith.constant 0 : index
    %c0_33 = arith.constant 0 : index
    %34 = vector.load %arg3[%c3_31, %c0_32, %c0_33] : memref<4x1x32xf32, #tpu.memory_space<vmem>>, vector<1x1x32xf32>
    %35 = vector.shape_cast %34 : vector<1x1x32xf32> to vector<1x32xf32>
    %36 = vector.broadcast %35 : vector<1x32xf32> to vector<16x32xf32>
    %37 = arith.addf %33, %36 : vector<16x32xf32>
    %c3_34 = arith.constant 3 : index
    %c0_35 = arith.constant 0 : index
    %c0_36 = arith.constant 0 : index
    %38 = vector.load %arg4[%c3_34, %c0_35, %c0_36] : memref<4x16x32xf32, #tpu.memory_space<vmem>>, vector<1x16x32xf32>
    %39 = vector.shape_cast %38 : vector<1x16x32xf32> to vector<16x32xf32>
    %40 = vector.shape_cast %37 : vector<16x32xf32> to vector<1x16x32xf32>
    tpu.vector_store %arg4[%c3_34, %c0_35, %c0_36], %40 {strides = array<i32>} : memref<4x16x32xf32, #tpu.memory_space<vmem>>, vector<1x16x32xf32>,
    return
  }
  func.func @transform_0(%arg0: i32) -> (i32, i32) {
    %c0_i32 = arith.constant 0 : i32
    %c0_i32_0 = arith.constant 0 : i32
    return %arg0, %c0_i32 : i32, i32
  }
  func.func @transform_1(%arg0: i32) -> (i32, i32, i32) {
    %c0_i32 = arith.constant 0 : i32
    %c0_i32_0 = arith.constant 0 : i32
    %c0_i32_1 = arith.constant 0 : i32
    %c0_i32_2 = arith.constant 0 : i32
    return %c0_i32, %c0_i32_0, %c0_i32_1 : i32, i32, i32
  }
  func.func @transform_2(%arg0: i32) -> (i32, i32, i32) {
    %c0_i32 = arith.constant 0 : i32
    %c0_i32_0 = arith.constant 0 : i32
    %c0_i32_1 = arith.constant 0 : i32
    %c0_i32_2 = arith.constant 0 : i32
    return %c0_i32, %c0_i32_0, %c0_i32_1 : i32, i32, i32
  }
  func.func @transform_3(%arg0: i32) -> (i32, i32, i32) {
    %c0_i32 = arith.constant 0 : i32
    %c0_i32_0 = arith.constant 0 : i32
    %c0_i32_1 = arith.constant 0 : i32
    return %c0_i32, %arg0, %c0_i32_0 : i32, i32, i32
  }
}

module attributes {stable_mosaic.version = 11 : i64} {
  func.func @_input_proj_kernel(%arg0: i32, %arg1: memref<16x4xf32, #tpu.memory_space<vmem>>, %arg2: memref<4x4x32xbf16, #tpu.memory_space<vmem>>, %arg3: memref<4x1x32xf32, #tpu.memory_space<vmem>>, %arg4: memref<4x16x32xf32, #tpu.memory_space<vmem>>) attributes {dimension_semantics = [#tpu.dimension_semantics<parallel>], iteration_bounds = array<i64: 1>, scalar_prefetch = 0 : i64, scratch_operands = 0 : i64, tpu.core_type = #tpu.core_type<tc>, window_params = [{transform_indices = @transform_0, window_bounds = array<i64: 16, 4>}, {pipeline_mode = #tpu.pipeline_mode<synchronous>, transform_indices = @transform_1, window_bounds = array<i64: 4, 4, 32>}, {pipeline_mode = #tpu.pipeline_mode<synchronous>, transform_indices = @transform_2, window_bounds = array<i64: 4, 1, 32>}, {transform_indices = @transform_3, window_bounds = array<i64: 4, 16, 32>}]} {
    %c0 = arith.constant 0 : index
    %c0_0 = arith.constant 0 : index
    %0 = vector.load %arg1[%c0, %c0_0] : memref<16x4xf32, #tpu.memory_space<vmem>>, vector<16x4xf32>
    %1 = arith.truncf %0 : vector<16x4xf32> to vector<16x4xbf16>
    %c0_1 = arith.constant 0 : index
    %c0_2 = arith.constant 0 : index
    %c0_3 = arith.constant 0 : index
    %2 = vector.load %arg2[%c0_1, %c0_2, %c0_3] : memref<4x4x32xbf16, #tpu.memory_space<vmem>>, vector<1x4x32xbf16>
    %3 = vector.shape_cast %2 : vector<1x4x32xbf16> to vector<4x32xbf16>
    %cst = arith.constant dense<0.000000e+00> : vector<16x32xf32>
    %4 = tpu.matmul %1, %3, %cst {dimension_numbers = #tpu.dot_dimension_numbers<[1], [0], [0], [1], [0, 0, 1, 1], [], []>} : vector<16x4xbf16>, vector<4x32xbf16>, vector<16x32xf32> -> vector<16x32xf32>
    %c0_4 = arith.constant 0 : index
    %c0_5 = arith.constant 0 : index
    %c0_6 = arith.constant 0 : index
    %5 = vector.load %arg3[%c0_4, %c0_5, %c0_6] : memref<4x1x32xf32, #tpu.memory_space<vmem>>, vector<1x1x32xf32>
    %6 = vector.shape_cast %5 : vector<1x1x32xf32> to vector<1x32xf32>
    %7 = vector.broadcast %6 : vector<1x32xf32> to vector<16x32xf32>
    %8 = arith.addf %4, %7 : vector<16x32xf32>
    %c0_7 = arith.constant 0 : index
    %c0_8 = arith.constant 0 : index
    %c0_9 = arith.constant 0 : index
    %9 = vector.load %arg4[%c0_7, %c0_8, %c0_9] : memref<4x16x32xf32, #tpu.memory_space<vmem>>, vector<1x16x32xf32>
    %10 = vector.shape_cast %9 : vector<1x16x32xf32> to vector<16x32xf32>
    %11 = vector.shape_cast %8 : vector<16x32xf32> to vector<1x16x32xf32>
    tpu.vector_store %arg4[%c0_7, %c0_8, %c0_9], %11 {strides = array<i32>} : memref<4x16x32xf32, #tpu.memory_space<vmem>>, vector<1x16x32xf32>,
    %c1 = arith.constant 1 : index
    %c0_10 = arith.constant 0 : index
    %c0_11 = arith.constant 0 : index
    %12 = vector.load %arg2[%c1, %c0_10, %c0_11] : memref<4x4x32xbf16, #tpu.memory_space<vmem>>, vector<1x4x32xbf16>
    %13 = vector.shape_cast %12 : vector<1x4x32xbf16> to vector<4x32xbf16>
    %cst_12 = arith.constant dense<0.000000e+00> : vector<16x32xf32>
    %14 = tpu.matmul %1, %13, %cst_12 {dimension_numbers = #tpu.dot_dimension_numbers<[1], [0], [0], [1], [0, 0, 1, 1], [], []>} : vector<16x4xbf16>, vector<4x32xbf16>, vector<16x32xf32> -> vector<16x32xf32>
    %c1_13 = arith.constant 1 : index
    %c0_14 = arith.constant 0 : index
    %c0_15 = arith.constant 0 : index
    %15 = vector.load %arg3[%c1_13, %c0_14, %c0_15] : memref<4x1x32xf32, #tpu.memory_space<vmem>>, vector<1x1x32xf32>
    %16 = vector.shape_cast %15 : vector<1x1x32xf32> to vector<1x32xf32>
    %17 = vector.broadcast %16 : vector<1x32xf32> to vector<16x32xf32>
    %18 = arith.addf %14, %17 : vector<16x32xf32>
    %c1_16 = arith.constant 1 : index
    %c0_17 = arith.constant 0 : index
    %c0_18 = arith.constant 0 : index
    %19 = vector.load %arg4[%c1_16, %c0_17, %c0_18] : memref<4x16x32xf32, #tpu.memory_space<vmem>>, vector<1x16x32xf32>
    %20 = vector.shape_cast %19 : vector<1x16x32xf32> to vector<16x32xf32>
    %21 = vector.shape_cast %18 : vector<16x32xf32> to vector<1x16x32xf32>
    tpu.vector_store %arg4[%c1_16, %c0_17, %c0_18], %21 {strides = array<i32>} : memref<4x16x32xf32, #tpu.memory_space<vmem>>, vector<1x16x32xf32>,
    %c2 = arith.constant 2 : index
    %c0_19 = arith.constant 0 : index
    %c0_20 = arith.constant 0 : index
    %22 = vector.load %arg2[%c2, %c0_19, %c0_20] : memref<4x4x32xbf16, #tpu.memory_space<vmem>>, vector<1x4x32xbf16>
    %23 = vector.shape_cast %22 : vector<1x4x32xbf16> to vector<4x32xbf16>
    %cst_21 = arith.constant dense<0.000000e+00> : vector<16x32xf32>
    %24 = tpu.matmul %1, %23, %cst_21 {dimension_numbers = #tpu.dot_dimension_numbers<[1], [0], [0], [1], [0, 0, 1, 1], [], []>} : vector<16x4xbf16>, vector<4x32xbf16>, vector<16x32xf32> -> vector<16x32xf32>
    %c2_22 = arith.constant 2 : index
    %c0_23 = arith.constant 0 : index
    %c0_24 = arith.constant 0 : index
    %25 = vector.load %arg3[%c2_22, %c0_23, %c0_24] : memref<4x1x32xf32, #tpu.memory_space<vmem>>, vector<1x1x32xf32>
    %26 = vector.shape_cast %25 : vector<1x1x32xf32> to vector<1x32xf32>
    %27 = vector.broadcast %26 : vector<1x32xf32> to vector<16x32xf32>
    %28 = arith.addf %24, %27 : vector<16x32xf32>
    %c2_25 = arith.constant 2 : index
    %c0_26 = arith.constant 0 : index
    %c0_27 = arith.constant 0 : index
    %29 = vector.load %arg4[%c2_25, %c0_26, %c0_27] : memref<4x16x32xf32, #tpu.memory_space<vmem>>, vector<1x16x32xf32>
    %30 = vector.shape_cast %29 : vector<1x16x32xf32> to vector<16x32xf32>
    %31 = vector.shape_cast %28 : vector<16x32xf32> to vector<1x16x32xf32>
    tpu.vector_store %arg4[%c2_25, %c0_26, %c0_27], %31 {strides = array<i32>} : memref<4x16x32xf32, #tpu.memory_space<vmem>>, vector<1x16x32xf32>,
    %c3 = arith.constant 3 : index
    %c0_28 = arith.constant 0 : index
    %c0_29 = arith.constant 0 : index
    %32 = vector.load %arg2[%c3, %c0_28, %c0_29] : memref<4x4x32xbf16, #tpu.memory_space<vmem>>, vector<1x4x32xbf16>
    %33 = vector.shape_cast %32 : vector<1x4x32xbf16> to vector<4x32xbf16>
    %cst_30 = arith.constant dense<0.000000e+00> : vector<16x32xf32>
    %34 = tpu.matmul %1, %33, %cst_30 {dimension_numbers = #tpu.dot_dimension_numbers<[1], [0], [0], [1], [0, 0, 1, 1], [], []>} : vector<16x4xbf16>, vector<4x32xbf16>, vector<16x32xf32> -> vector<16x32xf32>
    %c3_31 = arith.constant 3 : index
    %c0_32 = arith.constant 0 : index
    %c0_33 = arith.constant 0 : index
    %35 = vector.load %arg3[%c3_31, %c0_32, %c0_33] : memref<4x1x32xf32, #tpu.memory_space<vmem>>, vector<1x1x32xf32>
    %36 = vector.shape_cast %35 : vector<1x1x32xf32> to vector<1x32xf32>
    %37 = vector.broadcast %36 : vector<1x32xf32> to vector<16x32xf32>
    %38 = arith.addf %34, %37 : vector<16x32xf32>
    %c3_34 = arith.constant 3 : index
    %c0_35 = arith.constant 0 : index
    %c0_36 = arith.constant 0 : index
    %39 = vector.load %arg4[%c3_34, %c0_35, %c0_36] : memref<4x16x32xf32, #tpu.memory_space<vmem>>, vector<1x16x32xf32>
    %40 = vector.shape_cast %39 : vector<1x16x32xf32> to vector<16x32xf32>
    %41 = vector.shape_cast %38 : vector<16x32xf32> to vector<1x16x32xf32>
    tpu.vector_store %arg4[%c3_34, %c0_35, %c0_36], %41 {strides = array<i32>} : memref<4x16x32xf32, #tpu.memory_space<vmem>>, vector<1x16x32xf32>,
    return
  }
  func.func @transform_0(%arg0: i32) -> (i32, i32) {
    %c0_i32 = arith.constant 0 : i32
    %c0_i32_0 = arith.constant 0 : i32
    return %arg0, %c0_i32 : i32, i32
  }
  func.func @transform_1(%arg0: i32) -> (i32, i32, i32) {
    %c0_i32 = arith.constant 0 : i32
    %c0_i32_0 = arith.constant 0 : i32
    %c0_i32_1 = arith.constant 0 : i32
    %c0_i32_2 = arith.constant 0 : i32
    return %c0_i32, %c0_i32_0, %c0_i32_1 : i32, i32, i32
  }
  func.func @transform_2(%arg0: i32) -> (i32, i32, i32) {
    %c0_i32 = arith.constant 0 : i32
    %c0_i32_0 = arith.constant 0 : i32
    %c0_i32_1 = arith.constant 0 : i32
    %c0_i32_2 = arith.constant 0 : i32
    return %c0_i32, %c0_i32_0, %c0_i32_1 : i32, i32, i32
  }
  func.func @transform_3(%arg0: i32) -> (i32, i32, i32) {
    %c0_i32 = arith.constant 0 : i32
    %c0_i32_0 = arith.constant 0 : i32
    %c0_i32_1 = arith.constant 0 : i32
    return %c0_i32, %arg0, %c0_i32_0 : i32, i32, i32
  }
}

module attributes {stable_mosaic.version = 11 : i64} {
  func.func @_lstm_recurrent_kernel(%arg0: i32, %arg1: memref<4x8x2x32xf32, #tpu.memory_space<vmem>>, %arg2: memref<4x32x32xbf16, #tpu.memory_space<vmem>>, %arg3: memref<8x2x32xbf16, #tpu.memory_space<vmem>>, %arg4: memref<2x32xf32, #tpu.memory_space<vmem>>, %arg5: memref<2x32xf32, #tpu.memory_space<vmem>>) attributes {dimension_semantics = [#tpu.dimension_semantics<arbitrary>], iteration_bounds = array<i64: 1>, scalar_prefetch = 0 : i64, scratch_operands = 2 : i64, tpu.core_type = #tpu.core_type<tc>, window_params = [{transform_indices = @transform_0, window_bounds = array<i64: 4, 8, 2, 32>}, {pipeline_mode = #tpu.pipeline_mode<synchronous>, transform_indices = @transform_1, window_bounds = array<i64: 4, 32, 32>}, {transform_indices = @transform_2, window_bounds = array<i64: 8, 2, 32>}]} {
    %c0_i32 = arith.constant 0 : i32
    %0 = arith.cmpi eq, %arg0, %c0_i32 : i32
    %1 = arith.extui %0 : i1 to i32
    %c0_i32_0 = arith.constant 0 : i32
    %2 = arith.cmpi ne, %1, %c0_i32_0 : i32
    scf.if %2 {
      %cst_220 = arith.constant 0.000000e+00 : f32
      %351 = vector.broadcast %cst_220 : f32 to vector<2x32xf32>
      %c0_221 = arith.constant 0 : index
      %c0_222 = arith.constant 0 : index
      %352 = vector.load %arg4[%c0_221, %c0_222] : memref<2x32xf32, #tpu.memory_space<vmem>>, vector<2x32xf32>
      tpu.vector_store %arg4[%c0_221, %c0_222], %351 {strides = array<i32>} : memref<2x32xf32, #tpu.memory_space<vmem>>, vector<2x32xf32>,
      %cst_223 = arith.constant 0.000000e+00 : f32
      %353 = vector.broadcast %cst_223 : f32 to vector<2x32xf32>
      %c0_224 = arith.constant 0 : index
      %c0_225 = arith.constant 0 : index
      %354 = vector.load %arg5[%c0_224, %c0_225] : memref<2x32xf32, #tpu.memory_space<vmem>>, vector<2x32xf32>
      tpu.vector_store %arg5[%c0_224, %c0_225], %353 {strides = array<i32>} : memref<2x32xf32, #tpu.memory_space<vmem>>, vector<2x32xf32>,
    } else {
    }
    %c0 = arith.constant 0 : index
    %c0_1 = arith.constant 0 : index
    %c0_2 = arith.constant 0 : index
    %3 = vector.load %arg2[%c0, %c0_1, %c0_2] : memref<4x32x32xbf16, #tpu.memory_space<vmem>>, vector<1x32x32xbf16>
    %4 = vector.shape_cast %3 : vector<1x32x32xbf16> to vector<32x32xbf16>
    %c1 = arith.constant 1 : index
    %c0_3 = arith.constant 0 : index
    %c0_4 = arith.constant 0 : index
    %5 = vector.load %arg2[%c1, %c0_3, %c0_4] : memref<4x32x32xbf16, #tpu.memory_space<vmem>>, vector<1x32x32xbf16>
    %6 = vector.shape_cast %5 : vector<1x32x32xbf16> to vector<32x32xbf16>
    %c2 = arith.constant 2 : index
    %c0_5 = arith.constant 0 : index
    %c0_6 = arith.constant 0 : index
    %7 = vector.load %arg2[%c2, %c0_5, %c0_6] : memref<4x32x32xbf16, #tpu.memory_space<vmem>>, vector<1x32x32xbf16>
    %8 = vector.shape_cast %7 : vector<1x32x32xbf16> to vector<32x32xbf16>
    %c3 = arith.constant 3 : index
    %c0_7 = arith.constant 0 : index
    %c0_8 = arith.constant 0 : index
    %9 = vector.load %arg2[%c3, %c0_7, %c0_8] : memref<4x32x32xbf16, #tpu.memory_space<vmem>>, vector<1x32x32xbf16>
    %10 = vector.shape_cast %9 : vector<1x32x32xbf16> to vector<32x32xbf16>
    %c0_9 = arith.constant 0 : index
    %c0_10 = arith.constant 0 : index
    %11 = vector.load %arg4[%c0_9, %c0_10] : memref<2x32xf32, #tpu.memory_space<vmem>>, vector<2x32xf32>
    %c0_11 = arith.constant 0 : index
    %c0_12 = arith.constant 0 : index
    %12 = vector.load %arg5[%c0_11, %c0_12] : memref<2x32xf32, #tpu.memory_space<vmem>>, vector<2x32xf32>
    %13 = arith.truncf %11 : vector<2x32xf32> to vector<2x32xbf16>
    %c0_13 = arith.constant 0 : index
    %c0_14 = arith.constant 0 : index
    %c0_15 = arith.constant 0 : index
    %c0_16 = arith.constant 0 : index
    %14 = vector.load %arg1[%c0_13, %c0_14, %c0_15, %c0_16] : memref<4x8x2x32xf32, #tpu.memory_space<vmem>>, vector<1x1x2x32xf32>
    %15 = vector.shape_cast %14 : vector<1x1x2x32xf32> to vector<2x32xf32>
    %cst = arith.constant dense<0.000000e+00> : vector<2x32xf32>
    %16 = tpu.matmul %13, %4, %cst {dimension_numbers = #tpu.dot_dimension_numbers<[1], [0], [0], [1], [0, 0, 1, 1], [], []>} : vector<2x32xbf16>, vector<32x32xbf16>, vector<2x32xf32> -> vector<2x32xf32>
    %17 = arith.addf %15, %16 : vector<2x32xf32>
    %c1_17 = arith.constant 1 : index
    %c0_18 = arith.constant 0 : index
    %c0_19 = arith.constant 0 : index
    %c0_20 = arith.constant 0 : index
    %18 = vector.load %arg1[%c1_17, %c0_18, %c0_19, %c0_20] : memref<4x8x2x32xf32, #tpu.memory_space<vmem>>, vector<1x1x2x32xf32>
    %19 = vector.shape_cast %18 : vector<1x1x2x32xf32> to vector<2x32xf32>
    %cst_21 = arith.constant dense<0.000000e+00> : vector<2x32xf32>
    %20 = tpu.matmul %13, %6, %cst_21 {dimension_numbers = #tpu.dot_dimension_numbers<[1], [0], [0], [1], [0, 0, 1, 1], [], []>} : vector<2x32xbf16>, vector<32x32xbf16>, vector<2x32xf32> -> vector<2x32xf32>
    %21 = arith.addf %19, %20 : vector<2x32xf32>
    %c2_22 = arith.constant 2 : index
    %c0_23 = arith.constant 0 : index
    %c0_24 = arith.constant 0 : index
    %c0_25 = arith.constant 0 : index
    %22 = vector.load %arg1[%c2_22, %c0_23, %c0_24, %c0_25] : memref<4x8x2x32xf32, #tpu.memory_space<vmem>>, vector<1x1x2x32xf32>
    %23 = vector.shape_cast %22 : vector<1x1x2x32xf32> to vector<2x32xf32>
    %cst_26 = arith.constant dense<0.000000e+00> : vector<2x32xf32>
    %24 = tpu.matmul %13, %8, %cst_26 {dimension_numbers = #tpu.dot_dimension_numbers<[1], [0], [0], [1], [0, 0, 1, 1], [], []>} : vector<2x32xbf16>, vector<32x32xbf16>, vector<2x32xf32> -> vector<2x32xf32>
    %25 = arith.addf %23, %24 : vector<2x32xf32>
    %c3_27 = arith.constant 3 : index
    %c0_28 = arith.constant 0 : index
    %c0_29 = arith.constant 0 : index
    %c0_30 = arith.constant 0 : index
    %26 = vector.load %arg1[%c3_27, %c0_28, %c0_29, %c0_30] : memref<4x8x2x32xf32, #tpu.memory_space<vmem>>, vector<1x1x2x32xf32>
    %27 = vector.shape_cast %26 : vector<1x1x2x32xf32> to vector<2x32xf32>
    %cst_31 = arith.constant dense<0.000000e+00> : vector<2x32xf32>
    %28 = tpu.matmul %13, %10, %cst_31 {dimension_numbers = #tpu.dot_dimension_numbers<[1], [0], [0], [1], [0, 0, 1, 1], [], []>} : vector<2x32xbf16>, vector<32x32xbf16>, vector<2x32xf32> -> vector<2x32xf32>
    %29 = arith.addf %27, %28 : vector<2x32xf32>
    %30 = arith.negf %17 : vector<2x32xf32>
    %31 = math.exp %30 : vector<2x32xf32>
    %cst_32 = arith.constant 1.000000e+00 : f32
    %32 = vector.broadcast %cst_32 : f32 to vector<2x32xf32>
    %33 = arith.addf %32, %31 : vector<2x32xf32>
    %34 = arith.divf %32, %33 : vector<2x32xf32>
    %35 = arith.negf %21 : vector<2x32xf32>
    %36 = math.exp %35 : vector<2x32xf32>
    %cst_33 = arith.constant 1.000000e+00 : f32
    %37 = vector.broadcast %cst_33 : f32 to vector<2x32xf32>
    %38 = arith.addf %37, %36 : vector<2x32xf32>
    %39 = arith.divf %37, %38 : vector<2x32xf32>
    %40 = math.tanh %25 : vector<2x32xf32>
    %41 = arith.negf %29 : vector<2x32xf32>
    %42 = math.exp %41 : vector<2x32xf32>
    %cst_34 = arith.constant 1.000000e+00 : f32
    %43 = vector.broadcast %cst_34 : f32 to vector<2x32xf32>
    %44 = arith.addf %43, %42 : vector<2x32xf32>
    %45 = arith.divf %43, %44 : vector<2x32xf32>
    %46 = arith.mulf %39, %12 : vector<2x32xf32>
    %47 = arith.mulf %34, %40 : vector<2x32xf32>
    %48 = arith.addf %46, %47 : vector<2x32xf32>
    %49 = math.tanh %48 : vector<2x32xf32>
    %50 = arith.mulf %45, %49 : vector<2x32xf32>
    %51 = arith.truncf %50 : vector<2x32xf32> to vector<2x32xbf16>
    %c0_35 = arith.constant 0 : index
    %c0_36 = arith.constant 0 : index
    %c0_37 = arith.constant 0 : index
    %52 = vector.load %arg3[%c0_35, %c0_36, %c0_37] : memref<8x2x32xbf16, #tpu.memory_space<vmem>>, vector<1x2x32xbf16>
    %53 = vector.shape_cast %52 : vector<1x2x32xbf16> to vector<2x32xbf16>
    %54 = vector.shape_cast %51 : vector<2x32xbf16> to vector<1x2x32xbf16>
    tpu.vector_store %arg3[%c0_35, %c0_36, %c0_37], %54 {strides = array<i32>} : memref<8x2x32xbf16, #tpu.memory_space<vmem>>, vector<1x2x32xbf16>,
    %55 = arith.truncf %50 : vector<2x32xf32> to vector<2x32xbf16>
    %c0_38 = arith.constant 0 : index
    %c1_39 = arith.constant 1 : index
    %c0_40 = arith.constant 0 : index
    %c0_41 = arith.constant 0 : index
    %56 = vector.load %arg1[%c0_38, %c1_39, %c0_40, %c0_41] : memref<4x8x2x32xf32, #tpu.memory_space<vmem>>, vector<1x1x2x32xf32>
    %57 = vector.shape_cast %56 : vector<1x1x2x32xf32> to vector<2x32xf32>
    %cst_42 = arith.constant dense<0.000000e+00> : vector<2x32xf32>
    %58 = tpu.matmul %55, %4, %cst_42 {dimension_numbers = #tpu.dot_dimension_numbers<[1], [0], [0], [1], [0, 0, 1, 1], [], []>} : vector<2x32xbf16>, vector<32x32xbf16>, vector<2x32xf32> -> vector<2x32xf32>
    %59 = arith.addf %57, %58 : vector<2x32xf32>
    %c1_43 = arith.constant 1 : index
    %c1_44 = arith.constant 1 : index
    %c0_45 = arith.constant 0 : index
    %c0_46 = arith.constant 0 : index
    %60 = vector.load %arg1[%c1_43, %c1_44, %c0_45, %c0_46] : memref<4x8x2x32xf32, #tpu.memory_space<vmem>>, vector<1x1x2x32xf32>
    %61 = vector.shape_cast %60 : vector<1x1x2x32xf32> to vector<2x32xf32>
    %cst_47 = arith.constant dense<0.000000e+00> : vector<2x32xf32>
    %62 = tpu.matmul %55, %6, %cst_47 {dimension_numbers = #tpu.dot_dimension_numbers<[1], [0], [0], [1], [0, 0, 1, 1], [], []>} : vector<2x32xbf16>, vector<32x32xbf16>, vector<2x32xf32> -> vector<2x32xf32>
    %63 = arith.addf %61, %62 : vector<2x32xf32>
    %c2_48 = arith.constant 2 : index
    %c1_49 = arith.constant 1 : index
    %c0_50 = arith.constant 0 : index
    %c0_51 = arith.constant 0 : index
    %64 = vector.load %arg1[%c2_48, %c1_49, %c0_50, %c0_51] : memref<4x8x2x32xf32, #tpu.memory_space<vmem>>, vector<1x1x2x32xf32>
    %65 = vector.shape_cast %64 : vector<1x1x2x32xf32> to vector<2x32xf32>
    %cst_52 = arith.constant dense<0.000000e+00> : vector<2x32xf32>
    %66 = tpu.matmul %55, %8, %cst_52 {dimension_numbers = #tpu.dot_dimension_numbers<[1], [0], [0], [1], [0, 0, 1, 1], [], []>} : vector<2x32xbf16>, vector<32x32xbf16>, vector<2x32xf32> -> vector<2x32xf32>
    %67 = arith.addf %65, %66 : vector<2x32xf32>
    %c3_53 = arith.constant 3 : index
    %c1_54 = arith.constant 1 : index
    %c0_55 = arith.constant 0 : index
    %c0_56 = arith.constant 0 : index
    %68 = vector.load %arg1[%c3_53, %c1_54, %c0_55, %c0_56] : memref<4x8x2x32xf32, #tpu.memory_space<vmem>>, vector<1x1x2x32xf32>
    %69 = vector.shape_cast %68 : vector<1x1x2x32xf32> to vector<2x32xf32>
    %cst_57 = arith.constant dense<0.000000e+00> : vector<2x32xf32>
    %70 = tpu.matmul %55, %10, %cst_57 {dimension_numbers = #tpu.dot_dimension_numbers<[1], [0], [0], [1], [0, 0, 1, 1], [], []>} : vector<2x32xbf16>, vector<32x32xbf16>, vector<2x32xf32> -> vector<2x32xf32>
    %71 = arith.addf %69, %70 : vector<2x32xf32>
    %72 = arith.negf %59 : vector<2x32xf32>
    %73 = math.exp %72 : vector<2x32xf32>
    %cst_58 = arith.constant 1.000000e+00 : f32
    %74 = vector.broadcast %cst_58 : f32 to vector<2x32xf32>
    %75 = arith.addf %74, %73 : vector<2x32xf32>
    %76 = arith.divf %74, %75 : vector<2x32xf32>
    %77 = arith.negf %63 : vector<2x32xf32>
    %78 = math.exp %77 : vector<2x32xf32>
    %cst_59 = arith.constant 1.000000e+00 : f32
    %79 = vector.broadcast %cst_59 : f32 to vector<2x32xf32>
    %80 = arith.addf %79, %78 : vector<2x32xf32>
    %81 = arith.divf %79, %80 : vector<2x32xf32>
    %82 = math.tanh %67 : vector<2x32xf32>
    %83 = arith.negf %71 : vector<2x32xf32>
    %84 = math.exp %83 : vector<2x32xf32>
    %cst_60 = arith.constant 1.000000e+00 : f32
    %85 = vector.broadcast %cst_60 : f32 to vector<2x32xf32>
    %86 = arith.addf %85, %84 : vector<2x32xf32>
    %87 = arith.divf %85, %86 : vector<2x32xf32>
    %88 = arith.mulf %81, %48 : vector<2x32xf32>
    %89 = arith.mulf %76, %82 : vector<2x32xf32>
    %90 = arith.addf %88, %89 : vector<2x32xf32>
    %91 = math.tanh %90 : vector<2x32xf32>
    %92 = arith.mulf %87, %91 : vector<2x32xf32>
    %93 = arith.truncf %92 : vector<2x32xf32> to vector<2x32xbf16>
    %c1_61 = arith.constant 1 : index
    %c0_62 = arith.constant 0 : index
    %c0_63 = arith.constant 0 : index
    %94 = vector.load %arg3[%c1_61, %c0_62, %c0_63] : memref<8x2x32xbf16, #tpu.memory_space<vmem>>, vector<1x2x32xbf16>
    %95 = vector.shape_cast %94 : vector<1x2x32xbf16> to vector<2x32xbf16>
    %96 = vector.shape_cast %93 : vector<2x32xbf16> to vector<1x2x32xbf16>
    tpu.vector_store %arg3[%c1_61, %c0_62, %c0_63], %96 {strides = array<i32>} : memref<8x2x32xbf16, #tpu.memory_space<vmem>>, vector<1x2x32xbf16>,
    %97 = arith.truncf %92 : vector<2x32xf32> to vector<2x32xbf16>
    %c0_64 = arith.constant 0 : index
    %c2_65 = arith.constant 2 : index
    %c0_66 = arith.constant 0 : index
    %c0_67 = arith.constant 0 : index
    %98 = vector.load %arg1[%c0_64, %c2_65, %c0_66, %c0_67] : memref<4x8x2x32xf32, #tpu.memory_space<vmem>>, vector<1x1x2x32xf32>
    %99 = vector.shape_cast %98 : vector<1x1x2x32xf32> to vector<2x32xf32>
    %cst_68 = arith.constant dense<0.000000e+00> : vector<2x32xf32>
    %100 = tpu.matmul %97, %4, %cst_68 {dimension_numbers = #tpu.dot_dimension_numbers<[1], [0], [0], [1], [0, 0, 1, 1], [], []>} : vector<2x32xbf16>, vector<32x32xbf16>, vector<2x32xf32> -> vector<2x32xf32>
    %101 = arith.addf %99, %100 : vector<2x32xf32>
    %c1_69 = arith.constant 1 : index
    %c2_70 = arith.constant 2 : index
    %c0_71 = arith.constant 0 : index
    %c0_72 = arith.constant 0 : index
    %102 = vector.load %arg1[%c1_69, %c2_70, %c0_71, %c0_72] : memref<4x8x2x32xf32, #tpu.memory_space<vmem>>, vector<1x1x2x32xf32>
    %103 = vector.shape_cast %102 : vector<1x1x2x32xf32> to vector<2x32xf32>
    %cst_73 = arith.constant dense<0.000000e+00> : vector<2x32xf32>
    %104 = tpu.matmul %97, %6, %cst_73 {dimension_numbers = #tpu.dot_dimension_numbers<[1], [0], [0], [1], [0, 0, 1, 1], [], []>} : vector<2x32xbf16>, vector<32x32xbf16>, vector<2x32xf32> -> vector<2x32xf32>
    %105 = arith.addf %103, %104 : vector<2x32xf32>
    %c2_74 = arith.constant 2 : index
    %c2_75 = arith.constant 2 : index
    %c0_76 = arith.constant 0 : index
    %c0_77 = arith.constant 0 : index
    %106 = vector.load %arg1[%c2_74, %c2_75, %c0_76, %c0_77] : memref<4x8x2x32xf32, #tpu.memory_space<vmem>>, vector<1x1x2x32xf32>
    %107 = vector.shape_cast %106 : vector<1x1x2x32xf32> to vector<2x32xf32>
    %cst_78 = arith.constant dense<0.000000e+00> : vector<2x32xf32>
    %108 = tpu.matmul %97, %8, %cst_78 {dimension_numbers = #tpu.dot_dimension_numbers<[1], [0], [0], [1], [0, 0, 1, 1], [], []>} : vector<2x32xbf16>, vector<32x32xbf16>, vector<2x32xf32> -> vector<2x32xf32>
    %109 = arith.addf %107, %108 : vector<2x32xf32>
    %c3_79 = arith.constant 3 : index
    %c2_80 = arith.constant 2 : index
    %c0_81 = arith.constant 0 : index
    %c0_82 = arith.constant 0 : index
    %110 = vector.load %arg1[%c3_79, %c2_80, %c0_81, %c0_82] : memref<4x8x2x32xf32, #tpu.memory_space<vmem>>, vector<1x1x2x32xf32>
    %111 = vector.shape_cast %110 : vector<1x1x2x32xf32> to vector<2x32xf32>
    %cst_83 = arith.constant dense<0.000000e+00> : vector<2x32xf32>
    %112 = tpu.matmul %97, %10, %cst_83 {dimension_numbers = #tpu.dot_dimension_numbers<[1], [0], [0], [1], [0, 0, 1, 1], [], []>} : vector<2x32xbf16>, vector<32x32xbf16>, vector<2x32xf32> -> vector<2x32xf32>
    %113 = arith.addf %111, %112 : vector<2x32xf32>
    %114 = arith.negf %101 : vector<2x32xf32>
    %115 = math.exp %114 : vector<2x32xf32>
    %cst_84 = arith.constant 1.000000e+00 : f32
    %116 = vector.broadcast %cst_84 : f32 to vector<2x32xf32>
    %117 = arith.addf %116, %115 : vector<2x32xf32>
    %118 = arith.divf %116, %117 : vector<2x32xf32>
    %119 = arith.negf %105 : vector<2x32xf32>
    %120 = math.exp %119 : vector<2x32xf32>
    %cst_85 = arith.constant 1.000000e+00 : f32
    %121 = vector.broadcast %cst_85 : f32 to vector<2x32xf32>
    %122 = arith.addf %121, %120 : vector<2x32xf32>
    %123 = arith.divf %121, %122 : vector<2x32xf32>
    %124 = math.tanh %109 : vector<2x32xf32>
    %125 = arith.negf %113 : vector<2x32xf32>
    %126 = math.exp %125 : vector<2x32xf32>
    %cst_86 = arith.constant 1.000000e+00 : f32
    %127 = vector.broadcast %cst_86 : f32 to vector<2x32xf32>
    %128 = arith.addf %127, %126 : vector<2x32xf32>
    %129 = arith.divf %127, %128 : vector<2x32xf32>
    %130 = arith.mulf %123, %90 : vector<2x32xf32>
    %131 = arith.mulf %118, %124 : vector<2x32xf32>
    %132 = arith.addf %130, %131 : vector<2x32xf32>
    %133 = math.tanh %132 : vector<2x32xf32>
    %134 = arith.mulf %129, %133 : vector<2x32xf32>
    %135 = arith.truncf %134 : vector<2x32xf32> to vector<2x32xbf16>
    %c2_87 = arith.constant 2 : index
    %c0_88 = arith.constant 0 : index
    %c0_89 = arith.constant 0 : index
    %136 = vector.load %arg3[%c2_87, %c0_88, %c0_89] : memref<8x2x32xbf16, #tpu.memory_space<vmem>>, vector<1x2x32xbf16>
    %137 = vector.shape_cast %136 : vector<1x2x32xbf16> to vector<2x32xbf16>
    %138 = vector.shape_cast %135 : vector<2x32xbf16> to vector<1x2x32xbf16>
    tpu.vector_store %arg3[%c2_87, %c0_88, %c0_89], %138 {strides = array<i32>} : memref<8x2x32xbf16, #tpu.memory_space<vmem>>, vector<1x2x32xbf16>,
    %139 = arith.truncf %134 : vector<2x32xf32> to vector<2x32xbf16>
    %c0_90 = arith.constant 0 : index
    %c3_91 = arith.constant 3 : index
    %c0_92 = arith.constant 0 : index
    %c0_93 = arith.constant 0 : index
    %140 = vector.load %arg1[%c0_90, %c3_91, %c0_92, %c0_93] : memref<4x8x2x32xf32, #tpu.memory_space<vmem>>, vector<1x1x2x32xf32>
    %141 = vector.shape_cast %140 : vector<1x1x2x32xf32> to vector<2x32xf32>
    %cst_94 = arith.constant dense<0.000000e+00> : vector<2x32xf32>
    %142 = tpu.matmul %139, %4, %cst_94 {dimension_numbers = #tpu.dot_dimension_numbers<[1], [0], [0], [1], [0, 0, 1, 1], [], []>} : vector<2x32xbf16>, vector<32x32xbf16>, vector<2x32xf32> -> vector<2x32xf32>
    %143 = arith.addf %141, %142 : vector<2x32xf32>
    %c1_95 = arith.constant 1 : index
    %c3_96 = arith.constant 3 : index
    %c0_97 = arith.constant 0 : index
    %c0_98 = arith.constant 0 : index
    %144 = vector.load %arg1[%c1_95, %c3_96, %c0_97, %c0_98] : memref<4x8x2x32xf32, #tpu.memory_space<vmem>>, vector<1x1x2x32xf32>
    %145 = vector.shape_cast %144 : vector<1x1x2x32xf32> to vector<2x32xf32>
    %cst_99 = arith.constant dense<0.000000e+00> : vector<2x32xf32>
    %146 = tpu.matmul %139, %6, %cst_99 {dimension_numbers = #tpu.dot_dimension_numbers<[1], [0], [0], [1], [0, 0, 1, 1], [], []>} : vector<2x32xbf16>, vector<32x32xbf16>, vector<2x32xf32> -> vector<2x32xf32>
    %147 = arith.addf %145, %146 : vector<2x32xf32>
    %c2_100 = arith.constant 2 : index
    %c3_101 = arith.constant 3 : index
    %c0_102 = arith.constant 0 : index
    %c0_103 = arith.constant 0 : index
    %148 = vector.load %arg1[%c2_100, %c3_101, %c0_102, %c0_103] : memref<4x8x2x32xf32, #tpu.memory_space<vmem>>, vector<1x1x2x32xf32>
    %149 = vector.shape_cast %148 : vector<1x1x2x32xf32> to vector<2x32xf32>
    %cst_104 = arith.constant dense<0.000000e+00> : vector<2x32xf32>
    %150 = tpu.matmul %139, %8, %cst_104 {dimension_numbers = #tpu.dot_dimension_numbers<[1], [0], [0], [1], [0, 0, 1, 1], [], []>} : vector<2x32xbf16>, vector<32x32xbf16>, vector<2x32xf32> -> vector<2x32xf32>
    %151 = arith.addf %149, %150 : vector<2x32xf32>
    %c3_105 = arith.constant 3 : index
    %c3_106 = arith.constant 3 : index
    %c0_107 = arith.constant 0 : index
    %c0_108 = arith.constant 0 : index
    %152 = vector.load %arg1[%c3_105, %c3_106, %c0_107, %c0_108] : memref<4x8x2x32xf32, #tpu.memory_space<vmem>>, vector<1x1x2x32xf32>
    %153 = vector.shape_cast %152 : vector<1x1x2x32xf32> to vector<2x32xf32>
    %cst_109 = arith.constant dense<0.000000e+00> : vector<2x32xf32>
    %154 = tpu.matmul %139, %10, %cst_109 {dimension_numbers = #tpu.dot_dimension_numbers<[1], [0], [0], [1], [0, 0, 1, 1], [], []>} : vector<2x32xbf16>, vector<32x32xbf16>, vector<2x32xf32> -> vector<2x32xf32>
    %155 = arith.addf %153, %154 : vector<2x32xf32>
    %156 = arith.negf %143 : vector<2x32xf32>
    %157 = math.exp %156 : vector<2x32xf32>
    %cst_110 = arith.constant 1.000000e+00 : f32
    %158 = vector.broadcast %cst_110 : f32 to vector<2x32xf32>
    %159 = arith.addf %158, %157 : vector<2x32xf32>
    %160 = arith.divf %158, %159 : vector<2x32xf32>
    %161 = arith.negf %147 : vector<2x32xf32>
    %162 = math.exp %161 : vector<2x32xf32>
    %cst_111 = arith.constant 1.000000e+00 : f32
    %163 = vector.broadcast %cst_111 : f32 to vector<2x32xf32>
    %164 = arith.addf %163, %162 : vector<2x32xf32>
    %165 = arith.divf %163, %164 : vector<2x32xf32>
    %166 = math.tanh %151 : vector<2x32xf32>
    %167 = arith.negf %155 : vector<2x32xf32>
    %168 = math.exp %167 : vector<2x32xf32>
    %cst_112 = arith.constant 1.000000e+00 : f32
    %169 = vector.broadcast %cst_112 : f32 to vector<2x32xf32>
    %170 = arith.addf %169, %168 : vector<2x32xf32>
    %171 = arith.divf %169, %170 : vector<2x32xf32>
    %172 = arith.mulf %165, %132 : vector<2x32xf32>
    %173 = arith.mulf %160, %166 : vector<2x32xf32>
    %174 = arith.addf %172, %173 : vector<2x32xf32>
    %175 = math.tanh %174 : vector<2x32xf32>
    %176 = arith.mulf %171, %175 : vector<2x32xf32>
    %177 = arith.truncf %176 : vector<2x32xf32> to vector<2x32xbf16>
    %c3_113 = arith.constant 3 : index
    %c0_114 = arith.constant 0 : index
    %c0_115 = arith.constant 0 : index
    %178 = vector.load %arg3[%c3_113, %c0_114, %c0_115] : memref<8x2x32xbf16, #tpu.memory_space<vmem>>, vector<1x2x32xbf16>
    %179 = vector.shape_cast %178 : vector<1x2x32xbf16> to vector<2x32xbf16>
    %180 = vector.shape_cast %177 : vector<2x32xbf16> to vector<1x2x32xbf16>
    tpu.vector_store %arg3[%c3_113, %c0_114, %c0_115], %180 {strides = array<i32>} : memref<8x2x32xbf16, #tpu.memory_space<vmem>>, vector<1x2x32xbf16>,
    %181 = arith.truncf %176 : vector<2x32xf32> to vector<2x32xbf16>
    %c0_116 = arith.constant 0 : index
    %c4 = arith.constant 4 : index
    %c0_117 = arith.constant 0 : index
    %c0_118 = arith.constant 0 : index
    %182 = vector.load %arg1[%c0_116, %c4, %c0_117, %c0_118] : memref<4x8x2x32xf32, #tpu.memory_space<vmem>>, vector<1x1x2x32xf32>
    %183 = vector.shape_cast %182 : vector<1x1x2x32xf32> to vector<2x32xf32>
    %cst_119 = arith.constant dense<0.000000e+00> : vector<2x32xf32>
    %184 = tpu.matmul %181, %4, %cst_119 {dimension_numbers = #tpu.dot_dimension_numbers<[1], [0], [0], [1], [0, 0, 1, 1], [], []>} : vector<2x32xbf16>, vector<32x32xbf16>, vector<2x32xf32> -> vector<2x32xf32>
    %185 = arith.addf %183, %184 : vector<2x32xf32>
    %c1_120 = arith.constant 1 : index
    %c4_121 = arith.constant 4 : index
    %c0_122 = arith.constant 0 : index
    %c0_123 = arith.constant 0 : index
    %186 = vector.load %arg1[%c1_120, %c4_121, %c0_122, %c0_123] : memref<4x8x2x32xf32, #tpu.memory_space<vmem>>, vector<1x1x2x32xf32>
    %187 = vector.shape_cast %186 : vector<1x1x2x32xf32> to vector<2x32xf32>
    %cst_124 = arith.constant dense<0.000000e+00> : vector<2x32xf32>
    %188 = tpu.matmul %181, %6, %cst_124 {dimension_numbers = #tpu.dot_dimension_numbers<[1], [0], [0], [1], [0, 0, 1, 1], [], []>} : vector<2x32xbf16>, vector<32x32xbf16>, vector<2x32xf32> -> vector<2x32xf32>
    %189 = arith.addf %187, %188 : vector<2x32xf32>
    %c2_125 = arith.constant 2 : index
    %c4_126 = arith.constant 4 : index
    %c0_127 = arith.constant 0 : index
    %c0_128 = arith.constant 0 : index
    %190 = vector.load %arg1[%c2_125, %c4_126, %c0_127, %c0_128] : memref<4x8x2x32xf32, #tpu.memory_space<vmem>>, vector<1x1x2x32xf32>
    %191 = vector.shape_cast %190 : vector<1x1x2x32xf32> to vector<2x32xf32>
    %cst_129 = arith.constant dense<0.000000e+00> : vector<2x32xf32>
    %192 = tpu.matmul %181, %8, %cst_129 {dimension_numbers = #tpu.dot_dimension_numbers<[1], [0], [0], [1], [0, 0, 1, 1], [], []>} : vector<2x32xbf16>, vector<32x32xbf16>, vector<2x32xf32> -> vector<2x32xf32>
    %193 = arith.addf %191, %192 : vector<2x32xf32>
    %c3_130 = arith.constant 3 : index
    %c4_131 = arith.constant 4 : index
    %c0_132 = arith.constant 0 : index
    %c0_133 = arith.constant 0 : index
    %194 = vector.load %arg1[%c3_130, %c4_131, %c0_132, %c0_133] : memref<4x8x2x32xf32, #tpu.memory_space<vmem>>, vector<1x1x2x32xf32>
    %195 = vector.shape_cast %194 : vector<1x1x2x32xf32> to vector<2x32xf32>
    %cst_134 = arith.constant dense<0.000000e+00> : vector<2x32xf32>
    %196 = tpu.matmul %181, %10, %cst_134 {dimension_numbers = #tpu.dot_dimension_numbers<[1], [0], [0], [1], [0, 0, 1, 1], [], []>} : vector<2x32xbf16>, vector<32x32xbf16>, vector<2x32xf32> -> vector<2x32xf32>
    %197 = arith.addf %195, %196 : vector<2x32xf32>
    %198 = arith.negf %185 : vector<2x32xf32>
    %199 = math.exp %198 : vector<2x32xf32>
    %cst_135 = arith.constant 1.000000e+00 : f32
    %200 = vector.broadcast %cst_135 : f32 to vector<2x32xf32>
    %201 = arith.addf %200, %199 : vector<2x32xf32>
    %202 = arith.divf %200, %201 : vector<2x32xf32>
    %203 = arith.negf %189 : vector<2x32xf32>
    %204 = math.exp %203 : vector<2x32xf32>
    %cst_136 = arith.constant 1.000000e+00 : f32
    %205 = vector.broadcast %cst_136 : f32 to vector<2x32xf32>
    %206 = arith.addf %205, %204 : vector<2x32xf32>
    %207 = arith.divf %205, %206 : vector<2x32xf32>
    %208 = math.tanh %193 : vector<2x32xf32>
    %209 = arith.negf %197 : vector<2x32xf32>
    %210 = math.exp %209 : vector<2x32xf32>
    %cst_137 = arith.constant 1.000000e+00 : f32
    %211 = vector.broadcast %cst_137 : f32 to vector<2x32xf32>
    %212 = arith.addf %211, %210 : vector<2x32xf32>
    %213 = arith.divf %211, %212 : vector<2x32xf32>
    %214 = arith.mulf %207, %174 : vector<2x32xf32>
    %215 = arith.mulf %202, %208 : vector<2x32xf32>
    %216 = arith.addf %214, %215 : vector<2x32xf32>
    %217 = math.tanh %216 : vector<2x32xf32>
    %218 = arith.mulf %213, %217 : vector<2x32xf32>
    %219 = arith.truncf %218 : vector<2x32xf32> to vector<2x32xbf16>
    %c4_138 = arith.constant 4 : index
    %c0_139 = arith.constant 0 : index
    %c0_140 = arith.constant 0 : index
    %220 = vector.load %arg3[%c4_138, %c0_139, %c0_140] : memref<8x2x32xbf16, #tpu.memory_space<vmem>>, vector<1x2x32xbf16>
    %221 = vector.shape_cast %220 : vector<1x2x32xbf16> to vector<2x32xbf16>
    %222 = vector.shape_cast %219 : vector<2x32xbf16> to vector<1x2x32xbf16>
    tpu.vector_store %arg3[%c4_138, %c0_139, %c0_140], %222 {strides = array<i32>} : memref<8x2x32xbf16, #tpu.memory_space<vmem>>, vector<1x2x32xbf16>,
    %223 = arith.truncf %218 : vector<2x32xf32> to vector<2x32xbf16>
    %c0_141 = arith.constant 0 : index
    %c5 = arith.constant 5 : index
    %c0_142 = arith.constant 0 : index
    %c0_143 = arith.constant 0 : index
    %224 = vector.load %arg1[%c0_141, %c5, %c0_142, %c0_143] : memref<4x8x2x32xf32, #tpu.memory_space<vmem>>, vector<1x1x2x32xf32>
    %225 = vector.shape_cast %224 : vector<1x1x2x32xf32> to vector<2x32xf32>
    %cst_144 = arith.constant dense<0.000000e+00> : vector<2x32xf32>
    %226 = tpu.matmul %223, %4, %cst_144 {dimension_numbers = #tpu.dot_dimension_numbers<[1], [0], [0], [1], [0, 0, 1, 1], [], []>} : vector<2x32xbf16>, vector<32x32xbf16>, vector<2x32xf32> -> vector<2x32xf32>
    %227 = arith.addf %225, %226 : vector<2x32xf32>
    %c1_145 = arith.constant 1 : index
    %c5_146 = arith.constant 5 : index
    %c0_147 = arith.constant 0 : index
    %c0_148 = arith.constant 0 : index
    %228 = vector.load %arg1[%c1_145, %c5_146, %c0_147, %c0_148] : memref<4x8x2x32xf32, #tpu.memory_space<vmem>>, vector<1x1x2x32xf32>
    %229 = vector.shape_cast %228 : vector<1x1x2x32xf32> to vector<2x32xf32>
    %cst_149 = arith.constant dense<0.000000e+00> : vector<2x32xf32>
    %230 = tpu.matmul %223, %6, %cst_149 {dimension_numbers = #tpu.dot_dimension_numbers<[1], [0], [0], [1], [0, 0, 1, 1], [], []>} : vector<2x32xbf16>, vector<32x32xbf16>, vector<2x32xf32> -> vector<2x32xf32>
    %231 = arith.addf %229, %230 : vector<2x32xf32>
    %c2_150 = arith.constant 2 : index
    %c5_151 = arith.constant 5 : index
    %c0_152 = arith.constant 0 : index
    %c0_153 = arith.constant 0 : index
    %232 = vector.load %arg1[%c2_150, %c5_151, %c0_152, %c0_153] : memref<4x8x2x32xf32, #tpu.memory_space<vmem>>, vector<1x1x2x32xf32>
    %233 = vector.shape_cast %232 : vector<1x1x2x32xf32> to vector<2x32xf32>
    %cst_154 = arith.constant dense<0.000000e+00> : vector<2x32xf32>
    %234 = tpu.matmul %223, %8, %cst_154 {dimension_numbers = #tpu.dot_dimension_numbers<[1], [0], [0], [1], [0, 0, 1, 1], [], []>} : vector<2x32xbf16>, vector<32x32xbf16>, vector<2x32xf32> -> vector<2x32xf32>
    %235 = arith.addf %233, %234 : vector<2x32xf32>
    %c3_155 = arith.constant 3 : index
    %c5_156 = arith.constant 5 : index
    %c0_157 = arith.constant 0 : index
    %c0_158 = arith.constant 0 : index
    %236 = vector.load %arg1[%c3_155, %c5_156, %c0_157, %c0_158] : memref<4x8x2x32xf32, #tpu.memory_space<vmem>>, vector<1x1x2x32xf32>
    %237 = vector.shape_cast %236 : vector<1x1x2x32xf32> to vector<2x32xf32>
    %cst_159 = arith.constant dense<0.000000e+00> : vector<2x32xf32>
    %238 = tpu.matmul %223, %10, %cst_159 {dimension_numbers = #tpu.dot_dimension_numbers<[1], [0], [0], [1], [0, 0, 1, 1], [], []>} : vector<2x32xbf16>, vector<32x32xbf16>, vector<2x32xf32> -> vector<2x32xf32>
    %239 = arith.addf %237, %238 : vector<2x32xf32>
    %240 = arith.negf %227 : vector<2x32xf32>
    %241 = math.exp %240 : vector<2x32xf32>
    %cst_160 = arith.constant 1.000000e+00 : f32
    %242 = vector.broadcast %cst_160 : f32 to vector<2x32xf32>
    %243 = arith.addf %242, %241 : vector<2x32xf32>
    %244 = arith.divf %242, %243 : vector<2x32xf32>
    %245 = arith.negf %231 : vector<2x32xf32>
    %246 = math.exp %245 : vector<2x32xf32>
    %cst_161 = arith.constant 1.000000e+00 : f32
    %247 = vector.broadcast %cst_161 : f32 to vector<2x32xf32>
    %248 = arith.addf %247, %246 : vector<2x32xf32>
    %249 = arith.divf %247, %248 : vector<2x32xf32>
    %250 = math.tanh %235 : vector<2x32xf32>
    %251 = arith.negf %239 : vector<2x32xf32>
    %252 = math.exp %251 : vector<2x32xf32>
    %cst_162 = arith.constant 1.000000e+00 : f32
    %253 = vector.broadcast %cst_162 : f32 to vector<2x32xf32>
    %254 = arith.addf %253, %252 : vector<2x32xf32>
    %255 = arith.divf %253, %254 : vector<2x32xf32>
    %256 = arith.mulf %249, %216 : vector<2x32xf32>
    %257 = arith.mulf %244, %250 : vector<2x32xf32>
    %258 = arith.addf %256, %257 : vector<2x32xf32>
    %259 = math.tanh %258 : vector<2x32xf32>
    %260 = arith.mulf %255, %259 : vector<2x32xf32>
    %261 = arith.truncf %260 : vector<2x32xf32> to vector<2x32xbf16>
    %c5_163 = arith.constant 5 : index
    %c0_164 = arith.constant 0 : index
    %c0_165 = arith.constant 0 : index
    %262 = vector.load %arg3[%c5_163, %c0_164, %c0_165] : memref<8x2x32xbf16, #tpu.memory_space<vmem>>, vector<1x2x32xbf16>
    %263 = vector.shape_cast %262 : vector<1x2x32xbf16> to vector<2x32xbf16>
    %264 = vector.shape_cast %261 : vector<2x32xbf16> to vector<1x2x32xbf16>
    tpu.vector_store %arg3[%c5_163, %c0_164, %c0_165], %264 {strides = array<i32>} : memref<8x2x32xbf16, #tpu.memory_space<vmem>>, vector<1x2x32xbf16>,
    %265 = arith.truncf %260 : vector<2x32xf32> to vector<2x32xbf16>
    %c0_166 = arith.constant 0 : index
    %c6 = arith.constant 6 : index
    %c0_167 = arith.constant 0 : index
    %c0_168 = arith.constant 0 : index
    %266 = vector.load %arg1[%c0_166, %c6, %c0_167, %c0_168] : memref<4x8x2x32xf32, #tpu.memory_space<vmem>>, vector<1x1x2x32xf32>
    %267 = vector.shape_cast %266 : vector<1x1x2x32xf32> to vector<2x32xf32>
    %cst_169 = arith.constant dense<0.000000e+00> : vector<2x32xf32>
    %268 = tpu.matmul %265, %4, %cst_169 {dimension_numbers = #tpu.dot_dimension_numbers<[1], [0], [0], [1], [0, 0, 1, 1], [], []>} : vector<2x32xbf16>, vector<32x32xbf16>, vector<2x32xf32> -> vector<2x32xf32>
    %269 = arith.addf %267, %268 : vector<2x32xf32>
    %c1_170 = arith.constant 1 : index
    %c6_171 = arith.constant 6 : index
    %c0_172 = arith.constant 0 : index
    %c0_173 = arith.constant 0 : index
    %270 = vector.load %arg1[%c1_170, %c6_171, %c0_172, %c0_173] : memref<4x8x2x32xf32, #tpu.memory_space<vmem>>, vector<1x1x2x32xf32>
    %271 = vector.shape_cast %270 : vector<1x1x2x32xf32> to vector<2x32xf32>
    %cst_174 = arith.constant dense<0.000000e+00> : vector<2x32xf32>
    %272 = tpu.matmul %265, %6, %cst_174 {dimension_numbers = #tpu.dot_dimension_numbers<[1], [0], [0], [1], [0, 0, 1, 1], [], []>} : vector<2x32xbf16>, vector<32x32xbf16>, vector<2x32xf32> -> vector<2x32xf32>
    %273 = arith.addf %271, %272 : vector<2x32xf32>
    %c2_175 = arith.constant 2 : index
    %c6_176 = arith.constant 6 : index
    %c0_177 = arith.constant 0 : index
    %c0_178 = arith.constant 0 : index
    %274 = vector.load %arg1[%c2_175, %c6_176, %c0_177, %c0_178] : memref<4x8x2x32xf32, #tpu.memory_space<vmem>>, vector<1x1x2x32xf32>
    %275 = vector.shape_cast %274 : vector<1x1x2x32xf32> to vector<2x32xf32>
    %cst_179 = arith.constant dense<0.000000e+00> : vector<2x32xf32>
    %276 = tpu.matmul %265, %8, %cst_179 {dimension_numbers = #tpu.dot_dimension_numbers<[1], [0], [0], [1], [0, 0, 1, 1], [], []>} : vector<2x32xbf16>, vector<32x32xbf16>, vector<2x32xf32> -> vector<2x32xf32>
    %277 = arith.addf %275, %276 : vector<2x32xf32>
    %c3_180 = arith.constant 3 : index
    %c6_181 = arith.constant 6 : index
    %c0_182 = arith.constant 0 : index
    %c0_183 = arith.constant 0 : index
    %278 = vector.load %arg1[%c3_180, %c6_181, %c0_182, %c0_183] : memref<4x8x2x32xf32, #tpu.memory_space<vmem>>, vector<1x1x2x32xf32>
    %279 = vector.shape_cast %278 : vector<1x1x2x32xf32> to vector<2x32xf32>
    %cst_184 = arith.constant dense<0.000000e+00> : vector<2x32xf32>
    %280 = tpu.matmul %265, %10, %cst_184 {dimension_numbers = #tpu.dot_dimension_numbers<[1], [0], [0], [1], [0, 0, 1, 1], [], []>} : vector<2x32xbf16>, vector<32x32xbf16>, vector<2x32xf32> -> vector<2x32xf32>
    %281 = arith.addf %279, %280 : vector<2x32xf32>
    %282 = arith.negf %269 : vector<2x32xf32>
    %283 = math.exp %282 : vector<2x32xf32>
    %cst_185 = arith.constant 1.000000e+00 : f32
    %284 = vector.broadcast %cst_185 : f32 to vector<2x32xf32>
    %285 = arith.addf %284, %283 : vector<2x32xf32>
    %286 = arith.divf %284, %285 : vector<2x32xf32>
    %287 = arith.negf %273 : vector<2x32xf32>
    %288 = math.exp %287 : vector<2x32xf32>
    %cst_186 = arith.constant 1.000000e+00 : f32
    %289 = vector.broadcast %cst_186 : f32 to vector<2x32xf32>
    %290 = arith.addf %289, %288 : vector<2x32xf32>
    %291 = arith.divf %289, %290 : vector<2x32xf32>
    %292 = math.tanh %277 : vector<2x32xf32>
    %293 = arith.negf %281 : vector<2x32xf32>
    %294 = math.exp %293 : vector<2x32xf32>
    %cst_187 = arith.constant 1.000000e+00 : f32
    %295 = vector.broadcast %cst_187 : f32 to vector<2x32xf32>
    %296 = arith.addf %295, %294 : vector<2x32xf32>
    %297 = arith.divf %295, %296 : vector<2x32xf32>
    %298 = arith.mulf %291, %258 : vector<2x32xf32>
    %299 = arith.mulf %286, %292 : vector<2x32xf32>
    %300 = arith.addf %298, %299 : vector<2x32xf32>
    %301 = math.tanh %300 : vector<2x32xf32>
    %302 = arith.mulf %297, %301 : vector<2x32xf32>
    %303 = arith.truncf %302 : vector<2x32xf32> to vector<2x32xbf16>
    %c6_188 = arith.constant 6 : index
    %c0_189 = arith.constant 0 : index
    %c0_190 = arith.constant 0 : index
    %304 = vector.load %arg3[%c6_188, %c0_189, %c0_190] : memref<8x2x32xbf16, #tpu.memory_space<vmem>>, vector<1x2x32xbf16>
    %305 = vector.shape_cast %304 : vector<1x2x32xbf16> to vector<2x32xbf16>
    %306 = vector.shape_cast %303 : vector<2x32xbf16> to vector<1x2x32xbf16>
    tpu.vector_store %arg3[%c6_188, %c0_189, %c0_190], %306 {strides = array<i32>} : memref<8x2x32xbf16, #tpu.memory_space<vmem>>, vector<1x2x32xbf16>,
    %307 = arith.truncf %302 : vector<2x32xf32> to vector<2x32xbf16>
    %c0_191 = arith.constant 0 : index
    %c7 = arith.constant 7 : index
    %c0_192 = arith.constant 0 : index
    %c0_193 = arith.constant 0 : index
    %308 = vector.load %arg1[%c0_191, %c7, %c0_192, %c0_193] : memref<4x8x2x32xf32, #tpu.memory_space<vmem>>, vector<1x1x2x32xf32>
    %309 = vector.shape_cast %308 : vector<1x1x2x32xf32> to vector<2x32xf32>
    %cst_194 = arith.constant dense<0.000000e+00> : vector<2x32xf32>
    %310 = tpu.matmul %307, %4, %cst_194 {dimension_numbers = #tpu.dot_dimension_numbers<[1], [0], [0], [1], [0, 0, 1, 1], [], []>} : vector<2x32xbf16>, vector<32x32xbf16>, vector<2x32xf32> -> vector<2x32xf32>
    %311 = arith.addf %309, %310 : vector<2x32xf32>
    %c1_195 = arith.constant 1 : index
    %c7_196 = arith.constant 7 : index
    %c0_197 = arith.constant 0 : index
    %c0_198 = arith.constant 0 : index
    %312 = vector.load %arg1[%c1_195, %c7_196, %c0_197, %c0_198] : memref<4x8x2x32xf32, #tpu.memory_space<vmem>>, vector<1x1x2x32xf32>
    %313 = vector.shape_cast %312 : vector<1x1x2x32xf32> to vector<2x32xf32>
    %cst_199 = arith.constant dense<0.000000e+00> : vector<2x32xf32>
    %314 = tpu.matmul %307, %6, %cst_199 {dimension_numbers = #tpu.dot_dimension_numbers<[1], [0], [0], [1], [0, 0, 1, 1], [], []>} : vector<2x32xbf16>, vector<32x32xbf16>, vector<2x32xf32> -> vector<2x32xf32>
    %315 = arith.addf %313, %314 : vector<2x32xf32>
    %c2_200 = arith.constant 2 : index
    %c7_201 = arith.constant 7 : index
    %c0_202 = arith.constant 0 : index
    %c0_203 = arith.constant 0 : index
    %316 = vector.load %arg1[%c2_200, %c7_201, %c0_202, %c0_203] : memref<4x8x2x32xf32, #tpu.memory_space<vmem>>, vector<1x1x2x32xf32>
    %317 = vector.shape_cast %316 : vector<1x1x2x32xf32> to vector<2x32xf32>
    %cst_204 = arith.constant dense<0.000000e+00> : vector<2x32xf32>
    %318 = tpu.matmul %307, %8, %cst_204 {dimension_numbers = #tpu.dot_dimension_numbers<[1], [0], [0], [1], [0, 0, 1, 1], [], []>} : vector<2x32xbf16>, vector<32x32xbf16>, vector<2x32xf32> -> vector<2x32xf32>
    %319 = arith.addf %317, %318 : vector<2x32xf32>
    %c3_205 = arith.constant 3 : index
    %c7_206 = arith.constant 7 : index
    %c0_207 = arith.constant 0 : index
    %c0_208 = arith.constant 0 : index
    %320 = vector.load %arg1[%c3_205, %c7_206, %c0_207, %c0_208] : memref<4x8x2x32xf32, #tpu.memory_space<vmem>>, vector<1x1x2x32xf32>
    %321 = vector.shape_cast %320 : vector<1x1x2x32xf32> to vector<2x32xf32>
    %cst_209 = arith.constant dense<0.000000e+00> : vector<2x32xf32>
    %322 = tpu.matmul %307, %10, %cst_209 {dimension_numbers = #tpu.dot_dimension_numbers<[1], [0], [0], [1], [0, 0, 1, 1], [], []>} : vector<2x32xbf16>, vector<32x32xbf16>, vector<2x32xf32> -> vector<2x32xf32>
    %323 = arith.addf %321, %322 : vector<2x32xf32>
    %324 = arith.negf %311 : vector<2x32xf32>
    %325 = math.exp %324 : vector<2x32xf32>
    %cst_210 = arith.constant 1.000000e+00 : f32
    %326 = vector.broadcast %cst_210 : f32 to vector<2x32xf32>
    %327 = arith.addf %326, %325 : vector<2x32xf32>
    %328 = arith.divf %326, %327 : vector<2x32xf32>
    %329 = arith.negf %315 : vector<2x32xf32>
    %330 = math.exp %329 : vector<2x32xf32>
    %cst_211 = arith.constant 1.000000e+00 : f32
    %331 = vector.broadcast %cst_211 : f32 to vector<2x32xf32>
    %332 = arith.addf %331, %330 : vector<2x32xf32>
    %333 = arith.divf %331, %332 : vector<2x32xf32>
    %334 = math.tanh %319 : vector<2x32xf32>
    %335 = arith.negf %323 : vector<2x32xf32>
    %336 = math.exp %335 : vector<2x32xf32>
    %cst_212 = arith.constant 1.000000e+00 : f32
    %337 = vector.broadcast %cst_212 : f32 to vector<2x32xf32>
    %338 = arith.addf %337, %336 : vector<2x32xf32>
    %339 = arith.divf %337, %338 : vector<2x32xf32>
    %340 = arith.mulf %333, %300 : vector<2x32xf32>
    %341 = arith.mulf %328, %334 : vector<2x32xf32>
    %342 = arith.addf %340, %341 : vector<2x32xf32>
    %343 = math.tanh %342 : vector<2x32xf32>
    %344 = arith.mulf %339, %343 : vector<2x32xf32>
    %345 = arith.truncf %344 : vector<2x32xf32> to vector<2x32xbf16>
    %c7_213 = arith.constant 7 : index
    %c0_214 = arith.constant 0 : index
    %c0_215 = arith.constant 0 : index
    %346 = vector.load %arg3[%c7_213, %c0_214, %c0_215] : memref<8x2x32xbf16, #tpu.memory_space<vmem>>, vector<1x2x32xbf16>
    %347 = vector.shape_cast %346 : vector<1x2x32xbf16> to vector<2x32xbf16>
    %348 = vector.shape_cast %345 : vector<2x32xbf16> to vector<1x2x32xbf16>
    tpu.vector_store %arg3[%c7_213, %c0_214, %c0_215], %348 {strides = array<i32>} : memref<8x2x32xbf16, #tpu.memory_space<vmem>>, vector<1x2x32xbf16>,
    %c0_216 = arith.constant 0 : index
    %c0_217 = arith.constant 0 : index
    %349 = vector.load %arg4[%c0_216, %c0_217] : memref<2x32xf32, #tpu.memory_space<vmem>>, vector<2x32xf32>
    tpu.vector_store %arg4[%c0_216, %c0_217], %344 {strides = array<i32>} : memref<2x32xf32, #tpu.memory_space<vmem>>, vector<2x32xf32>,
    %c0_218 = arith.constant 0 : index
    %c0_219 = arith.constant 0 : index
    %350 = vector.load %arg5[%c0_218, %c0_219] : memref<2x32xf32, #tpu.memory_space<vmem>>, vector<2x32xf32>
    tpu.vector_store %arg5[%c0_218, %c0_219], %342 {strides = array<i32>} : memref<2x32xf32, #tpu.memory_space<vmem>>, vector<2x32xf32>,
    return
  }
  func.func @transform_0(%arg0: i32) -> (i32, i32, i32, i32) {
    %c0_i32 = arith.constant 0 : i32
    %c0_i32_0 = arith.constant 0 : i32
    %c0_i32_1 = arith.constant 0 : i32
    %c0_i32_2 = arith.constant 0 : i32
    return %c0_i32, %arg0, %c0_i32_0, %c0_i32_1 : i32, i32, i32, i32
  }
  func.func @transform_1(%arg0: i32) -> (i32, i32, i32) {
    %c0_i32 = arith.constant 0 : i32
    %c0_i32_0 = arith.constant 0 : i32
    %c0_i32_1 = arith.constant 0 : i32
    %c0_i32_2 = arith.constant 0 : i32
    return %c0_i32, %c0_i32_0, %c0_i32_1 : i32, i32, i32
  }
  func.func @transform_2(%arg0: i32) -> (i32, i32, i32) {
    %c0_i32 = arith.constant 0 : i32
    %c0_i32_0 = arith.constant 0 : i32
    %c0_i32_1 = arith.constant 0 : i32
    return %arg0, %c0_i32, %c0_i32_0 : i32, i32, i32
  }
}

module attributes {stable_mosaic.version = 11 : i64} {
  func.func @_lstm_recurrent_kernel(%arg0: i32, %arg1: memref<4x8x2x32xf32, #tpu.memory_space<vmem>>, %arg2: memref<4x32x32xbf16, #tpu.memory_space<vmem>>, %arg3: memref<2x32xf32, #tpu.memory_space<vmem>>, %arg4: memref<2x32xf32, #tpu.memory_space<vmem>>, %arg5: memref<2x32xf32, #tpu.memory_space<vmem>>) attributes {dimension_semantics = [#tpu.dimension_semantics<arbitrary>], iteration_bounds = array<i64: 1>, scalar_prefetch = 0 : i64, scratch_operands = 2 : i64, tpu.core_type = #tpu.core_type<tc>, window_params = [{transform_indices = @transform_0, window_bounds = array<i64: 4, 8, 2, 32>}, {pipeline_mode = #tpu.pipeline_mode<synchronous>, transform_indices = @transform_1, window_bounds = array<i64: 4, 32, 32>}, {pipeline_mode = #tpu.pipeline_mode<synchronous>, transform_indices = @transform_2, window_bounds = array<i64: 2, 32>}]} {
    %c0_i32 = arith.constant 0 : i32
    %0 = arith.cmpi eq, %arg0, %c0_i32 : i32
    %1 = arith.extui %0 : i1 to i32
    %c0_i32_0 = arith.constant 0 : i32
    %2 = arith.cmpi ne, %1, %c0_i32_0 : i32
    scf.if %2 {
      %cst_198 = arith.constant 0.000000e+00 : f32
      %320 = vector.broadcast %cst_198 : f32 to vector<2x32xf32>
      %c0_199 = arith.constant 0 : index
      %c0_200 = arith.constant 0 : index
      %321 = vector.load %arg4[%c0_199, %c0_200] : memref<2x32xf32, #tpu.memory_space<vmem>>, vector<2x32xf32>
      tpu.vector_store %arg4[%c0_199, %c0_200], %320 {strides = array<i32>} : memref<2x32xf32, #tpu.memory_space<vmem>>, vector<2x32xf32>,
      %cst_201 = arith.constant 0.000000e+00 : f32
      %322 = vector.broadcast %cst_201 : f32 to vector<2x32xf32>
      %c0_202 = arith.constant 0 : index
      %c0_203 = arith.constant 0 : index
      %323 = vector.load %arg5[%c0_202, %c0_203] : memref<2x32xf32, #tpu.memory_space<vmem>>, vector<2x32xf32>
      tpu.vector_store %arg5[%c0_202, %c0_203], %322 {strides = array<i32>} : memref<2x32xf32, #tpu.memory_space<vmem>>, vector<2x32xf32>,
    } else {
    }
    %c0 = arith.constant 0 : index
    %c0_1 = arith.constant 0 : index
    %c0_2 = arith.constant 0 : index
    %3 = vector.load %arg2[%c0, %c0_1, %c0_2] : memref<4x32x32xbf16, #tpu.memory_space<vmem>>, vector<1x32x32xbf16>
    %4 = vector.shape_cast %3 : vector<1x32x32xbf16> to vector<32x32xbf16>
    %c1 = arith.constant 1 : index
    %c0_3 = arith.constant 0 : index
    %c0_4 = arith.constant 0 : index
    %5 = vector.load %arg2[%c1, %c0_3, %c0_4] : memref<4x32x32xbf16, #tpu.memory_space<vmem>>, vector<1x32x32xbf16>
    %6 = vector.shape_cast %5 : vector<1x32x32xbf16> to vector<32x32xbf16>
    %c2 = arith.constant 2 : index
    %c0_5 = arith.constant 0 : index
    %c0_6 = arith.constant 0 : index
    %7 = vector.load %arg2[%c2, %c0_5, %c0_6] : memref<4x32x32xbf16, #tpu.memory_space<vmem>>, vector<1x32x32xbf16>
    %8 = vector.shape_cast %7 : vector<1x32x32xbf16> to vector<32x32xbf16>
    %c3 = arith.constant 3 : index
    %c0_7 = arith.constant 0 : index
    %c0_8 = arith.constant 0 : index
    %9 = vector.load %arg2[%c3, %c0_7, %c0_8] : memref<4x32x32xbf16, #tpu.memory_space<vmem>>, vector<1x32x32xbf16>
    %10 = vector.shape_cast %9 : vector<1x32x32xbf16> to vector<32x32xbf16>
    %c0_9 = arith.constant 0 : index
    %c0_10 = arith.constant 0 : index
    %11 = vector.load %arg4[%c0_9, %c0_10] : memref<2x32xf32, #tpu.memory_space<vmem>>, vector<2x32xf32>
    %c0_11 = arith.constant 0 : index
    %c0_12 = arith.constant 0 : index
    %12 = vector.load %arg5[%c0_11, %c0_12] : memref<2x32xf32, #tpu.memory_space<vmem>>, vector<2x32xf32>
    %13 = arith.truncf %11 : vector<2x32xf32> to vector<2x32xbf16>
    %c0_13 = arith.constant 0 : index
    %c0_14 = arith.constant 0 : index
    %c0_15 = arith.constant 0 : index
    %c0_16 = arith.constant 0 : index
    %14 = vector.load %arg1[%c0_13, %c0_14, %c0_15, %c0_16] : memref<4x8x2x32xf32, #tpu.memory_space<vmem>>, vector<1x1x2x32xf32>
    %15 = vector.shape_cast %14 : vector<1x1x2x32xf32> to vector<2x32xf32>
    %cst = arith.constant dense<0.000000e+00> : vector<2x32xf32>
    %16 = tpu.matmul %13, %4, %cst {dimension_numbers = #tpu.dot_dimension_numbers<[1], [0], [0], [1], [0, 0, 1, 1], [], []>} : vector<2x32xbf16>, vector<32x32xbf16>, vector<2x32xf32> -> vector<2x32xf32>
    %17 = arith.addf %15, %16 : vector<2x32xf32>
    %c1_17 = arith.constant 1 : index
    %c0_18 = arith.constant 0 : index
    %c0_19 = arith.constant 0 : index
    %c0_20 = arith.constant 0 : index
    %18 = vector.load %arg1[%c1_17, %c0_18, %c0_19, %c0_20] : memref<4x8x2x32xf32, #tpu.memory_space<vmem>>, vector<1x1x2x32xf32>
    %19 = vector.shape_cast %18 : vector<1x1x2x32xf32> to vector<2x32xf32>
    %cst_21 = arith.constant dense<0.000000e+00> : vector<2x32xf32>
    %20 = tpu.matmul %13, %6, %cst_21 {dimension_numbers = #tpu.dot_dimension_numbers<[1], [0], [0], [1], [0, 0, 1, 1], [], []>} : vector<2x32xbf16>, vector<32x32xbf16>, vector<2x32xf32> -> vector<2x32xf32>
    %21 = arith.addf %19, %20 : vector<2x32xf32>
    %c2_22 = arith.constant 2 : index
    %c0_23 = arith.constant 0 : index
    %c0_24 = arith.constant 0 : index
    %c0_25 = arith.constant 0 : index
    %22 = vector.load %arg1[%c2_22, %c0_23, %c0_24, %c0_25] : memref<4x8x2x32xf32, #tpu.memory_space<vmem>>, vector<1x1x2x32xf32>
    %23 = vector.shape_cast %22 : vector<1x1x2x32xf32> to vector<2x32xf32>
    %cst_26 = arith.constant dense<0.000000e+00> : vector<2x32xf32>
    %24 = tpu.matmul %13, %8, %cst_26 {dimension_numbers = #tpu.dot_dimension_numbers<[1], [0], [0], [1], [0, 0, 1, 1], [], []>} : vector<2x32xbf16>, vector<32x32xbf16>, vector<2x32xf32> -> vector<2x32xf32>
    %25 = arith.addf %23, %24 : vector<2x32xf32>
    %c3_27 = arith.constant 3 : index
    %c0_28 = arith.constant 0 : index
    %c0_29 = arith.constant 0 : index
    %c0_30 = arith.constant 0 : index
    %26 = vector.load %arg1[%c3_27, %c0_28, %c0_29, %c0_30] : memref<4x8x2x32xf32, #tpu.memory_space<vmem>>, vector<1x1x2x32xf32>
    %27 = vector.shape_cast %26 : vector<1x1x2x32xf32> to vector<2x32xf32>
    %cst_31 = arith.constant dense<0.000000e+00> : vector<2x32xf32>
    %28 = tpu.matmul %13, %10, %cst_31 {dimension_numbers = #tpu.dot_dimension_numbers<[1], [0], [0], [1], [0, 0, 1, 1], [], []>} : vector<2x32xbf16>, vector<32x32xbf16>, vector<2x32xf32> -> vector<2x32xf32>
    %29 = arith.addf %27, %28 : vector<2x32xf32>
    %30 = arith.negf %17 : vector<2x32xf32>
    %31 = math.exp %30 : vector<2x32xf32>
    %cst_32 = arith.constant 1.000000e+00 : f32
    %32 = vector.broadcast %cst_32 : f32 to vector<2x32xf32>
    %33 = arith.addf %32, %31 : vector<2x32xf32>
    %34 = arith.divf %32, %33 : vector<2x32xf32>
    %35 = arith.negf %21 : vector<2x32xf32>
    %36 = math.exp %35 : vector<2x32xf32>
    %cst_33 = arith.constant 1.000000e+00 : f32
    %37 = vector.broadcast %cst_33 : f32 to vector<2x32xf32>
    %38 = arith.addf %37, %36 : vector<2x32xf32>
    %39 = arith.divf %37, %38 : vector<2x32xf32>
    %40 = math.tanh %25 : vector<2x32xf32>
    %41 = arith.negf %29 : vector<2x32xf32>
    %42 = math.exp %41 : vector<2x32xf32>
    %cst_34 = arith.constant 1.000000e+00 : f32
    %43 = vector.broadcast %cst_34 : f32 to vector<2x32xf32>
    %44 = arith.addf %43, %42 : vector<2x32xf32>
    %45 = arith.divf %43, %44 : vector<2x32xf32>
    %46 = arith.mulf %39, %12 : vector<2x32xf32>
    %47 = arith.mulf %34, %40 : vector<2x32xf32>
    %48 = arith.addf %46, %47 : vector<2x32xf32>
    %49 = math.tanh %48 : vector<2x32xf32>
    %50 = arith.mulf %45, %49 : vector<2x32xf32>
    %51 = arith.truncf %50 : vector<2x32xf32> to vector<2x32xbf16>
    %c0_35 = arith.constant 0 : index
    %c1_36 = arith.constant 1 : index
    %c0_37 = arith.constant 0 : index
    %c0_38 = arith.constant 0 : index
    %52 = vector.load %arg1[%c0_35, %c1_36, %c0_37, %c0_38] : memref<4x8x2x32xf32, #tpu.memory_space<vmem>>, vector<1x1x2x32xf32>
    %53 = vector.shape_cast %52 : vector<1x1x2x32xf32> to vector<2x32xf32>
    %cst_39 = arith.constant dense<0.000000e+00> : vector<2x32xf32>
    %54 = tpu.matmul %51, %4, %cst_39 {dimension_numbers = #tpu.dot_dimension_numbers<[1], [0], [0], [1], [0, 0, 1, 1], [], []>} : vector<2x32xbf16>, vector<32x32xbf16>, vector<2x32xf32> -> vector<2x32xf32>
    %55 = arith.addf %53, %54 : vector<2x32xf32>
    %c1_40 = arith.constant 1 : index
    %c1_41 = arith.constant 1 : index
    %c0_42 = arith.constant 0 : index
    %c0_43 = arith.constant 0 : index
    %56 = vector.load %arg1[%c1_40, %c1_41, %c0_42, %c0_43] : memref<4x8x2x32xf32, #tpu.memory_space<vmem>>, vector<1x1x2x32xf32>
    %57 = vector.shape_cast %56 : vector<1x1x2x32xf32> to vector<2x32xf32>
    %cst_44 = arith.constant dense<0.000000e+00> : vector<2x32xf32>
    %58 = tpu.matmul %51, %6, %cst_44 {dimension_numbers = #tpu.dot_dimension_numbers<[1], [0], [0], [1], [0, 0, 1, 1], [], []>} : vector<2x32xbf16>, vector<32x32xbf16>, vector<2x32xf32> -> vector<2x32xf32>
    %59 = arith.addf %57, %58 : vector<2x32xf32>
    %c2_45 = arith.constant 2 : index
    %c1_46 = arith.constant 1 : index
    %c0_47 = arith.constant 0 : index
    %c0_48 = arith.constant 0 : index
    %60 = vector.load %arg1[%c2_45, %c1_46, %c0_47, %c0_48] : memref<4x8x2x32xf32, #tpu.memory_space<vmem>>, vector<1x1x2x32xf32>
    %61 = vector.shape_cast %60 : vector<1x1x2x32xf32> to vector<2x32xf32>
    %cst_49 = arith.constant dense<0.000000e+00> : vector<2x32xf32>
    %62 = tpu.matmul %51, %8, %cst_49 {dimension_numbers = #tpu.dot_dimension_numbers<[1], [0], [0], [1], [0, 0, 1, 1], [], []>} : vector<2x32xbf16>, vector<32x32xbf16>, vector<2x32xf32> -> vector<2x32xf32>
    %63 = arith.addf %61, %62 : vector<2x32xf32>
    %c3_50 = arith.constant 3 : index
    %c1_51 = arith.constant 1 : index
    %c0_52 = arith.constant 0 : index
    %c0_53 = arith.constant 0 : index
    %64 = vector.load %arg1[%c3_50, %c1_51, %c0_52, %c0_53] : memref<4x8x2x32xf32, #tpu.memory_space<vmem>>, vector<1x1x2x32xf32>
    %65 = vector.shape_cast %64 : vector<1x1x2x32xf32> to vector<2x32xf32>
    %cst_54 = arith.constant dense<0.000000e+00> : vector<2x32xf32>
    %66 = tpu.matmul %51, %10, %cst_54 {dimension_numbers = #tpu.dot_dimension_numbers<[1], [0], [0], [1], [0, 0, 1, 1], [], []>} : vector<2x32xbf16>, vector<32x32xbf16>, vector<2x32xf32> -> vector<2x32xf32>
    %67 = arith.addf %65, %66 : vector<2x32xf32>
    %68 = arith.negf %55 : vector<2x32xf32>
    %69 = math.exp %68 : vector<2x32xf32>
    %cst_55 = arith.constant 1.000000e+00 : f32
    %70 = vector.broadcast %cst_55 : f32 to vector<2x32xf32>
    %71 = arith.addf %70, %69 : vector<2x32xf32>
    %72 = arith.divf %70, %71 : vector<2x32xf32>
    %73 = arith.negf %59 : vector<2x32xf32>
    %74 = math.exp %73 : vector<2x32xf32>
    %cst_56 = arith.constant 1.000000e+00 : f32
    %75 = vector.broadcast %cst_56 : f32 to vector<2x32xf32>
    %76 = arith.addf %75, %74 : vector<2x32xf32>
    %77 = arith.divf %75, %76 : vector<2x32xf32>
    %78 = math.tanh %63 : vector<2x32xf32>
    %79 = arith.negf %67 : vector<2x32xf32>
    %80 = math.exp %79 : vector<2x32xf32>
    %cst_57 = arith.constant 1.000000e+00 : f32
    %81 = vector.broadcast %cst_57 : f32 to vector<2x32xf32>
    %82 = arith.addf %81, %80 : vector<2x32xf32>
    %83 = arith.divf %81, %82 : vector<2x32xf32>
    %84 = arith.mulf %77, %48 : vector<2x32xf32>
    %85 = arith.mulf %72, %78 : vector<2x32xf32>
    %86 = arith.addf %84, %85 : vector<2x32xf32>
    %87 = math.tanh %86 : vector<2x32xf32>
    %88 = arith.mulf %83, %87 : vector<2x32xf32>
    %89 = arith.truncf %88 : vector<2x32xf32> to vector<2x32xbf16>
    %c0_58 = arith.constant 0 : index
    %c2_59 = arith.constant 2 : index
    %c0_60 = arith.constant 0 : index
    %c0_61 = arith.constant 0 : index
    %90 = vector.load %arg1[%c0_58, %c2_59, %c0_60, %c0_61] : memref<4x8x2x32xf32, #tpu.memory_space<vmem>>, vector<1x1x2x32xf32>
    %91 = vector.shape_cast %90 : vector<1x1x2x32xf32> to vector<2x32xf32>
    %cst_62 = arith.constant dense<0.000000e+00> : vector<2x32xf32>
    %92 = tpu.matmul %89, %4, %cst_62 {dimension_numbers = #tpu.dot_dimension_numbers<[1], [0], [0], [1], [0, 0, 1, 1], [], []>} : vector<2x32xbf16>, vector<32x32xbf16>, vector<2x32xf32> -> vector<2x32xf32>
    %93 = arith.addf %91, %92 : vector<2x32xf32>
    %c1_63 = arith.constant 1 : index
    %c2_64 = arith.constant 2 : index
    %c0_65 = arith.constant 0 : index
    %c0_66 = arith.constant 0 : index
    %94 = vector.load %arg1[%c1_63, %c2_64, %c0_65, %c0_66] : memref<4x8x2x32xf32, #tpu.memory_space<vmem>>, vector<1x1x2x32xf32>
    %95 = vector.shape_cast %94 : vector<1x1x2x32xf32> to vector<2x32xf32>
    %cst_67 = arith.constant dense<0.000000e+00> : vector<2x32xf32>
    %96 = tpu.matmul %89, %6, %cst_67 {dimension_numbers = #tpu.dot_dimension_numbers<[1], [0], [0], [1], [0, 0, 1, 1], [], []>} : vector<2x32xbf16>, vector<32x32xbf16>, vector<2x32xf32> -> vector<2x32xf32>
    %97 = arith.addf %95, %96 : vector<2x32xf32>
    %c2_68 = arith.constant 2 : index
    %c2_69 = arith.constant 2 : index
    %c0_70 = arith.constant 0 : index
    %c0_71 = arith.constant 0 : index
    %98 = vector.load %arg1[%c2_68, %c2_69, %c0_70, %c0_71] : memref<4x8x2x32xf32, #tpu.memory_space<vmem>>, vector<1x1x2x32xf32>
    %99 = vector.shape_cast %98 : vector<1x1x2x32xf32> to vector<2x32xf32>
    %cst_72 = arith.constant dense<0.000000e+00> : vector<2x32xf32>
    %100 = tpu.matmul %89, %8, %cst_72 {dimension_numbers = #tpu.dot_dimension_numbers<[1], [0], [0], [1], [0, 0, 1, 1], [], []>} : vector<2x32xbf16>, vector<32x32xbf16>, vector<2x32xf32> -> vector<2x32xf32>
    %101 = arith.addf %99, %100 : vector<2x32xf32>
    %c3_73 = arith.constant 3 : index
    %c2_74 = arith.constant 2 : index
    %c0_75 = arith.constant 0 : index
    %c0_76 = arith.constant 0 : index
    %102 = vector.load %arg1[%c3_73, %c2_74, %c0_75, %c0_76] : memref<4x8x2x32xf32, #tpu.memory_space<vmem>>, vector<1x1x2x32xf32>
    %103 = vector.shape_cast %102 : vector<1x1x2x32xf32> to vector<2x32xf32>
    %cst_77 = arith.constant dense<0.000000e+00> : vector<2x32xf32>
    %104 = tpu.matmul %89, %10, %cst_77 {dimension_numbers = #tpu.dot_dimension_numbers<[1], [0], [0], [1], [0, 0, 1, 1], [], []>} : vector<2x32xbf16>, vector<32x32xbf16>, vector<2x32xf32> -> vector<2x32xf32>
    %105 = arith.addf %103, %104 : vector<2x32xf32>
    %106 = arith.negf %93 : vector<2x32xf32>
    %107 = math.exp %106 : vector<2x32xf32>
    %cst_78 = arith.constant 1.000000e+00 : f32
    %108 = vector.broadcast %cst_78 : f32 to vector<2x32xf32>
    %109 = arith.addf %108, %107 : vector<2x32xf32>
    %110 = arith.divf %108, %109 : vector<2x32xf32>
    %111 = arith.negf %97 : vector<2x32xf32>
    %112 = math.exp %111 : vector<2x32xf32>
    %cst_79 = arith.constant 1.000000e+00 : f32
    %113 = vector.broadcast %cst_79 : f32 to vector<2x32xf32>
    %114 = arith.addf %113, %112 : vector<2x32xf32>
    %115 = arith.divf %113, %114 : vector<2x32xf32>
    %116 = math.tanh %101 : vector<2x32xf32>
    %117 = arith.negf %105 : vector<2x32xf32>
    %118 = math.exp %117 : vector<2x32xf32>
    %cst_80 = arith.constant 1.000000e+00 : f32
    %119 = vector.broadcast %cst_80 : f32 to vector<2x32xf32>
    %120 = arith.addf %119, %118 : vector<2x32xf32>
    %121 = arith.divf %119, %120 : vector<2x32xf32>
    %122 = arith.mulf %115, %86 : vector<2x32xf32>
    %123 = arith.mulf %110, %116 : vector<2x32xf32>
    %124 = arith.addf %122, %123 : vector<2x32xf32>
    %125 = math.tanh %124 : vector<2x32xf32>
    %126 = arith.mulf %121, %125 : vector<2x32xf32>
    %127 = arith.truncf %126 : vector<2x32xf32> to vector<2x32xbf16>
    %c0_81 = arith.constant 0 : index
    %c3_82 = arith.constant 3 : index
    %c0_83 = arith.constant 0 : index
    %c0_84 = arith.constant 0 : index
    %128 = vector.load %arg1[%c0_81, %c3_82, %c0_83, %c0_84] : memref<4x8x2x32xf32, #tpu.memory_space<vmem>>, vector<1x1x2x32xf32>
    %129 = vector.shape_cast %128 : vector<1x1x2x32xf32> to vector<2x32xf32>
    %cst_85 = arith.constant dense<0.000000e+00> : vector<2x32xf32>
    %130 = tpu.matmul %127, %4, %cst_85 {dimension_numbers = #tpu.dot_dimension_numbers<[1], [0], [0], [1], [0, 0, 1, 1], [], []>} : vector<2x32xbf16>, vector<32x32xbf16>, vector<2x32xf32> -> vector<2x32xf32>
    %131 = arith.addf %129, %130 : vector<2x32xf32>
    %c1_86 = arith.constant 1 : index
    %c3_87 = arith.constant 3 : index
    %c0_88 = arith.constant 0 : index
    %c0_89 = arith.constant 0 : index
    %132 = vector.load %arg1[%c1_86, %c3_87, %c0_88, %c0_89] : memref<4x8x2x32xf32, #tpu.memory_space<vmem>>, vector<1x1x2x32xf32>
    %133 = vector.shape_cast %132 : vector<1x1x2x32xf32> to vector<2x32xf32>
    %cst_90 = arith.constant dense<0.000000e+00> : vector<2x32xf32>
    %134 = tpu.matmul %127, %6, %cst_90 {dimension_numbers = #tpu.dot_dimension_numbers<[1], [0], [0], [1], [0, 0, 1, 1], [], []>} : vector<2x32xbf16>, vector<32x32xbf16>, vector<2x32xf32> -> vector<2x32xf32>
    %135 = arith.addf %133, %134 : vector<2x32xf32>
    %c2_91 = arith.constant 2 : index
    %c3_92 = arith.constant 3 : index
    %c0_93 = arith.constant 0 : index
    %c0_94 = arith.constant 0 : index
    %136 = vector.load %arg1[%c2_91, %c3_92, %c0_93, %c0_94] : memref<4x8x2x32xf32, #tpu.memory_space<vmem>>, vector<1x1x2x32xf32>
    %137 = vector.shape_cast %136 : vector<1x1x2x32xf32> to vector<2x32xf32>
    %cst_95 = arith.constant dense<0.000000e+00> : vector<2x32xf32>
    %138 = tpu.matmul %127, %8, %cst_95 {dimension_numbers = #tpu.dot_dimension_numbers<[1], [0], [0], [1], [0, 0, 1, 1], [], []>} : vector<2x32xbf16>, vector<32x32xbf16>, vector<2x32xf32> -> vector<2x32xf32>
    %139 = arith.addf %137, %138 : vector<2x32xf32>
    %c3_96 = arith.constant 3 : index
    %c3_97 = arith.constant 3 : index
    %c0_98 = arith.constant 0 : index
    %c0_99 = arith.constant 0 : index
    %140 = vector.load %arg1[%c3_96, %c3_97, %c0_98, %c0_99] : memref<4x8x2x32xf32, #tpu.memory_space<vmem>>, vector<1x1x2x32xf32>
    %141 = vector.shape_cast %140 : vector<1x1x2x32xf32> to vector<2x32xf32>
    %cst_100 = arith.constant dense<0.000000e+00> : vector<2x32xf32>
    %142 = tpu.matmul %127, %10, %cst_100 {dimension_numbers = #tpu.dot_dimension_numbers<[1], [0], [0], [1], [0, 0, 1, 1], [], []>} : vector<2x32xbf16>, vector<32x32xbf16>, vector<2x32xf32> -> vector<2x32xf32>
    %143 = arith.addf %141, %142 : vector<2x32xf32>
    %144 = arith.negf %131 : vector<2x32xf32>
    %145 = math.exp %144 : vector<2x32xf32>
    %cst_101 = arith.constant 1.000000e+00 : f32
    %146 = vector.broadcast %cst_101 : f32 to vector<2x32xf32>
    %147 = arith.addf %146, %145 : vector<2x32xf32>
    %148 = arith.divf %146, %147 : vector<2x32xf32>
    %149 = arith.negf %135 : vector<2x32xf32>
    %150 = math.exp %149 : vector<2x32xf32>
    %cst_102 = arith.constant 1.000000e+00 : f32
    %151 = vector.broadcast %cst_102 : f32 to vector<2x32xf32>
    %152 = arith.addf %151, %150 : vector<2x32xf32>
    %153 = arith.divf %151, %152 : vector<2x32xf32>
    %154 = math.tanh %139 : vector<2x32xf32>
    %155 = arith.negf %143 : vector<2x32xf32>
    %156 = math.exp %155 : vector<2x32xf32>
    %cst_103 = arith.constant 1.000000e+00 : f32
    %157 = vector.broadcast %cst_103 : f32 to vector<2x32xf32>
    %158 = arith.addf %157, %156 : vector<2x32xf32>
    %159 = arith.divf %157, %158 : vector<2x32xf32>
    %160 = arith.mulf %153, %124 : vector<2x32xf32>
    %161 = arith.mulf %148, %154 : vector<2x32xf32>
    %162 = arith.addf %160, %161 : vector<2x32xf32>
    %163 = math.tanh %162 : vector<2x32xf32>
    %164 = arith.mulf %159, %163 : vector<2x32xf32>
    %165 = arith.truncf %164 : vector<2x32xf32> to vector<2x32xbf16>
    %c0_104 = arith.constant 0 : index
    %c4 = arith.constant 4 : index
    %c0_105 = arith.constant 0 : index
    %c0_106 = arith.constant 0 : index
    %166 = vector.load %arg1[%c0_104, %c4, %c0_105, %c0_106] : memref<4x8x2x32xf32, #tpu.memory_space<vmem>>, vector<1x1x2x32xf32>
    %167 = vector.shape_cast %166 : vector<1x1x2x32xf32> to vector<2x32xf32>
    %cst_107 = arith.constant dense<0.000000e+00> : vector<2x32xf32>
    %168 = tpu.matmul %165, %4, %cst_107 {dimension_numbers = #tpu.dot_dimension_numbers<[1], [0], [0], [1], [0, 0, 1, 1], [], []>} : vector<2x32xbf16>, vector<32x32xbf16>, vector<2x32xf32> -> vector<2x32xf32>
    %169 = arith.addf %167, %168 : vector<2x32xf32>
    %c1_108 = arith.constant 1 : index
    %c4_109 = arith.constant 4 : index
    %c0_110 = arith.constant 0 : index
    %c0_111 = arith.constant 0 : index
    %170 = vector.load %arg1[%c1_108, %c4_109, %c0_110, %c0_111] : memref<4x8x2x32xf32, #tpu.memory_space<vmem>>, vector<1x1x2x32xf32>
    %171 = vector.shape_cast %170 : vector<1x1x2x32xf32> to vector<2x32xf32>
    %cst_112 = arith.constant dense<0.000000e+00> : vector<2x32xf32>
    %172 = tpu.matmul %165, %6, %cst_112 {dimension_numbers = #tpu.dot_dimension_numbers<[1], [0], [0], [1], [0, 0, 1, 1], [], []>} : vector<2x32xbf16>, vector<32x32xbf16>, vector<2x32xf32> -> vector<2x32xf32>
    %173 = arith.addf %171, %172 : vector<2x32xf32>
    %c2_113 = arith.constant 2 : index
    %c4_114 = arith.constant 4 : index
    %c0_115 = arith.constant 0 : index
    %c0_116 = arith.constant 0 : index
    %174 = vector.load %arg1[%c2_113, %c4_114, %c0_115, %c0_116] : memref<4x8x2x32xf32, #tpu.memory_space<vmem>>, vector<1x1x2x32xf32>
    %175 = vector.shape_cast %174 : vector<1x1x2x32xf32> to vector<2x32xf32>
    %cst_117 = arith.constant dense<0.000000e+00> : vector<2x32xf32>
    %176 = tpu.matmul %165, %8, %cst_117 {dimension_numbers = #tpu.dot_dimension_numbers<[1], [0], [0], [1], [0, 0, 1, 1], [], []>} : vector<2x32xbf16>, vector<32x32xbf16>, vector<2x32xf32> -> vector<2x32xf32>
    %177 = arith.addf %175, %176 : vector<2x32xf32>
    %c3_118 = arith.constant 3 : index
    %c4_119 = arith.constant 4 : index
    %c0_120 = arith.constant 0 : index
    %c0_121 = arith.constant 0 : index
    %178 = vector.load %arg1[%c3_118, %c4_119, %c0_120, %c0_121] : memref<4x8x2x32xf32, #tpu.memory_space<vmem>>, vector<1x1x2x32xf32>
    %179 = vector.shape_cast %178 : vector<1x1x2x32xf32> to vector<2x32xf32>
    %cst_122 = arith.constant dense<0.000000e+00> : vector<2x32xf32>
    %180 = tpu.matmul %165, %10, %cst_122 {dimension_numbers = #tpu.dot_dimension_numbers<[1], [0], [0], [1], [0, 0, 1, 1], [], []>} : vector<2x32xbf16>, vector<32x32xbf16>, vector<2x32xf32> -> vector<2x32xf32>
    %181 = arith.addf %179, %180 : vector<2x32xf32>
    %182 = arith.negf %169 : vector<2x32xf32>
    %183 = math.exp %182 : vector<2x32xf32>
    %cst_123 = arith.constant 1.000000e+00 : f32
    %184 = vector.broadcast %cst_123 : f32 to vector<2x32xf32>
    %185 = arith.addf %184, %183 : vector<2x32xf32>
    %186 = arith.divf %184, %185 : vector<2x32xf32>
    %187 = arith.negf %173 : vector<2x32xf32>
    %188 = math.exp %187 : vector<2x32xf32>
    %cst_124 = arith.constant 1.000000e+00 : f32
    %189 = vector.broadcast %cst_124 : f32 to vector<2x32xf32>
    %190 = arith.addf %189, %188 : vector<2x32xf32>
    %191 = arith.divf %189, %190 : vector<2x32xf32>
    %192 = math.tanh %177 : vector<2x32xf32>
    %193 = arith.negf %181 : vector<2x32xf32>
    %194 = math.exp %193 : vector<2x32xf32>
    %cst_125 = arith.constant 1.000000e+00 : f32
    %195 = vector.broadcast %cst_125 : f32 to vector<2x32xf32>
    %196 = arith.addf %195, %194 : vector<2x32xf32>
    %197 = arith.divf %195, %196 : vector<2x32xf32>
    %198 = arith.mulf %191, %162 : vector<2x32xf32>
    %199 = arith.mulf %186, %192 : vector<2x32xf32>
    %200 = arith.addf %198, %199 : vector<2x32xf32>
    %201 = math.tanh %200 : vector<2x32xf32>
    %202 = arith.mulf %197, %201 : vector<2x32xf32>
    %203 = arith.truncf %202 : vector<2x32xf32> to vector<2x32xbf16>
    %c0_126 = arith.constant 0 : index
    %c5 = arith.constant 5 : index
    %c0_127 = arith.constant 0 : index
    %c0_128 = arith.constant 0 : index
    %204 = vector.load %arg1[%c0_126, %c5, %c0_127, %c0_128] : memref<4x8x2x32xf32, #tpu.memory_space<vmem>>, vector<1x1x2x32xf32>
    %205 = vector.shape_cast %204 : vector<1x1x2x32xf32> to vector<2x32xf32>
    %cst_129 = arith.constant dense<0.000000e+00> : vector<2x32xf32>
    %206 = tpu.matmul %203, %4, %cst_129 {dimension_numbers = #tpu.dot_dimension_numbers<[1], [0], [0], [1], [0, 0, 1, 1], [], []>} : vector<2x32xbf16>, vector<32x32xbf16>, vector<2x32xf32> -> vector<2x32xf32>
    %207 = arith.addf %205, %206 : vector<2x32xf32>
    %c1_130 = arith.constant 1 : index
    %c5_131 = arith.constant 5 : index
    %c0_132 = arith.constant 0 : index
    %c0_133 = arith.constant 0 : index
    %208 = vector.load %arg1[%c1_130, %c5_131, %c0_132, %c0_133] : memref<4x8x2x32xf32, #tpu.memory_space<vmem>>, vector<1x1x2x32xf32>
    %209 = vector.shape_cast %208 : vector<1x1x2x32xf32> to vector<2x32xf32>
    %cst_134 = arith.constant dense<0.000000e+00> : vector<2x32xf32>
    %210 = tpu.matmul %203, %6, %cst_134 {dimension_numbers = #tpu.dot_dimension_numbers<[1], [0], [0], [1], [0, 0, 1, 1], [], []>} : vector<2x32xbf16>, vector<32x32xbf16>, vector<2x32xf32> -> vector<2x32xf32>
    %211 = arith.addf %209, %210 : vector<2x32xf32>
    %c2_135 = arith.constant 2 : index
    %c5_136 = arith.constant 5 : index
    %c0_137 = arith.constant 0 : index
    %c0_138 = arith.constant 0 : index
    %212 = vector.load %arg1[%c2_135, %c5_136, %c0_137, %c0_138] : memref<4x8x2x32xf32, #tpu.memory_space<vmem>>, vector<1x1x2x32xf32>
    %213 = vector.shape_cast %212 : vector<1x1x2x32xf32> to vector<2x32xf32>
    %cst_139 = arith.constant dense<0.000000e+00> : vector<2x32xf32>
    %214 = tpu.matmul %203, %8, %cst_139 {dimension_numbers = #tpu.dot_dimension_numbers<[1], [0], [0], [1], [0, 0, 1, 1], [], []>} : vector<2x32xbf16>, vector<32x32xbf16>, vector<2x32xf32> -> vector<2x32xf32>
    %215 = arith.addf %213, %214 : vector<2x32xf32>
    %c3_140 = arith.constant 3 : index
    %c5_141 = arith.constant 5 : index
    %c0_142 = arith.constant 0 : index
    %c0_143 = arith.constant 0 : index
    %216 = vector.load %arg1[%c3_140, %c5_141, %c0_142, %c0_143] : memref<4x8x2x32xf32, #tpu.memory_space<vmem>>, vector<1x1x2x32xf32>
    %217 = vector.shape_cast %216 : vector<1x1x2x32xf32> to vector<2x32xf32>
    %cst_144 = arith.constant dense<0.000000e+00> : vector<2x32xf32>
    %218 = tpu.matmul %203, %10, %cst_144 {dimension_numbers = #tpu.dot_dimension_numbers<[1], [0], [0], [1], [0, 0, 1, 1], [], []>} : vector<2x32xbf16>, vector<32x32xbf16>, vector<2x32xf32> -> vector<2x32xf32>
    %219 = arith.addf %217, %218 : vector<2x32xf32>
    %220 = arith.negf %207 : vector<2x32xf32>
    %221 = math.exp %220 : vector<2x32xf32>
    %cst_145 = arith.constant 1.000000e+00 : f32
    %222 = vector.broadcast %cst_145 : f32 to vector<2x32xf32>
    %223 = arith.addf %222, %221 : vector<2x32xf32>
    %224 = arith.divf %222, %223 : vector<2x32xf32>
    %225 = arith.negf %211 : vector<2x32xf32>
    %226 = math.exp %225 : vector<2x32xf32>
    %cst_146 = arith.constant 1.000000e+00 : f32
    %227 = vector.broadcast %cst_146 : f32 to vector<2x32xf32>
    %228 = arith.addf %227, %226 : vector<2x32xf32>
    %229 = arith.divf %227, %228 : vector<2x32xf32>
    %230 = math.tanh %215 : vector<2x32xf32>
    %231 = arith.negf %219 : vector<2x32xf32>
    %232 = math.exp %231 : vector<2x32xf32>
    %cst_147 = arith.constant 1.000000e+00 : f32
    %233 = vector.broadcast %cst_147 : f32 to vector<2x32xf32>
    %234 = arith.addf %233, %232 : vector<2x32xf32>
    %235 = arith.divf %233, %234 : vector<2x32xf32>
    %236 = arith.mulf %229, %200 : vector<2x32xf32>
    %237 = arith.mulf %224, %230 : vector<2x32xf32>
    %238 = arith.addf %236, %237 : vector<2x32xf32>
    %239 = math.tanh %238 : vector<2x32xf32>
    %240 = arith.mulf %235, %239 : vector<2x32xf32>
    %241 = arith.truncf %240 : vector<2x32xf32> to vector<2x32xbf16>
    %c0_148 = arith.constant 0 : index
    %c6 = arith.constant 6 : index
    %c0_149 = arith.constant 0 : index
    %c0_150 = arith.constant 0 : index
    %242 = vector.load %arg1[%c0_148, %c6, %c0_149, %c0_150] : memref<4x8x2x32xf32, #tpu.memory_space<vmem>>, vector<1x1x2x32xf32>
    %243 = vector.shape_cast %242 : vector<1x1x2x32xf32> to vector<2x32xf32>
    %cst_151 = arith.constant dense<0.000000e+00> : vector<2x32xf32>
    %244 = tpu.matmul %241, %4, %cst_151 {dimension_numbers = #tpu.dot_dimension_numbers<[1], [0], [0], [1], [0, 0, 1, 1], [], []>} : vector<2x32xbf16>, vector<32x32xbf16>, vector<2x32xf32> -> vector<2x32xf32>
    %245 = arith.addf %243, %244 : vector<2x32xf32>
    %c1_152 = arith.constant 1 : index
    %c6_153 = arith.constant 6 : index
    %c0_154 = arith.constant 0 : index
    %c0_155 = arith.constant 0 : index
    %246 = vector.load %arg1[%c1_152, %c6_153, %c0_154, %c0_155] : memref<4x8x2x32xf32, #tpu.memory_space<vmem>>, vector<1x1x2x32xf32>
    %247 = vector.shape_cast %246 : vector<1x1x2x32xf32> to vector<2x32xf32>
    %cst_156 = arith.constant dense<0.000000e+00> : vector<2x32xf32>
    %248 = tpu.matmul %241, %6, %cst_156 {dimension_numbers = #tpu.dot_dimension_numbers<[1], [0], [0], [1], [0, 0, 1, 1], [], []>} : vector<2x32xbf16>, vector<32x32xbf16>, vector<2x32xf32> -> vector<2x32xf32>
    %249 = arith.addf %247, %248 : vector<2x32xf32>
    %c2_157 = arith.constant 2 : index
    %c6_158 = arith.constant 6 : index
    %c0_159 = arith.constant 0 : index
    %c0_160 = arith.constant 0 : index
    %250 = vector.load %arg1[%c2_157, %c6_158, %c0_159, %c0_160] : memref<4x8x2x32xf32, #tpu.memory_space<vmem>>, vector<1x1x2x32xf32>
    %251 = vector.shape_cast %250 : vector<1x1x2x32xf32> to vector<2x32xf32>
    %cst_161 = arith.constant dense<0.000000e+00> : vector<2x32xf32>
    %252 = tpu.matmul %241, %8, %cst_161 {dimension_numbers = #tpu.dot_dimension_numbers<[1], [0], [0], [1], [0, 0, 1, 1], [], []>} : vector<2x32xbf16>, vector<32x32xbf16>, vector<2x32xf32> -> vector<2x32xf32>
    %253 = arith.addf %251, %252 : vector<2x32xf32>
    %c3_162 = arith.constant 3 : index
    %c6_163 = arith.constant 6 : index
    %c0_164 = arith.constant 0 : index
    %c0_165 = arith.constant 0 : index
    %254 = vector.load %arg1[%c3_162, %c6_163, %c0_164, %c0_165] : memref<4x8x2x32xf32, #tpu.memory_space<vmem>>, vector<1x1x2x32xf32>
    %255 = vector.shape_cast %254 : vector<1x1x2x32xf32> to vector<2x32xf32>
    %cst_166 = arith.constant dense<0.000000e+00> : vector<2x32xf32>
    %256 = tpu.matmul %241, %10, %cst_166 {dimension_numbers = #tpu.dot_dimension_numbers<[1], [0], [0], [1], [0, 0, 1, 1], [], []>} : vector<2x32xbf16>, vector<32x32xbf16>, vector<2x32xf32> -> vector<2x32xf32>
    %257 = arith.addf %255, %256 : vector<2x32xf32>
    %258 = arith.negf %245 : vector<2x32xf32>
    %259 = math.exp %258 : vector<2x32xf32>
    %cst_167 = arith.constant 1.000000e+00 : f32
    %260 = vector.broadcast %cst_167 : f32 to vector<2x32xf32>
    %261 = arith.addf %260, %259 : vector<2x32xf32>
    %262 = arith.divf %260, %261 : vector<2x32xf32>
    %263 = arith.negf %249 : vector<2x32xf32>
    %264 = math.exp %263 : vector<2x32xf32>
    %cst_168 = arith.constant 1.000000e+00 : f32
    %265 = vector.broadcast %cst_168 : f32 to vector<2x32xf32>
    %266 = arith.addf %265, %264 : vector<2x32xf32>
    %267 = arith.divf %265, %266 : vector<2x32xf32>
    %268 = math.tanh %253 : vector<2x32xf32>
    %269 = arith.negf %257 : vector<2x32xf32>
    %270 = math.exp %269 : vector<2x32xf32>
    %cst_169 = arith.constant 1.000000e+00 : f32
    %271 = vector.broadcast %cst_169 : f32 to vector<2x32xf32>
    %272 = arith.addf %271, %270 : vector<2x32xf32>
    %273 = arith.divf %271, %272 : vector<2x32xf32>
    %274 = arith.mulf %267, %238 : vector<2x32xf32>
    %275 = arith.mulf %262, %268 : vector<2x32xf32>
    %276 = arith.addf %274, %275 : vector<2x32xf32>
    %277 = math.tanh %276 : vector<2x32xf32>
    %278 = arith.mulf %273, %277 : vector<2x32xf32>
    %279 = arith.truncf %278 : vector<2x32xf32> to vector<2x32xbf16>
    %c0_170 = arith.constant 0 : index
    %c7 = arith.constant 7 : index
    %c0_171 = arith.constant 0 : index
    %c0_172 = arith.constant 0 : index
    %280 = vector.load %arg1[%c0_170, %c7, %c0_171, %c0_172] : memref<4x8x2x32xf32, #tpu.memory_space<vmem>>, vector<1x1x2x32xf32>
    %281 = vector.shape_cast %280 : vector<1x1x2x32xf32> to vector<2x32xf32>
    %cst_173 = arith.constant dense<0.000000e+00> : vector<2x32xf32>
    %282 = tpu.matmul %279, %4, %cst_173 {dimension_numbers = #tpu.dot_dimension_numbers<[1], [0], [0], [1], [0, 0, 1, 1], [], []>} : vector<2x32xbf16>, vector<32x32xbf16>, vector<2x32xf32> -> vector<2x32xf32>
    %283 = arith.addf %281, %282 : vector<2x32xf32>
    %c1_174 = arith.constant 1 : index
    %c7_175 = arith.constant 7 : index
    %c0_176 = arith.constant 0 : index
    %c0_177 = arith.constant 0 : index
    %284 = vector.load %arg1[%c1_174, %c7_175, %c0_176, %c0_177] : memref<4x8x2x32xf32, #tpu.memory_space<vmem>>, vector<1x1x2x32xf32>
    %285 = vector.shape_cast %284 : vector<1x1x2x32xf32> to vector<2x32xf32>
    %cst_178 = arith.constant dense<0.000000e+00> : vector<2x32xf32>
    %286 = tpu.matmul %279, %6, %cst_178 {dimension_numbers = #tpu.dot_dimension_numbers<[1], [0], [0], [1], [0, 0, 1, 1], [], []>} : vector<2x32xbf16>, vector<32x32xbf16>, vector<2x32xf32> -> vector<2x32xf32>
    %287 = arith.addf %285, %286 : vector<2x32xf32>
    %c2_179 = arith.constant 2 : index
    %c7_180 = arith.constant 7 : index
    %c0_181 = arith.constant 0 : index
    %c0_182 = arith.constant 0 : index
    %288 = vector.load %arg1[%c2_179, %c7_180, %c0_181, %c0_182] : memref<4x8x2x32xf32, #tpu.memory_space<vmem>>, vector<1x1x2x32xf32>
    %289 = vector.shape_cast %288 : vector<1x1x2x32xf32> to vector<2x32xf32>
    %cst_183 = arith.constant dense<0.000000e+00> : vector<2x32xf32>
    %290 = tpu.matmul %279, %8, %cst_183 {dimension_numbers = #tpu.dot_dimension_numbers<[1], [0], [0], [1], [0, 0, 1, 1], [], []>} : vector<2x32xbf16>, vector<32x32xbf16>, vector<2x32xf32> -> vector<2x32xf32>
    %291 = arith.addf %289, %290 : vector<2x32xf32>
    %c3_184 = arith.constant 3 : index
    %c7_185 = arith.constant 7 : index
    %c0_186 = arith.constant 0 : index
    %c0_187 = arith.constant 0 : index
    %292 = vector.load %arg1[%c3_184, %c7_185, %c0_186, %c0_187] : memref<4x8x2x32xf32, #tpu.memory_space<vmem>>, vector<1x1x2x32xf32>
    %293 = vector.shape_cast %292 : vector<1x1x2x32xf32> to vector<2x32xf32>
    %cst_188 = arith.constant dense<0.000000e+00> : vector<2x32xf32>
    %294 = tpu.matmul %279, %10, %cst_188 {dimension_numbers = #tpu.dot_dimension_numbers<[1], [0], [0], [1], [0, 0, 1, 1], [], []>} : vector<2x32xbf16>, vector<32x32xbf16>, vector<2x32xf32> -> vector<2x32xf32>
    %295 = arith.addf %293, %294 : vector<2x32xf32>
    %296 = arith.negf %283 : vector<2x32xf32>
    %297 = math.exp %296 : vector<2x32xf32>
    %cst_189 = arith.constant 1.000000e+00 : f32
    %298 = vector.broadcast %cst_189 : f32 to vector<2x32xf32>
    %299 = arith.addf %298, %297 : vector<2x32xf32>
    %300 = arith.divf %298, %299 : vector<2x32xf32>
    %301 = arith.negf %287 : vector<2x32xf32>
    %302 = math.exp %301 : vector<2x32xf32>
    %cst_190 = arith.constant 1.000000e+00 : f32
    %303 = vector.broadcast %cst_190 : f32 to vector<2x32xf32>
    %304 = arith.addf %303, %302 : vector<2x32xf32>
    %305 = arith.divf %303, %304 : vector<2x32xf32>
    %306 = math.tanh %291 : vector<2x32xf32>
    %307 = arith.negf %295 : vector<2x32xf32>
    %308 = math.exp %307 : vector<2x32xf32>
    %cst_191 = arith.constant 1.000000e+00 : f32
    %309 = vector.broadcast %cst_191 : f32 to vector<2x32xf32>
    %310 = arith.addf %309, %308 : vector<2x32xf32>
    %311 = arith.divf %309, %310 : vector<2x32xf32>
    %312 = arith.mulf %305, %276 : vector<2x32xf32>
    %313 = arith.mulf %300, %306 : vector<2x32xf32>
    %314 = arith.addf %312, %313 : vector<2x32xf32>
    %315 = math.tanh %314 : vector<2x32xf32>
    %316 = arith.mulf %311, %315 : vector<2x32xf32>
    %c0_192 = arith.constant 0 : index
    %c0_193 = arith.constant 0 : index
    %317 = vector.load %arg4[%c0_192, %c0_193] : memref<2x32xf32, #tpu.memory_space<vmem>>, vector<2x32xf32>
    tpu.vector_store %arg4[%c0_192, %c0_193], %316 {strides = array<i32>} : memref<2x32xf32, #tpu.memory_space<vmem>>, vector<2x32xf32>,
    %c0_194 = arith.constant 0 : index
    %c0_195 = arith.constant 0 : index
    %318 = vector.load %arg5[%c0_194, %c0_195] : memref<2x32xf32, #tpu.memory_space<vmem>>, vector<2x32xf32>
    tpu.vector_store %arg5[%c0_194, %c0_195], %314 {strides = array<i32>} : memref<2x32xf32, #tpu.memory_space<vmem>>, vector<2x32xf32>,
    %c0_196 = arith.constant 0 : index
    %c0_197 = arith.constant 0 : index
    %319 = vector.load %arg3[%c0_196, %c0_197] : memref<2x32xf32, #tpu.memory_space<vmem>>, vector<2x32xf32>
    tpu.vector_store %arg3[%c0_196, %c0_197], %316 {strides = array<i32>} : memref<2x32xf32, #tpu.memory_space<vmem>>, vector<2x32xf32>,
    return
  }
  func.func @transform_0(%arg0: i32) -> (i32, i32, i32, i32) {
    %c0_i32 = arith.constant 0 : i32
    %c0_i32_0 = arith.constant 0 : i32
    %c0_i32_1 = arith.constant 0 : i32
    %c0_i32_2 = arith.constant 0 : i32
    return %c0_i32, %arg0, %c0_i32_0, %c0_i32_1 : i32, i32, i32, i32
  }
  func.func @transform_1(%arg0: i32) -> (i32, i32, i32) {
    %c0_i32 = arith.constant 0 : i32
    %c0_i32_0 = arith.constant 0 : i32
    %c0_i32_1 = arith.constant 0 : i32
    %c0_i32_2 = arith.constant 0 : i32
    return %c0_i32, %c0_i32_0, %c0_i32_1 : i32, i32, i32
  }
  func.func @transform_2(%arg0: i32) -> (i32, i32) {
    %c0_i32 = arith.constant 0 : i32
    %c0_i32_0 = arith.constant 0 : i32
    %c0_i32_1 = arith.constant 0 : i32
    return %c0_i32, %c0_i32_0 : i32, i32
  }
}

</mosaic_0001>

<bundles_post_ra>
// kernel: lstm_model_forward.4
= control target key start
LH: loop header
LB: loop body
LE: loop exit
PB: predicated region body
PF: predicated region fallthrough
CT: control target
= control target key end

     0   :  { %vm27_vm0 = vcmask 1041408   ;;  %vm23_vm1 = vcmask 31744   ;;  %vm45_vm2 = vcmask 261120   ;;  %s235_s1 = inlined_call_operand.vmem [shape: bf16[4,4,32], index: 1, kind: input, shape index: {}]   ;;  %s236_s0 = inlined_call_operand.vmem [shape: f32[16,4], index: 0, kind: input, shape index: {}]   ;;  %s237_s2 = inlined_call_operand.vmem [shape: f32[4,1,32], index: 2, kind: input, shape index: {}]   ;;  %s238_s3 = inlined_call_operand.vmem [shape: f32[4,16,32], index: 3, kind: output, shape index: {}]  }
   0x1   :  { %v18_v0 = vld [vmem:[%s235_s1] sm:$0x3]  ;;  %v134_v1 = vld [vmem:[%s235_s1 + $0x2] sm:$0x3]  ;;  %v139_v2 = vld [vmem:[%s235_s1 + $0x4] sm:$0x3] }
   0x2   :  { %v29_v3 = vsel %vm27_vm0, %v18_v0, 0  ;;  %v56_v4 = vsel %vm27_vm0, %v134_v1, 0  ;;  %v83_v5 = vsel %vm27_vm0, %v139_v2, 0  ;;  %v144_v6 = vld [vmem:[%s235_s1 + $0x6] sm:$0x3]  ;;  %v16_v9 = vld [vmem:[%s236_s0 + $0x8] sm:$0xff] }
   0x3   :  { %v15_v7 = vld [vmem:[%s236_s0] sm:$0xff]  ;;  %38 = vmatpush.bf16.msra.mxu0 %v29_v3  ;;  %65 = vmatpush.bf16.msra.mxu1 %v56_v4  ;;  %v110_v8 = vsel %vm27_vm0, %v144_v6, 0 }
   0x4   :  { %92 = vmatpush.bf16.msra.mxu2 %v83_v5  ;;  %119 = vmatpush.bf16.msra.mxu3 %v110_v8  ;;  %v17_v10 = vpack.c.bf16 %v16_v9, %v15_v7  ;;  %v149_v11 = vld [vmem:[%s237_s2] ss:$0 sm:$0xff]  ;;  %v150_v12 = vld [vmem:[%s237_s2 + $0x1] ss:$0 sm:$0xff]  ;;  %v151_v17 = vld [vmem:[%s237_s2 + $0x2] ss:$0 sm:$0xff] }
   0x5   :  { %v152_v18 = vld [vmem:[%s237_s2 + $0x3] ss:$0 sm:$0xff] }
   0x6   :  { %133 = vmatmul.msk.bf16.vlgmr.msra.gmra.mxu0 %vm23_vm1, %v17_v10  ;;  %136 = vmatmul.msk.bf16.vlgmr.msra.gmra.mxu1 %vm23_vm1, %v17_v10 }
   0x7   :  { %141 = vmatmul.msk.bf16.vlgmr.msra.gmra.mxu2 %vm23_vm1, %v17_v10  ;;  %146 = vmatmul.msk.bf16.vlgmr.msra.gmra.mxu3 %vm23_vm1, %v17_v10 }
  0x83   :  { %v40_v13 = vpop.f32.mrf.mxu0  ;;  %v67_v14 = vpop.f32.mrf.mxu1 }
  0x84   :  { %v41_v15 = vadd.f32 %v149_v11, %v40_v13  ;;  %v68_v16 = vadd.f32 %v150_v12, %v67_v14 }
  0x86   :  { %46 = vst.msk [vmem:[%s238_s3] sm:$0xff] %vm45_vm2, %v41_v15 }
  0x87   :  { %137 = vst.msk [vmem:[%s238_s3 + $0x10] sm:$0xff] %vm45_vm2, %v68_v16 }
  0x8a   :  { %v94_v19 = vpop.f32.mrf.mxu2  ;;  %v121_v20 = vpop.f32.mrf.mxu3 }
  0x8b   :  { %v95_v21 = vadd.f32 %v151_v17, %v94_v19  ;;  %v122_v22 = vadd.f32 %v152_v18, %v121_v20  ;;  %v42_v23 = vpop.f32.mrf.mxu0  ;;  %v69_v24 = vpop.f32.mrf.mxu1 }
  0x8c   :  { %v43_v25 = vadd.f32 %v149_v11, %v42_v23  ;;  %v70_v26 = vadd.f32 %v150_v12, %v69_v24 }
  0x8d   :  { %142 = vst.msk [vmem:[%s238_s3 + $0x20] sm:$0xff] %vm45_vm2, %v95_v21 }
  0x8e   :  { %147 = vst.msk [vmem:[%s238_s3 + $0x30] sm:$0xff] %vm45_vm2, %v122_v22 }
  0x8f   :  { %47 = vst.msk [vmem:[%s238_s3 + $0x8] sm:$0xff] %vm45_vm2, %v43_v25 }
  0x90   :  { %138 = vst.msk [vmem:[%s238_s3 + $0x18] sm:$0xff] %vm45_vm2, %v70_v26 }
  0x92   :  { %v96_v27 = vpop.f32.mrf.mxu2  ;;  %v123_v28 = vpop.f32.mrf.mxu3 }
  0x93   :  { %v97_v29 = vadd.f32 %v151_v17, %v96_v27  ;;  %v124_v30 = vadd.f32 %v152_v18, %v123_v28 }
  0x95   :  { %143 = vst.msk [vmem:[%s238_s3 + $0x28] sm:$0xff] %vm45_vm2, %v97_v29 }
  0x96   :  { %148 = vst.msk [vmem:[%s238_s3 + $0x38] sm:$0xff] %vm45_vm2, %v124_v30 }

// kernel: lstm_model_forward.6
= control target key start
LH: loop header
LB: loop body
LE: loop exit
PB: predicated region body
PF: predicated region fallthrough
CT: control target
= control target key end

     0   :  { %8 = vsyncpa [#allocation3], 0  ;;  %s291_s15 = smov [#allocation2]   ;;  %s292_s17 = smov 64   ;;  %s368_s0 = inlined_call_operand.vmem [shape: bf16[16,32], index: 0, kind: input, shape index: {}]   ;;  %s369_s1 = inlined_call_operand.hbm [shape: bf16[4,32,32], index: 1, kind: input, shape index: {}]   ;;  %s370_s2 = inlined_call_operand.vmem [shape: f32[4,1,32], index: 2, kind: input, shape index: {}]   ;;  %s371_s3 = inlined_call_operand.vmem [shape: f32[4,16,32], index: 3, kind: output, shape index: {}]  }
   0x1   :  { %s15_s14 = sshll.u32 %s369_s1, 4  ;;  %s17_s16 = sshll.u32 %s291_s15, 4  ;;  %s16_s14 = int_to_ptr.hbm [resolvable:$true] %s15_s14  ;;  %s18_s16 = int_to_ptr.vmem [resolvable:$true] %s17_s16 }
   0x2   :  { %s293_s18 = smov 4  }
   0x3   :  { %23 = dma.hbm_to_vmem [thread:$0]  %s16_s14, 1024, %s18_s16, [#allocation3], %s292_s17, %s292_s17, %s293_s18  }
   0x4   :  { %289 = dma.done.wait [#allocation3], 1024  }
   0x5   :  { %290 = vsyncadd [#allocation3], 4294966272  ;;  %v251_v0 = vld [vmem:[#allocation2 + $0x8] sm:$0xff]  ;;  %v253_v1 = vld [vmem:[#allocation2 + $0x18] sm:$0xff]  ;;  %vm58_vm0 = vcmask 261120  }
   0x6   :  { %v255_v2 = vld [vmem:[#allocation2 + $0x28] sm:$0xff]  ;;  %v257_v3 = vld [vmem:[#allocation2 + $0x38] sm:$0xff]  ;;  %68 = vmatpush.bf16.msra.mxu0 %v251_v0  ;;  %106 = vmatpush.bf16.msra.mxu1 %v253_v1  ;;  %v250_v4 = vld [vmem:[#allocation2] sm:$0xff] }
   0x7   :  { %v252_v5 = vld [vmem:[#allocation2 + $0x10] sm:$0xff]  ;;  %v254_v6 = vld [vmem:[#allocation2 + $0x20] sm:$0xff]  ;;  %145 = vmatpush.bf16.msra.mxu2 %v255_v2  ;;  %184 = vmatpush.bf16.msra.mxu3 %v257_v3 }
   0x8   :  { %v256_v7 = vld [vmem:[#allocation2 + $0x30] sm:$0xff]  ;;  %v249_v8 = vld [vmem:[%s368_s0] sm:$0xff] }
   0x9   :  { %v261_v9 = vld [vmem:[%s370_s2] ss:$0 sm:$0xff]  ;;  %v262_v10 = vld [vmem:[%s370_s2 + $0x1] ss:$0 sm:$0xff]  ;;  %v263_v15 = vld [vmem:[%s370_s2 + $0x2] ss:$0 sm:$0xff] }
   0xa   :  { %69 = vmatpush.bf16.msra.mxu0 %v250_v4  ;;  %107 = vmatpush.bf16.msra.mxu1 %v252_v5  ;;  %v264_v16 = vld [vmem:[%s370_s2 + $0x3] ss:$0 sm:$0xff] }
   0xb   :  { %146 = vmatpush.bf16.msra.mxu2 %v254_v6  ;;  %185 = vmatpush.bf16.msra.mxu3 %v256_v7 }
   0xd   :  { %212 = vmatmul.msk.bf16.vlgmr.msra.gmra.mxu0 %vm58_vm0, %v249_v8  ;;  %222 = vmatmul.msk.bf16.vlgmr.msra.gmra.mxu1 %vm58_vm0, %v249_v8 }
   0xe   :  { %234 = vmatmul.msk.bf16.vlgmr.msra.gmra.mxu2 %vm58_vm0, %v249_v8  ;;  %246 = vmatmul.msk.bf16.vlgmr.msra.gmra.mxu3 %vm58_vm0, %v249_v8 }
  0x8a   :  { %v71_v11 = vpop.f32.mrf.mxu0  ;;  %v109_v12 = vpop.f32.mrf.mxu1 }
  0x8b   :  { %v72_v13 = vadd.f32 %v261_v9, %v71_v11  ;;  %v110_v14 = vadd.f32 %v262_v10, %v109_v12 }
  0x8d   :  { %76 = vst.msk [vmem:[%s371_s3] sm:$0xff] %vm58_vm0, %v72_v13 }
  0x8e   :  { %223 = vst.msk [vmem:[%s371_s3 + $0x10] sm:$0xff] %vm58_vm0, %v110_v14 }
  0x91   :  { %v148_v17 = vpop.f32.mrf.mxu2  ;;  %v187_v18 = vpop.f32.mrf.mxu3 }
  0x92   :  { %v149_v19 = vadd.f32 %v263_v15, %v148_v17  ;;  %v188_v20 = vadd.f32 %v264_v16, %v187_v18  ;;  %v73_v21 = vpop.f32.mrf.mxu0  ;;  %v111_v22 = vpop.f32.mrf.mxu1 }
  0x93   :  { %v74_v23 = vadd.f32 %v261_v9, %v73_v21  ;;  %v112_v24 = vadd.f32 %v262_v10, %v111_v22 }
  0x94   :  { %235 = vst.msk [vmem:[%s371_s3 + $0x20] sm:$0xff] %vm58_vm0, %v149_v19 }
  0x95   :  { %247 = vst.msk [vmem:[%s371_s3 + $0x30] sm:$0xff] %vm58_vm0, %v188_v20 }
  0x96   :  { %77 = vst.msk [vmem:[%s371_s3 + $0x8] sm:$0xff] %vm58_vm0, %v74_v23 }
  0x97   :  { %224 = vst.msk [vmem:[%s371_s3 + $0x18] sm:$0xff] %vm58_vm0, %v112_v24 }
  0x99   :  { %v150_v25 = vpop.f32.mrf.mxu2  ;;  %v189_v26 = vpop.f32.mrf.mxu3 }
  0x9a   :  { %v151_v27 = vadd.f32 %v263_v15, %v150_v25  ;;  %v190_v28 = vadd.f32 %v264_v16, %v189_v26 }
  0x9c   :  { %236 = vst.msk [vmem:[%s371_s3 + $0x28] sm:$0xff] %vm58_vm0, %v151_v27 }
  0x9d   :  { %248 = vst.msk [vmem:[%s371_s3 + $0x38] sm:$0xff] %vm58_vm0, %v190_v28 }
  0x9e   :  { %199 = vsyncpa [#allocation3], 1 }

// kernel: lstm_model_forward.5
= control target key start
LH: loop header
LB: loop body
LE: loop exit
PB: predicated region body
PF: predicated region fallthrough
CT: control target
= control target key end

     0   :  { %7 = vsyncpa [#allocation5], 0  ;;  %s1469_s12 = smov [#allocation4]   ;;  %s1470_s14 = smov 64   ;;  %s1763_s0 = inlined_call_operand.vmem [shape: f32[4,8,2,32], index: 0, kind: input, shape index: {}]   ;;  %s1764_s1 = inlined_call_operand.hbm [shape: bf16[4,32,32], index: 1, kind: input, shape index: {}]   ;;  %s1765_s2 = inlined_call_operand.vmem [shape: bf16[8,2,32], index: 2, kind: output, shape index: {}]  }
   0x1   :  { %s14_s11 = sshll.u32 %s1764_s1, 4  ;;  %s16_s13 = sshll.u32 %s1469_s12, 4  ;;  %s15_s11 = int_to_ptr.hbm [resolvable:$true] %s14_s11  ;;  %s17_s13 = int_to_ptr.vmem [resolvable:$true] %s16_s13 }
   0x2   :  { %s1471_s15 = smov 4  }
   0x3   :  { %22 = dma.hbm_to_vmem [thread:$0]  %s15_s11, 1024, %s17_s13, [#allocation5], %s1470_s14, %s1470_s14, %s1471_s15  }
   0x4   :  { %1467 = dma.done.wait [#allocation5], 1024  }
   0x5   :  { %1468 = vsyncadd [#allocation5], 4294966272  ;;  %vm32_vm0 = vcmask 254976   ;;  %v1472_v0 = vmov 0.0   ;;  %v1493_v1 = vld [vmem:[#allocation4 + $0x8] sm:$0xff]  ;;  %v1495_v2 = vld [vmem:[#allocation4 + $0x18] sm:$0xff] }
   0x6   :  { %33 = vst.msk [vmem:[#allocation2] sm:$0x3] %vm32_vm0, %v1472_v0  ;;  %v1497_v3 = vld [vmem:[#allocation4 + $0x38] sm:$0xff]  ;;  %v1499_v4 = vld [vmem:[#allocation4] sm:$0xff]  ;;  %80 = vmatpush.bf16.msra.mxu0 %v1493_v1  ;;  %108 = vmatpush.bf16.msra.mxu1 %v1495_v2  ;;  %v1503_v5 = vld [vmem:[#allocation4 + $0x10] sm:$0xff]  ;;  %vm70_vm1 = vcmask 261120  }
   0x7   :  { %34 = vst.msk [vmem:[#allocation3] sm:$0x3] %vm32_vm0, %v1472_v0  ;;  %v1505_v7 = vld [vmem:[#allocation4 + $0x28] sm:$0xff]  ;;  %164 = vmatpush.bf16.msra.mxu3 %v1497_v3  ;;  %v1508_v8 = vld [vmem:[#allocation4 + $0x30] sm:$0xff]  ;;  %v1511_v9 = vld [vmem:[#allocation4 + $0x20] sm:$0xff]  ;;  %vm236_vm14 = vcmask 253952  }
   0x8   :  { %136 = vmatpush.bf16.msra.mxu2 %v1505_v7  ;;  %v57_v11 = vld [vmem:[%s1763_s0] sm:$0x3]  ;;  %v1186_v12 = vld [vmem:[%s1763_s0 + $0x10] sm:$0x3] }
   0x9   :  { %v1206_v19 = vld [vmem:[%s1763_s0 + $0x30] sm:$0x3]  ;;  %v1196_v30 = vld [vmem:[%s1763_s0 + $0x20] sm:$0x3] }
   0xa   :  { %81 = vmatpush.bf16.msra.mxu0 %v1499_v4  ;;  %109 = vmatpush.bf16.msra.mxu1 %v1503_v5 }
   0xb   :  { %165 = vmatpush.bf16.msra.mxu3 %v1508_v8 }
   0xc   :  { %137 = vmatpush.bf16.msra.mxu2 %v1511_v9 }
   0xd   :  { %v54_v6 = vld [vmem:[#allocation2] sm:$0x3] }
   0xe   :  { %v56_v10 = vpack.c.bf16 %v54_v6, %v54_v6  ;;  %249 = vmatpush.bf16.msrb.mxu0 %v1493_v1  ;;  %265 = vmatpush.bf16.msrb.mxu1 %v1495_v2  ;;  %v55_v55 = vld [vmem:[#allocation3] sm:$0x3] }
   0xf   :  { %297 = vmatpush.bf16.msrb.mxu3 %v1497_v3 }
  0x10   :  { %1185 = vmatmul.msk.bf16.vlgmr.msra.gmra.mxu0 %vm70_vm1, %v56_v10  ;;  %1195 = vmatmul.msk.bf16.vlgmr.msra.gmra.mxu1 %vm70_vm1, %v56_v10 }
  0x11   :  { %1215 = vmatmul.msk.bf16.vlgmr.msra.gmra.mxu3 %vm70_vm1, %v56_v10  ;;  %281 = vmatpush.bf16.msrb.mxu2 %v1505_v7 }
  0x12   :  { %1205 = vmatmul.msk.bf16.vlgmr.msra.gmra.mxu2 %vm70_vm1, %v56_v10  ;;  %250 = vmatpush.bf16.msrb.mxu0 %v1499_v4 }
  0x13   :  { %266 = vmatpush.bf16.msrb.mxu1 %v1503_v5  ;;  %298 = vmatpush.bf16.msrb.mxu3 %v1508_v8 }
  0x15   :  { %282 = vmatpush.bf16.msrb.mxu2 %v1511_v9 }
  0x16   :  { %382 = vmatpush.bf16.msra.mxu0 %v1493_v1 }
  0x17   :  { %398 = vmatpush.bf16.msra.mxu1 %v1495_v2  ;;  %430 = vmatpush.bf16.msra.mxu3 %v1497_v3 }
  0x19   :  { %414 = vmatpush.bf16.msra.mxu2 %v1505_v7 }
  0x1a   :  { %383 = vmatpush.bf16.msra.mxu0 %v1499_v4 }
  0x1b   :  { %399 = vmatpush.bf16.msra.mxu1 %v1503_v5  ;;  %431 = vmatpush.bf16.msra.mxu3 %v1508_v8 }
  0x1d   :  { %415 = vmatpush.bf16.msra.mxu2 %v1511_v9 }
  0x8d   :  { %v83_v13 = vpop.f32.mrf.mxu0  ;;  %v111_v14 = vpop.f32.mrf.mxu1 }
  0x8e   :  { %v87_v15 = vadd.f32 %v83_v13, %v57_v11  ;;  %v115_v16 = vadd.f32 %v1186_v12, %v111_v14 }
  0x90   :  { %v1216_v17 = vmul.f32 -1.442695, %v87_v15  ;;  %v1217_v18 = vmul.f32 -1.442695, %v115_v16 }
  0x92   :  { %1315 = vpow2.f32 %v1216_v17 }
  0x93   :  { %1317 = vpow2.f32 %v1217_v18  ;;  %v1219_v18 = vld [vmem:[%s1763_s0 + $0x2] sm:$0x3] }
  0x94   :  { %v167_v20 = vpop.f32.mrf.mxu3 }
  0x95   :  { %v171_v21 = vadd.f32 %v1206_v19, %v167_v20  ;;  %v85_v22 = vpop.f32.mrf.mxu0  ;;  %v113_v23 = vpop.f32.mrf.mxu1  ;;  %v1221_v19 = vld [vmem:[%s1763_s0 + $0x12] sm:$0x3] }
  0x96   :  { %v139_v24 = vpop.f32.mrf.mxu2 }
  0x97   :  { %v1218_v25 = vmul.f32 -1.442695, %v171_v21  ;;  %v143_v34 = vadd.f32 %v1196_v30, %v139_v24 }
  0x98   :  { %v1316_v26 = vpop.eup %1315 }
  0x99   :  { %v1318_v27 = vpop.eup %1317  ;;  %v175_v28 = vadd.f32 1.0, %v1316_v26  ;;  %1319 = vpow2.f32 %v1218_v25  ;;  %v1225_v26 = vld [vmem:[%s1763_s0 + $0x32] sm:$0x3] }
  0x9a   :  { %v194_v29 = vadd.f32 1.0, %v1318_v27 }
  0x9b   :  { %1321 = vrcp.f32 %v175_v28  ;;  %v187_v42 = vand.u32 2147483648, %v175_v28  ;;  %v185_v45 = vand.u32 2147483647, %v175_v28  ;;  %vm181_vm4 = vweird.f32 %v175_v28 }
  0x9c   :  { %1323 = vrcp.f32 %v194_v29  ;;  %v169_v31 = vpop.f32.mrf.mxu3  ;;  %v206_v43 = vand.u32 2147483648, %v194_v29  ;;  %v204_v47 = vand.u32 2147483647, %v194_v29  ;;  %vm200_vm5 = vweird.f32 %v194_v29 }
  0x9d   :  { %v188_v52 = vor.u32 1.1754944e-38, %v187_v42  ;;  %vm186_vm8 = vcmp.eq.f32.partialorder %v185_v45, 8.507059e+37 }
  0x9e   :  { %v141_v32 = vpop.f32.mrf.mxu2  ;;  %v207_v54 = vor.u32 1.1754944e-38, %v206_v43  ;;  %vm205_vm9 = vcmp.eq.f32.partialorder %v204_v47, 8.507059e+37 }
  0x9f   :  { %v1320_v33 = vpop.eup %1319 }
  0xa0   :  { %v214_v35 = vadd.f32 1.0, %v1320_v33 }
  0xa1   :  { %v1322_v36 = vpop.eup %1321 }
  0xa2   :  { %v1324_v37 = vpop.eup %1323  ;;  %v177_v38 = vmul.f32 %v1322_v36, %v175_v28  ;;  %1325 = vrcp.f32 %v214_v35  ;;  %vm182_vm2 = vweird.f32 %v1322_v36  ;;  %v226_v10 = vand.u32 2147483648, %v214_v35 }
  0xa3   :  { %v196_v39 = vmul.f32 %v1324_v37, %v194_v29  ;;  %1327 = vtanh.f32 %v143_v34  ;;  %vm201_vm3 = vweird.f32 %v1324_v37  ;;  %vm183_vm6 = vmor %vm181_vm4, %vm182_vm2  ;;  %vm220_vm11 = vweird.f32 %v214_v35 }
  0xa4   :  { %v178_v40 = vsub.f32 1.0, %v177_v38  ;;  %vm202_vm7 = vmor %vm200_vm5, %vm201_vm3  ;;  %v224_v11 = vand.u32 2147483647, %v214_v35  ;;  %v227_v13 = vor.u32 1.1754944e-38, %v226_v10 }
  0xa5   :  { %v197_v41 = vsub.f32 1.0, %v196_v39  ;;  %v1223_v39 = vld [vmem:[%s1763_s0 + $0x22] sm:$0x3] }
  0xa6   :  { %v179_v44 = vmul.f32 %v1322_v36, %v178_v40  ;;  %vm225_vm13 = vcmp.eq.f32.partialorder %v224_v11, 8.507059e+37 }
  0xa7   :  { %v198_v46 = vmul.f32 %v1324_v37, %v197_v41 }
  0xa8   :  { %v1326_v48 = vpop.eup %1325  ;;  %v180_v49 = vadd.f32 %v1322_v36, %v179_v44 }
  0xa9   :  { %v1328_v50 = vpop.eup %1327  ;;  %v216_v51 = vmul.f32 %v1326_v48, %v214_v35  ;;  %v199_v53 = vadd.f32 %v1324_v37, %v198_v46  ;;  %vm221_vm10 = vweird.f32 %v1326_v48 }
  0xaa   :  { %v184_v56 = vsel %vm183_vm6, %v1322_v36, %v180_v49  ;;  %vm222_vm12 = vmor %vm220_vm11, %vm221_vm10 }
  0xab   :  { %v217_v57 = vsub.f32 1.0, %v216_v51  ;;  %v189_v58 = vsel %vm186_vm8, %v188_v52, %v184_v56  ;;  %v203_v59 = vsel %vm202_vm7, %v1324_v37, %v199_v53 }
  0xac   :  { %v208_v60 = vsel %vm205_vm9, %v207_v54, %v203_v59  ;;  %v231_v61 = vmul.f32 %v1328_v50, %v189_v58 }
  0xad   :  { %v218_v62 = vmul.f32 %v1326_v48, %v217_v57  ;;  %v230_v63 = vmul.f32 %v208_v60, %v55_v55 }
  0xaf   :  { %v1549_v0 = vadd.f32 %v231_v61, %v230_v63  ;;  %v219_v6 = vadd.f32 %v1326_v48, %v218_v62 }
  0xb1   :  { %1329 = vtanh.f32 %v1549_v0  ;;  %v223_v12 = vsel %vm222_vm12, %v1326_v48, %v219_v6 }
  0xb2   :  { %v228_v15 = vsel %vm225_vm13, %v227_v13, %v223_v12 }
  0xb7   :  { %v1330_v14 = vpop.eup %1329 }
  0xb8   :  { %v234_v16 = vmul.f32 %v1330_v14, %v228_v15 }
  0xba   :  { %v235_v17 = vpack.c.bf16 %v234_v16, %v234_v16 }
  0xbc   :  { %237 = vst.msk [vmem:[%s1765_s2] sm:$0x1] %vm236_vm14, %v235_v17  ;;  %1220 = vmatmul.msk.bf16.vlgmr.msrb.gmra.mxu0 %vm70_vm1, %v235_v17  ;;  %1222 = vmatmul.msk.bf16.vlgmr.msrb.gmra.mxu1 %vm70_vm1, %v235_v17 }
  0xbd   :  { %1224 = vmatmul.msk.bf16.vlgmr.msrb.gmra.mxu2 %vm70_vm1, %v235_v17  ;;  %1226 = vmatmul.msk.bf16.vlgmr.msrb.gmra.mxu3 %vm70_vm1, %v235_v17 }
  0xbe   :  { %515 = vmatpush.bf16.msrb.mxu0 %v1493_v1  ;;  %531 = vmatpush.bf16.msrb.mxu1 %v1495_v2 }
  0xbf   :  { %563 = vmatpush.bf16.msrb.mxu3 %v1497_v3  ;;  %547 = vmatpush.bf16.msrb.mxu2 %v1505_v7 }
  0xc2   :  { %516 = vmatpush.bf16.msrb.mxu0 %v1499_v4  ;;  %532 = vmatpush.bf16.msrb.mxu1 %v1503_v5 }
  0xc3   :  { %548 = vmatpush.bf16.msrb.mxu2 %v1511_v9  ;;  %564 = vmatpush.bf16.msrb.mxu3 %v1508_v8 }
 0x139   :  { %v252_v20 = vpop.f32.mrf.mxu0  ;;  %v268_v21 = vpop.f32.mrf.mxu1 }
 0x13a   :  { %v256_v22 = vadd.f32 %v1219_v18, %v252_v20  ;;  %v272_v23 = vadd.f32 %v1221_v19, %v268_v21 }
 0x13c   :  { %v1227_v24 = vmul.f32 -1.442695, %v256_v22  ;;  %v1228_v25 = vmul.f32 -1.442695, %v272_v23 }
 0x13e   :  { %1331 = vpow2.f32 %v1227_v24 }
 0x13f   :  { %1333 = vpow2.f32 %v1228_v25  ;;  %v1233_v25 = vld [vmem:[%s1763_s0 + $0x14] sm:$0x3] }
 0x140   :  { %v284_v27 = vpop.f32.mrf.mxu2  ;;  %v300_v28 = vpop.f32.mrf.mxu3 }
 0x141   :  { %v304_v29 = vadd.f32 %v1225_v26, %v300_v28  ;;  %v254_v30 = vpop.f32.mrf.mxu0  ;;  %v270_v31 = vpop.f32.mrf.mxu1  ;;  %v288_v43 = vadd.f32 %v1223_v39, %v284_v27 }
 0x143   :  { %v1229_v32 = vmul.f32 -1.442695, %v304_v29 }
 0x144   :  { %v1332_v33 = vpop.eup %1331 }
 0x145   :  { %v1334_v34 = vpop.eup %1333  ;;  %v308_v35 = vadd.f32 1.0, %v1332_v33  ;;  %1335 = vpow2.f32 %v1229_v32  ;;  %v1237_v32 = vld [vmem:[%s1763_s0 + $0x34] sm:$0x3] }
 0x146   :  { %v327_v36 = vadd.f32 1.0, %v1334_v34 }
 0x147   :  { %1337 = vrcp.f32 %v308_v35  ;;  %v320_v49 = vand.u32 2147483648, %v308_v35  ;;  %v318_v52 = vand.u32 2147483647, %v308_v35  ;;  %vm314_vm3 = vweird.f32 %v308_v35 }
 0x148   :  { %1339 = vrcp.f32 %v327_v36  ;;  %v286_v37 = vpop.f32.mrf.mxu2  ;;  %v302_v38 = vpop.f32.mrf.mxu3  ;;  %v339_v50 = vand.u32 2147483648, %v327_v36  ;;  %v337_v54 = vand.u32 2147483647, %v327_v36  ;;  %vm333_vm4 = vweird.f32 %v327_v36 }
 0x149   :  { %v321_v57 = vor.u32 1.1754944e-38, %v320_v49  ;;  %vm319_vm7 = vcmp.eq.f32.partialorder %v318_v52, 8.507059e+37 }
 0x14a   :  { %v340_v60 = vor.u32 1.1754944e-38, %v339_v50  ;;  %vm338_vm8 = vcmp.eq.f32.partialorder %v337_v54, 8.507059e+37 }
 0x14b   :  { %v1336_v40 = vpop.eup %1335 }
 0x14c   :  { %v347_v41 = vadd.f32 1.0, %v1336_v40 }
 0x14d   :  { %v1338_v42 = vpop.eup %1337 }
 0x14e   :  { %v1340_v44 = vpop.eup %1339  ;;  %v310_v45 = vmul.f32 %v1338_v42, %v308_v35  ;;  %1341 = vrcp.f32 %v347_v41  ;;  %vm315_vm15 = vweird.f32 %v1338_v42  ;;  %v359_v17 = vand.u32 2147483648, %v347_v41 }
 0x14f   :  { %v329_v46 = vmul.f32 %v1340_v44, %v327_v36  ;;  %1343 = vtanh.f32 %v288_v43  ;;  %vm334_vm2 = vweird.f32 %v1340_v44  ;;  %vm316_vm5 = vmor %vm314_vm3, %vm315_vm15  ;;  %vm353_vm10 = vweird.f32 %v347_v41 }
 0x150   :  { %v311_v47 = vsub.f32 1.0, %v310_v45  ;;  %vm335_vm6 = vmor %vm333_vm4, %vm334_vm2  ;;  %v357_v18 = vand.u32 2147483647, %v347_v41  ;;  %v360_v20 = vor.u32 1.1754944e-38, %v359_v17  ;;  %v1235_v45 = vld [vmem:[%s1763_s0 + $0x24] sm:$0x3] }
 0x151   :  { %v330_v48 = vsub.f32 1.0, %v329_v46 }
 0x152   :  { %v312_v51 = vmul.f32 %v1338_v42, %v311_v47  ;;  %vm358_vm12 = vcmp.eq.f32.partialorder %v357_v18, 8.507059e+37 }
 0x153   :  { %v331_v53 = vmul.f32 %v1340_v44, %v330_v48 }
 0x154   :  { %v1342_v55 = vpop.eup %1341  ;;  %v313_v56 = vadd.f32 %v1338_v42, %v312_v51 }
 0x155   :  { %v332_v58 = vadd.f32 %v1340_v44, %v331_v53  ;;  %v349_v59 = vmul.f32 %v1342_v55, %v347_v41  ;;  %v1344_v62 = vpop.eup %1343  ;;  %vm354_vm9 = vweird.f32 %v1342_v55 }
 0x156   :  { %v317_v61 = vsel %vm316_vm5, %v1338_v42, %v313_v56  ;;  %vm355_vm11 = vmor %vm353_vm10, %vm354_vm9 }
 0x157   :  { %v322_v63 = vsel %vm319_vm7, %v321_v57, %v317_v61  ;;  %v336_v6 = vsel %vm335_vm6, %v1340_v44, %v332_v58  ;;  %v350_v10 = vsub.f32 1.0, %v349_v59 }
 0x158   :  { %v341_v11 = vsel %vm338_vm8, %v340_v60, %v336_v6  ;;  %v364_v12 = vmul.f32 %v1344_v62, %v322_v63 }
 0x159   :  { %v363_v13 = vmul.f32 %v341_v11, %v1549_v0  ;;  %v351_v14 = vmul.f32 %v1342_v55, %v350_v10  ;;  %v1231_v0 = vld [vmem:[%s1763_s0 + $0x4] sm:$0x3] }
 0x15b   :  { %v1581_v15 = vadd.f32 %v364_v12, %v363_v13  ;;  %v352_v16 = vadd.f32 %v1342_v55, %v351_v14 }
 0x15d   :  { %1345 = vtanh.f32 %v1581_v15  ;;  %v356_v19 = vsel %vm355_vm11, %v1342_v55, %v352_v16 }
 0x15e   :  { %v361_v22 = vsel %vm358_vm12, %v360_v20, %v356_v19 }
 0x163   :  { %v1346_v21 = vpop.eup %1345 }
 0x164   :  { %v367_v23 = vmul.f32 %v1346_v21, %v361_v22 }
 0x166   :  { %v368_v24 = vpack.c.bf16 %v367_v23, %v367_v23 }
 0x168   :  { %1230 = vst.msk [vmem:[%s1765_s2 + $0x1] sm:$0x1] %vm236_vm14, %v368_v24  ;;  %1232 = vmatmul.msk.bf16.vlgmr.msra.gmra.mxu0 %vm70_vm1, %v368_v24  ;;  %1234 = vmatmul.msk.bf16.vlgmr.msra.gmra.mxu1 %vm70_vm1, %v368_v24 }
 0x169   :  { %1236 = vmatmul.msk.bf16.vlgmr.msra.gmra.mxu2 %vm70_vm1, %v368_v24  ;;  %1238 = vmatmul.msk.bf16.vlgmr.msra.gmra.mxu3 %vm70_vm1, %v368_v24 }
 0x16a   :  { %648 = vmatpush.bf16.msra.mxu0 %v1493_v1  ;;  %664 = vmatpush.bf16.msra.mxu1 %v1495_v2 }
 0x16b   :  { %696 = vmatpush.bf16.msra.mxu3 %v1497_v3  ;;  %680 = vmatpush.bf16.msra.mxu2 %v1505_v7 }
 0x16e   :  { %649 = vmatpush.bf16.msra.mxu0 %v1499_v4  ;;  %665 = vmatpush.bf16.msra.mxu1 %v1503_v5 }
 0x16f   :  { %681 = vmatpush.bf16.msra.mxu2 %v1511_v9  ;;  %697 = vmatpush.bf16.msra.mxu3 %v1508_v8 }
 0x1e5   :  { %v385_v26 = vpop.f32.mrf.mxu0  ;;  %v401_v27 = vpop.f32.mrf.mxu1 }
 0x1e6   :  { %v389_v28 = vadd.f32 %v1231_v0, %v385_v26  ;;  %v405_v29 = vadd.f32 %v1233_v25, %v401_v27 }
 0x1e8   :  { %v1239_v30 = vmul.f32 -1.442695, %v389_v28  ;;  %v1240_v31 = vmul.f32 -1.442695, %v405_v29 }
 0x1ea   :  { %1347 = vpow2.f32 %v1239_v30 }
 0x1eb   :  { %1349 = vpow2.f32 %v1240_v31  ;;  %v1245_v31 = vld [vmem:[%s1763_s0 + $0x16] sm:$0x3] }
 0x1ec   :  { %v417_v33 = vpop.f32.mrf.mxu2  ;;  %v433_v34 = vpop.f32.mrf.mxu3 }
 0x1ed   :  { %v437_v35 = vadd.f32 %v1237_v32, %v433_v34  ;;  %v387_v36 = vpop.f32.mrf.mxu0  ;;  %v403_v37 = vpop.f32.mrf.mxu1  ;;  %v421_v49 = vadd.f32 %v1235_v45, %v417_v33 }
 0x1ef   :  { %v1241_v38 = vmul.f32 -1.442695, %v437_v35 }
 0x1f0   :  { %v1348_v39 = vpop.eup %1347 }
 0x1f1   :  { %v1350_v40 = vpop.eup %1349  ;;  %v441_v41 = vadd.f32 1.0, %v1348_v39  ;;  %1351 = vpow2.f32 %v1241_v38  ;;  %v1249_v38 = vld [vmem:[%s1763_s0 + $0x36] sm:$0x3] }
 0x1f2   :  { %v460_v42 = vadd.f32 1.0, %v1350_v40 }
 0x1f3   :  { %1353 = vrcp.f32 %v441_v41  ;;  %v453_v55 = vand.u32 2147483648, %v441_v41  ;;  %v451_v58 = vand.u32 2147483647, %v441_v41  ;;  %vm447_vm2 = vweird.f32 %v441_v41 }
 0x1f4   :  { %1355 = vrcp.f32 %v460_v42  ;;  %v419_v43 = vpop.f32.mrf.mxu2  ;;  %v435_v44 = vpop.f32.mrf.mxu3  ;;  %v472_v56 = vand.u32 2147483648, %v460_v42  ;;  %v470_v60 = vand.u32 2147483647, %v460_v42  ;;  %vm466_vm3 = vweird.f32 %v460_v42 }
 0x1f5   :  { %v454_v63 = vor.u32 1.1754944e-38, %v453_v55  ;;  %vm452_vm6 = vcmp.eq.f32.partialorder %v451_v58, 8.507059e+37 }
 0x1f6   :  { %v473_v11 = vor.u32 1.1754944e-38, %v472_v56  ;;  %vm471_vm7 = vcmp.eq.f32.partialorder %v470_v60, 8.507059e+37 }
 0x1f7   :  { %v1352_v46 = vpop.eup %1351 }
 0x1f8   :  { %v480_v47 = vadd.f32 1.0, %v1352_v46 }
 0x1f9   :  { %v1354_v48 = vpop.eup %1353 }
 0x1fa   :  { %v1356_v50 = vpop.eup %1355  ;;  %v443_v51 = vmul.f32 %v1354_v48, %v441_v41  ;;  %1357 = vrcp.f32 %v480_v47  ;;  %vm448_vm13 = vweird.f32 %v1354_v48  ;;  %v492_v24 = vand.u32 2147483648, %v480_v47 }
 0x1fb   :  { %v462_v52 = vmul.f32 %v1356_v50, %v460_v42  ;;  %1359 = vtanh.f32 %v421_v49  ;;  %vm467_vm15 = vweird.f32 %v1356_v50  ;;  %vm449_vm4 = vmor %vm447_vm2, %vm448_vm13  ;;  %vm486_vm9 = vweird.f32 %v480_v47 }
 0x1fc   :  { %v444_v53 = vsub.f32 1.0, %v443_v51  ;;  %vm468_vm5 = vmor %vm466_vm3, %vm467_vm15  ;;  %v490_v0 = vand.u32 2147483647, %v480_v47  ;;  %v493_v26 = vor.u32 1.1754944e-38, %v492_v24  ;;  %v1247_v51 = vld [vmem:[%s1763_s0 + $0x26] sm:$0x3] }
 0x1fd   :  { %v463_v54 = vsub.f32 1.0, %v462_v52 }
 0x1fe   :  { %v445_v57 = vmul.f32 %v1354_v48, %v444_v53  ;;  %vm491_vm11 = vcmp.eq.f32.partialorder %v490_v0, 8.507059e+37 }
 0x1ff   :  { %v464_v59 = vmul.f32 %v1356_v50, %v463_v54 }
 0x200   :  { %v1358_v61 = vpop.eup %1357  ;;  %v446_v62 = vadd.f32 %v1354_v48, %v445_v57 }
 0x201   :  { %v465_v6 = vadd.f32 %v1356_v50, %v464_v59  ;;  %v482_v10 = vmul.f32 %v1358_v61, %v480_v47  ;;  %v1360_v13 = vpop.eup %1359  ;;  %vm487_vm8 = vweird.f32 %v1358_v61 }
 0x202   :  { %v450_v12 = vsel %vm449_vm4, %v1354_v48, %v446_v62  ;;  %vm488_vm10 = vmor %vm486_vm9, %vm487_vm8 }
 0x203   :  { %v455_v14 = vsel %vm452_vm6, %v454_v63, %v450_v12  ;;  %v469_v16 = vsel %vm468_vm5, %v1356_v50, %v465_v6  ;;  %v483_v17 = vsub.f32 1.0, %v482_v10 }
 0x204   :  { %v474_v18 = vsel %vm471_vm7, %v473_v11, %v469_v16  ;;  %v497_v19 = vmul.f32 %v1360_v13, %v455_v14 }
 0x205   :  { %v496_v20 = vmul.f32 %v474_v18, %v1581_v15  ;;  %v484_v21 = vmul.f32 %v1358_v61, %v483_v17  ;;  %v1243_v15 = vld [vmem:[%s1763_s0 + $0x6] sm:$0x3] }
 0x207   :  { %v1613_v22 = vadd.f32 %v497_v19, %v496_v20  ;;  %v485_v23 = vadd.f32 %v1358_v61, %v484_v21 }
 0x209   :  { %1361 = vtanh.f32 %v1613_v22  ;;  %v489_v25 = vsel %vm488_vm10, %v1358_v61, %v485_v23 }
 0x20a   :  { %v494_v28 = vsel %vm491_vm11, %v493_v26, %v489_v25 }
 0x20f   :  { %v1362_v27 = vpop.eup %1361 }
 0x210   :  { %v500_v29 = vmul.f32 %v1362_v27, %v494_v28 }
 0x212   :  { %v501_v30 = vpack.c.bf16 %v500_v29, %v500_v29 }
 0x214   :  { %1242 = vst.msk [vmem:[%s1765_s2 + $0x2] sm:$0x1] %vm236_vm14, %v501_v30  ;;  %1244 = vmatmul.msk.bf16.vlgmr.msrb.gmra.mxu0 %vm70_vm1, %v501_v30  ;;  %1246 = vmatmul.msk.bf16.vlgmr.msrb.gmra.mxu1 %vm70_vm1, %v501_v30 }
 0x215   :  { %1248 = vmatmul.msk.bf16.vlgmr.msrb.gmra.mxu2 %vm70_vm1, %v501_v30  ;;  %1250 = vmatmul.msk.bf16.vlgmr.msrb.gmra.mxu3 %vm70_vm1, %v501_v30 }
 0x216   :  { %781 = vmatpush.bf16.msrb.mxu0 %v1493_v1  ;;  %797 = vmatpush.bf16.msrb.mxu1 %v1495_v2 }
 0x217   :  { %829 = vmatpush.bf16.msrb.mxu3 %v1497_v3  ;;  %813 = vmatpush.bf16.msrb.mxu2 %v1505_v7 }
 0x21a   :  { %782 = vmatpush.bf16.msrb.mxu0 %v1499_v4  ;;  %798 = vmatpush.bf16.msrb.mxu1 %v1503_v5 }
 0x21b   :  { %814 = vmatpush.bf16.msrb.mxu2 %v1511_v9  ;;  %830 = vmatpush.bf16.msrb.mxu3 %v1508_v8 }
 0x291   :  { %v518_v32 = vpop.f32.mrf.mxu0  ;;  %v534_v33 = vpop.f32.mrf.mxu1 }
 0x292   :  { %v522_v34 = vadd.f32 %v1243_v15, %v518_v32  ;;  %v538_v35 = vadd.f32 %v1245_v31, %v534_v33 }
 0x294   :  { %v1251_v36 = vmul.f32 -1.442695, %v522_v34  ;;  %v1252_v37 = vmul.f32 -1.442695, %v538_v35 }
 0x296   :  { %1363 = vpow2.f32 %v1251_v36 }
 0x297   :  { %1365 = vpow2.f32 %v1252_v37  ;;  %v1257_v37 = vld [vmem:[%s1763_s0 + $0x18] sm:$0x3] }
 0x298   :  { %v550_v39 = vpop.f32.mrf.mxu2  ;;  %v566_v40 = vpop.f32.mrf.mxu3 }
 0x299   :  { %v570_v41 = vadd.f32 %v1249_v38, %v566_v40  ;;  %v520_v42 = vpop.f32.mrf.mxu0  ;;  %v536_v43 = vpop.f32.mrf.mxu1  ;;  %v554_v55 = vadd.f32 %v1247_v51, %v550_v39 }
 0x29b   :  { %v1253_v44 = vmul.f32 -1.442695, %v570_v41 }
 0x29c   :  { %v1364_v45 = vpop.eup %1363 }
 0x29d   :  { %v1366_v46 = vpop.eup %1365  ;;  %v574_v47 = vadd.f32 1.0, %v1364_v45  ;;  %1367 = vpow2.f32 %v1253_v44  ;;  %v1261_v44 = vld [vmem:[%s1763_s0 + $0x38] sm:$0x3] }
 0x29e   :  { %v593_v48 = vadd.f32 1.0, %v1366_v46 }
 0x29f   :  { %1369 = vrcp.f32 %v574_v47  ;;  %v586_v61 = vand.u32 2147483648, %v574_v47  ;;  %v584_v6 = vand.u32 2147483647, %v574_v47  ;;  %vm580_vm15 = vweird.f32 %v574_v47 }
 0x2a0   :  { %1371 = vrcp.f32 %v593_v48  ;;  %v552_v49 = vpop.f32.mrf.mxu2  ;;  %v568_v50 = vpop.f32.mrf.mxu3  ;;  %v605_v62 = vand.u32 2147483648, %v593_v48  ;;  %v603_v11 = vand.u32 2147483647, %v593_v48  ;;  %vm599_vm2 = vweird.f32 %v593_v48 }
 0x2a1   :  { %v587_v14 = vor.u32 1.1754944e-38, %v586_v61  ;;  %vm585_vm5 = vcmp.eq.f32.partialorder %v584_v6, 8.507059e+37 }
 0x2a2   :  { %v606_v18 = vor.u32 1.1754944e-38, %v605_v62  ;;  %vm604_vm6 = vcmp.eq.f32.partialorder %v603_v11, 8.507059e+37 }
 0x2a3   :  { %v1368_v52 = vpop.eup %1367 }
 0x2a4   :  { %v613_v53 = vadd.f32 1.0, %v1368_v52 }
 0x2a5   :  { %v1370_v54 = vpop.eup %1369 }
 0x2a6   :  { %v1372_v56 = vpop.eup %1371  ;;  %v576_v57 = vmul.f32 %v1370_v54, %v574_v47  ;;  %1373 = vrcp.f32 %v613_v53  ;;  %vm581_vm12 = vweird.f32 %v1370_v54  ;;  %v625_v30 = vand.u32 2147483648, %v613_v53 }
 0x2a7   :  { %v595_v58 = vmul.f32 %v1372_v56, %v593_v48  ;;  %1375 = vtanh.f32 %v554_v55  ;;  %vm600_vm13 = vweird.f32 %v1372_v56  ;;  %vm582_vm3 = vmor %vm580_vm15, %vm581_vm12  ;;  %vm619_vm8 = vweird.f32 %v613_v53 }
 0x2a8   :  { %v577_v59 = vsub.f32 1.0, %v576_v57  ;;  %vm601_vm4 = vmor %vm599_vm2, %vm600_vm13  ;;  %v623_v15 = vand.u32 2147483647, %v613_v53  ;;  %v626_v32 = vor.u32 1.1754944e-38, %v625_v30  ;;  %v1259_v57 = vld [vmem:[%s1763_s0 + $0x28] sm:$0x3] }
 0x2a9   :  { %v596_v60 = vsub.f32 1.0, %v595_v58 }
 0x2aa   :  { %v578_v63 = vmul.f32 %v1370_v54, %v577_v59  ;;  %vm624_vm10 = vcmp.eq.f32.partialorder %v623_v15, 8.507059e+37 }
 0x2ab   :  { %v597_v10 = vmul.f32 %v1372_v56, %v596_v60 }
 0x2ac   :  { %v1374_v12 = vpop.eup %1373  ;;  %v579_v13 = vadd.f32 %v1370_v54, %v578_v63 }
 0x2ad   :  { %v598_v16 = vadd.f32 %v1372_v56, %v597_v10  ;;  %v615_v17 = vmul.f32 %v1374_v12, %v613_v53  ;;  %v1376_v20 = vpop.eup %1375  ;;  %vm620_vm7 = vweird.f32 %v1374_v12 }
 0x2ae   :  { %v583_v19 = vsel %vm582_vm3, %v1370_v54, %v579_v13  ;;  %vm621_vm9 = vmor %vm619_vm8, %vm620_vm7 }
 0x2af   :  { %v588_v21 = vsel %vm585_vm5, %v587_v14, %v583_v19  ;;  %v602_v23 = vsel %vm601_vm4, %v1372_v56, %v598_v16  ;;  %v616_v24 = vsub.f32 1.0, %v615_v17 }
 0x2b0   :  { %v607_v0 = vsel %vm604_vm6, %v606_v18, %v602_v23  ;;  %v630_v25 = vmul.f32 %v1376_v20, %v588_v21 }
 0x2b1   :  { %v629_v26 = vmul.f32 %v607_v0, %v1613_v22  ;;  %v617_v27 = vmul.f32 %v1374_v12, %v616_v24  ;;  %v1255_v22 = vld [vmem:[%s1763_s0 + $0x8] sm:$0x3] }
 0x2b3   :  { %v1645_v28 = vadd.f32 %v630_v25, %v629_v26  ;;  %v618_v29 = vadd.f32 %v1374_v12, %v617_v27 }
 0x2b5   :  { %1377 = vtanh.f32 %v1645_v28  ;;  %v622_v31 = vsel %vm621_vm9, %v1374_v12, %v618_v29 }
 0x2b6   :  { %v627_v34 = vsel %vm624_vm10, %v626_v32, %v622_v31 }
 0x2bb   :  { %v1378_v33 = vpop.eup %1377 }
 0x2bc   :  { %v633_v35 = vmul.f32 %v1378_v33, %v627_v34 }
 0x2be   :  { %v634_v36 = vpack.c.bf16 %v633_v35, %v633_v35 }
 0x2c0   :  { %1254 = vst.msk [vmem:[%s1765_s2 + $0x3] sm:$0x1] %vm236_vm14, %v634_v36  ;;  %1256 = vmatmul.msk.bf16.vlgmr.msra.gmra.mxu0 %vm70_vm1, %v634_v36  ;;  %1258 = vmatmul.msk.bf16.vlgmr.msra.gmra.mxu1 %vm70_vm1, %v634_v36 }
 0x2c1   :  { %1260 = vmatmul.msk.bf16.vlgmr.msra.gmra.mxu2 %vm70_vm1, %v634_v36  ;;  %1262 = vmatmul.msk.bf16.vlgmr.msra.gmra.mxu3 %vm70_vm1, %v634_v36 }
 0x2c2   :  { %914 = vmatpush.bf16.msra.mxu0 %v1493_v1  ;;  %930 = vmatpush.bf16.msra.mxu1 %v1495_v2 }
 0x2c3   :  { %962 = vmatpush.bf16.msra.mxu3 %v1497_v3  ;;  %946 = vmatpush.bf16.msra.mxu2 %v1505_v7 }
 0x2c6   :  { %915 = vmatpush.bf16.msra.mxu0 %v1499_v4  ;;  %931 = vmatpush.bf16.msra.mxu1 %v1503_v5 }
 0x2c7   :  { %947 = vmatpush.bf16.msra.mxu2 %v1511_v9  ;;  %963 = vmatpush.bf16.msra.mxu3 %v1508_v8 }
 0x33d   :  { %v651_v38 = vpop.f32.mrf.mxu0  ;;  %v667_v39 = vpop.f32.mrf.mxu1 }
 0x33e   :  { %v655_v40 = vadd.f32 %v1255_v22, %v651_v38  ;;  %v671_v41 = vadd.f32 %v1257_v37, %v667_v39 }
 0x340   :  { %v1263_v42 = vmul.f32 -1.442695, %v655_v40  ;;  %v1264_v43 = vmul.f32 -1.442695, %v671_v41 }
 0x342   :  { %1379 = vpow2.f32 %v1263_v42 }
 0x343   :  { %1381 = vpow2.f32 %v1264_v43 }
 0x344   :  { %v683_v45 = vpop.f32.mrf.mxu2  ;;  %v699_v46 = vpop.f32.mrf.mxu3 }
 0x345   :  { %v703_v47 = vadd.f32 %v1261_v44, %v699_v46  ;;  %v653_v48 = vpop.f32.mrf.mxu0  ;;  %v669_v49 = vpop.f32.mrf.mxu1  ;;  %v687_v61 = vadd.f32 %v1259_v57, %v683_v45 }
 0x347   :  { %v1265_v50 = vmul.f32 -1.442695, %v703_v47 }
 0x348   :  { %v1380_v51 = vpop.eup %1379 }
 0x349   :  { %v1382_v52 = vpop.eup %1381  ;;  %v707_v53 = vadd.f32 1.0, %v1380_v51  ;;  %1383 = vpow2.f32 %v1265_v50 }
 0x34a   :  { %v726_v54 = vadd.f32 1.0, %v1382_v52 }
 0x34b   :  { %1385 = vrcp.f32 %v707_v53  ;;  %v719_v12 = vand.u32 2147483648, %v707_v53  ;;  %v717_v16 = vand.u32 2147483647, %v707_v53  ;;  %vm713_vm13 = vweird.f32 %v707_v53 }
 0x34c   :  { %1387 = vrcp.f32 %v726_v54  ;;  %v685_v55 = vpop.f32.mrf.mxu2  ;;  %v701_v56 = vpop.f32.mrf.mxu3  ;;  %v738_v13 = vand.u32 2147483648, %v726_v54  ;;  %v736_v18 = vand.u32 2147483647, %v726_v54  ;;  %vm732_vm15 = vweird.f32 %v726_v54 }
 0x34d   :  { %v720_v21 = vor.u32 1.1754944e-38, %v719_v12  ;;  %vm718_vm4 = vcmp.eq.f32.partialorder %v717_v16, 8.507059e+37  ;;  %v1271_v55 = vld [vmem:[%s1763_s0 + $0x2a] sm:$0x3] }
 0x34e   :  { %v739_v0 = vor.u32 1.1754944e-38, %v738_v13  ;;  %vm737_vm5 = vcmp.eq.f32.partialorder %v736_v18, 8.507059e+37 }
 0x34f   :  { %v1384_v58 = vpop.eup %1383 }
 0x350   :  { %v746_v59 = vadd.f32 1.0, %v1384_v58 }
 0x351   :  { %v1386_v60 = vpop.eup %1385 }
 0x352   :  { %v1388_v62 = vpop.eup %1387  ;;  %v709_v63 = vmul.f32 %v1386_v60, %v707_v53  ;;  %1389 = vrcp.f32 %v746_v59  ;;  %vm714_vm11 = vweird.f32 %v1386_v60  ;;  %v758_v36 = vand.u32 2147483648, %v746_v59 }
 0x353   :  { %v728_v6 = vmul.f32 %v1388_v62, %v726_v54  ;;  %1391 = vtanh.f32 %v687_v61  ;;  %vm733_vm12 = vweird.f32 %v1388_v62  ;;  %vm715_vm2 = vmor %vm713_vm13, %vm714_vm11  ;;  %vm752_vm7 = vweird.f32 %v746_v59 }
 0x354   :  { %v710_v10 = vsub.f32 1.0, %v709_v63  ;;  %vm734_vm3 = vmor %vm732_vm15, %vm733_vm12  ;;  %v756_v22 = vand.u32 2147483647, %v746_v59  ;;  %v759_v38 = vor.u32 1.1754944e-38, %v758_v36 }
 0x355   :  { %v729_v11 = vsub.f32 1.0, %v728_v6 }
 0x356   :  { %v711_v14 = vmul.f32 %v1386_v60, %v710_v10  ;;  %vm757_vm9 = vcmp.eq.f32.partialorder %v756_v22, 8.507059e+37 }
 0x357   :  { %v730_v17 = vmul.f32 %v1388_v62, %v729_v11 }
 0x358   :  { %v1390_v19 = vpop.eup %1389  ;;  %v712_v20 = vadd.f32 %v1386_v60, %v711_v14 }
 0x359   :  { %v731_v23 = vadd.f32 %v1388_v62, %v730_v17  ;;  %v748_v24 = vmul.f32 %v1390_v19, %v746_v59  ;;  %v1392_v26 = vpop.eup %1391  ;;  %vm753_vm6 = vweird.f32 %v1390_v19 }
 0x35a   :  { %v716_v25 = vsel %vm715_vm2, %v1386_v60, %v712_v20  ;;  %vm754_vm8 = vmor %vm752_vm7, %vm753_vm6 }
 0x35b   :  { %v721_v27 = vsel %vm718_vm4, %v720_v21, %v716_v25  ;;  %v735_v29 = vsel %vm734_vm3, %v1388_v62, %v731_v23  ;;  %v749_v30 = vsub.f32 1.0, %v748_v24 }
 0x35c   :  { %v740_v15 = vsel %vm737_vm5, %v739_v0, %v735_v29  ;;  %v763_v31 = vmul.f32 %v1392_v26, %v721_v27 }
 0x35d   :  { %v762_v32 = vmul.f32 %v740_v15, %v1645_v28  ;;  %v750_v33 = vmul.f32 %v1390_v19, %v749_v30  ;;  %v1267_v28 = vld [vmem:[%s1763_s0 + $0xa] sm:$0x3] }
 0x35f   :  { %v1677_v34 = vadd.f32 %v763_v31, %v762_v32  ;;  %v751_v35 = vadd.f32 %v1390_v19, %v750_v33 }
 0x361   :  { %1393 = vtanh.f32 %v1677_v34  ;;  %v755_v37 = vsel %vm754_vm8, %v1390_v19, %v751_v35 }
 0x362   :  { %v760_v40 = vsel %vm757_vm9, %v759_v38, %v755_v37 }
 0x367   :  { %v1394_v39 = vpop.eup %1393 }
 0x368   :  { %v766_v41 = vmul.f32 %v1394_v39, %v760_v40 }
 0x36a   :  { %v767_v42 = vpack.c.bf16 %v766_v41, %v766_v41 }
 0x36c   :  { %1266 = vst.msk [vmem:[%s1765_s2 + $0x4] sm:$0x1] %vm236_vm14, %v767_v42  ;;  %1268 = vmatmul.msk.bf16.vlgmr.msrb.gmra.mxu0 %vm70_vm1, %v767_v42  ;;  %1270 = vmatmul.msk.bf16.vlgmr.msrb.gmra.mxu1 %vm70_vm1, %v767_v42 }
 0x36d   :  { %1272 = vmatmul.msk.bf16.vlgmr.msrb.gmra.mxu2 %vm70_vm1, %v767_v42  ;;  %1274 = vmatmul.msk.bf16.vlgmr.msrb.gmra.mxu3 %vm70_vm1, %v767_v42  ;;  %v1281_v42 = vld [vmem:[%s1763_s0 + $0x1c] sm:$0x3] }
 0x36e   :  { %1047 = vmatpush.bf16.msrb.mxu0 %v1493_v1  ;;  %1063 = vmatpush.bf16.msrb.mxu1 %v1495_v2  ;;  %v1269_v1 = vld [vmem:[%s1763_s0 + $0x1a] sm:$0x3] }
 0x36f   :  { %1095 = vmatpush.bf16.msrb.mxu3 %v1497_v3  ;;  %1079 = vmatpush.bf16.msrb.mxu2 %v1505_v7 }
 0x372   :  { %1048 = vmatpush.bf16.msrb.mxu0 %v1499_v4  ;;  %1064 = vmatpush.bf16.msrb.mxu1 %v1503_v5  ;;  %v1273_v5 = vld [vmem:[%s1763_s0 + $0x3a] sm:$0x3] }
 0x373   :  { %1080 = vmatpush.bf16.msrb.mxu2 %v1511_v9  ;;  %1096 = vmatpush.bf16.msrb.mxu3 %v1508_v8 }
 0x3e9   :  { %v784_v2 = vpop.f32.mrf.mxu0  ;;  %v800_v3 = vpop.f32.mrf.mxu1 }
 0x3ea   :  { %v788_v43 = vadd.f32 %v1267_v28, %v784_v2  ;;  %v804_v7 = vadd.f32 %v1269_v1, %v800_v3 }
 0x3ec   :  { %v1275_v44 = vmul.f32 -1.442695, %v788_v43  ;;  %v1276_v4 = vmul.f32 -1.442695, %v804_v7 }
 0x3ee   :  { %1395 = vpow2.f32 %v1275_v44  ;;  %v1285_v44 = vld [vmem:[%s1763_s0 + $0x3c] sm:$0x3] }
 0x3ef   :  { %1397 = vpow2.f32 %v1276_v4 }
 0x3f0   :  { %v816_v8 = vpop.f32.mrf.mxu2  ;;  %v832_v9 = vpop.f32.mrf.mxu3 }
 0x3f1   :  { %v836_v45 = vadd.f32 %v1273_v5, %v832_v9  ;;  %v786_v46 = vpop.f32.mrf.mxu0  ;;  %v802_v47 = vpop.f32.mrf.mxu1  ;;  %v820_v59 = vadd.f32 %v1271_v55, %v816_v8 }
 0x3f3   :  { %v1277_v48 = vmul.f32 -1.442695, %v836_v45 }
 0x3f4   :  { %v1396_v49 = vpop.eup %1395 }
 0x3f5   :  { %v1398_v50 = vpop.eup %1397  ;;  %v840_v51 = vadd.f32 1.0, %v1396_v49  ;;  %1399 = vpow2.f32 %v1277_v48 }
 0x3f6   :  { %v859_v52 = vadd.f32 1.0, %v1398_v50 }
 0x3f7   :  { %1401 = vrcp.f32 %v840_v51  ;;  %v852_v10 = vand.u32 2147483648, %v840_v51  ;;  %v850_v13 = vand.u32 2147483647, %v840_v51  ;;  %vm846_vm12 = vweird.f32 %v840_v51 }
 0x3f8   :  { %1403 = vrcp.f32 %v859_v52  ;;  %v818_v53 = vpop.f32.mrf.mxu2  ;;  %v834_v54 = vpop.f32.mrf.mxu3  ;;  %v871_v11 = vand.u32 2147483648, %v859_v52  ;;  %v869_v16 = vand.u32 2147483647, %v859_v52  ;;  %vm865_vm13 = vweird.f32 %v859_v52 }
 0x3f9   :  { %v853_v19 = vor.u32 1.1754944e-38, %v852_v10  ;;  %vm851_vm3 = vcmp.eq.f32.partialorder %v850_v13, 8.507059e+37  ;;  %v1283_v53 = vld [vmem:[%s1763_s0 + $0x2c] sm:$0x3] }
 0x3fa   :  { %v872_v23 = vor.u32 1.1754944e-38, %v871_v11  ;;  %vm870_vm4 = vcmp.eq.f32.partialorder %v869_v16, 8.507059e+37 }
 0x3fb   :  { %v1400_v56 = vpop.eup %1399 }
 0x3fc   :  { %v879_v57 = vadd.f32 1.0, %v1400_v56 }
 0x3fd   :  { %v1402_v58 = vpop.eup %1401 }
 0x3fe   :  { %v1404_v60 = vpop.eup %1403  ;;  %v842_v61 = vmul.f32 %v1402_v58, %v840_v51  ;;  %1405 = vrcp.f32 %v879_v57  ;;  %vm847_vm10 = vweird.f32 %v1402_v58  ;;  %v891_v35 = vand.u32 2147483648, %v879_v57 }
 0x3ff   :  { %v861_v62 = vmul.f32 %v1404_v60, %v859_v52  ;;  %1407 = vtanh.f32 %v820_v59  ;;  %vm866_vm11 = vweird.f32 %v1404_v60  ;;  %vm848_vm15 = vmor %vm846_vm12, %vm847_vm10  ;;  %vm885_vm6 = vweird.f32 %v879_v57 }
 0x400   :  { %v843_v63 = vsub.f32 1.0, %v842_v61  ;;  %vm867_vm2 = vmor %vm865_vm13, %vm866_vm11  ;;  %v889_v36 = vand.u32 2147483647, %v879_v57  ;;  %v892_v37 = vor.u32 1.1754944e-38, %v891_v35 }
 0x401   :  { %v862_v6 = vsub.f32 1.0, %v861_v62 }
 0x402   :  { %v844_v12 = vmul.f32 %v1402_v58, %v843_v63  ;;  %vm890_vm8 = vcmp.eq.f32.partialorder %v889_v36, 8.507059e+37 }
 0x403   :  { %v863_v14 = vmul.f32 %v1404_v60, %v862_v6 }
 0x404   :  { %v1406_v17 = vpop.eup %1405  ;;  %v845_v18 = vadd.f32 %v1402_v58, %v844_v12 }
 0x405   :  { %v864_v20 = vadd.f32 %v1404_v60, %v863_v14  ;;  %v881_v21 = vmul.f32 %v1406_v17, %v879_v57  ;;  %v1408_v0 = vpop.eup %1407  ;;  %vm886_vm5 = vweird.f32 %v1406_v17 }
 0x406   :  { %v849_v24 = vsel %vm848_vm15, %v1402_v58, %v845_v18  ;;  %vm887_vm7 = vmor %vm885_vm6, %vm886_vm5 }
 0x407   :  { %v854_v25 = vsel %vm851_vm3, %v853_v19, %v849_v24  ;;  %v868_v26 = vsel %vm867_vm2, %v1404_v60, %v864_v20  ;;  %v882_v27 = vsub.f32 1.0, %v881_v21 }
 0x408   :  { %v873_v29 = vsel %vm870_vm4, %v872_v23, %v868_v26  ;;  %v896_v30 = vmul.f32 %v1408_v0, %v854_v25 }
 0x409   :  { %v895_v15 = vmul.f32 %v873_v29, %v1677_v34  ;;  %v883_v31 = vmul.f32 %v1406_v17, %v882_v27  ;;  %v1279_v34 = vld [vmem:[%s1763_s0 + $0xc] sm:$0x3] }
 0x40b   :  { %v1709_v32 = vadd.f32 %v896_v30, %v895_v15  ;;  %v884_v33 = vadd.f32 %v1406_v17, %v883_v31 }
 0x40d   :  { %1409 = vtanh.f32 %v1709_v32  ;;  %v888_v22 = vsel %vm887_vm7, %v1406_v17, %v884_v33 }
 0x40e   :  { %v893_v39 = vsel %vm890_vm8, %v892_v37, %v888_v22 }
 0x413   :  { %v1410_v38 = vpop.eup %1409 }
 0x414   :  { %v899_v40 = vmul.f32 %v1410_v38, %v893_v39 }
 0x416   :  { %v900_v41 = vpack.c.bf16 %v899_v40, %v899_v40 }
 0x418   :  { %1278 = vst.msk [vmem:[%s1765_s2 + $0x5] sm:$0x1] %vm236_vm14, %v900_v41  ;;  %1280 = vmatmul.msk.bf16.vlgmr.msra.gmra.mxu0 %vm70_vm1, %v900_v41  ;;  %1282 = vmatmul.msk.bf16.vlgmr.msra.gmra.mxu1 %vm70_vm1, %v900_v41 }
 0x419   :  { %1284 = vmatmul.msk.bf16.vlgmr.msra.gmra.mxu2 %vm70_vm1, %v900_v41  ;;  %1286 = vmatmul.msk.bf16.vlgmr.msra.gmra.mxu3 %vm70_vm1, %v900_v41  ;;  %v1293_v41 = vld [vmem:[%s1763_s0 + $0x1e] sm:$0x3] }
 0x495   :  { %v917_v28 = vpop.f32.mrf.mxu0  ;;  %v933_v1 = vpop.f32.mrf.mxu1 }
 0x496   :  { %v921_v2 = vadd.f32 %v1279_v34, %v917_v28  ;;  %v937_v3 = vadd.f32 %v1281_v42, %v933_v1 }
 0x498   :  { %v1287_v43 = vmul.f32 -1.442695, %v921_v2  ;;  %v1288_v7 = vmul.f32 -1.442695, %v937_v3 }
 0x49a   :  { %1411 = vpow2.f32 %v1287_v43  ;;  %v1297_v43 = vld [vmem:[%s1763_s0 + $0x3e] sm:$0x3] }
 0x49b   :  { %1413 = vpow2.f32 %v1288_v7 }
 0x49c   :  { %v949_v4 = vpop.f32.mrf.mxu2  ;;  %v965_v5 = vpop.f32.mrf.mxu3 }
 0x49d   :  { %v969_v8 = vadd.f32 %v1285_v44, %v965_v5  ;;  %v919_v9 = vpop.f32.mrf.mxu0  ;;  %v935_v45 = vpop.f32.mrf.mxu1  ;;  %v953_v57 = vadd.f32 %v1283_v53, %v949_v4 }
 0x49f   :  { %v1289_v46 = vmul.f32 -1.442695, %v969_v8 }
 0x4a0   :  { %v1412_v47 = vpop.eup %1411 }
 0x4a1   :  { %v1414_v48 = vpop.eup %1413  ;;  %v973_v49 = vadd.f32 1.0, %v1412_v47  ;;  %1415 = vpow2.f32 %v1289_v46 }
 0x4a2   :  { %v992_v50 = vadd.f32 1.0, %v1414_v48 }
 0x4a3   :  { %1417 = vrcp.f32 %v973_v49  ;;  %v985_v63 = vand.u32 2147483648, %v973_v49  ;;  %v983_v11 = vand.u32 2147483647, %v973_v49  ;;  %vm979_vm11 = vweird.f32 %v973_v49 }
 0x4a4   :  { %1419 = vrcp.f32 %v992_v50  ;;  %v951_v51 = vpop.f32.mrf.mxu2  ;;  %v967_v52 = vpop.f32.mrf.mxu3  ;;  %v1004_v6 = vand.u32 2147483648, %v992_v50  ;;  %v1002_v13 = vand.u32 2147483647, %v992_v50  ;;  %vm998_vm12 = vweird.f32 %v992_v50 }
 0x4a5   :  { %v986_v17 = vor.u32 1.1754944e-38, %v985_v63  ;;  %vm984_vm2 = vcmp.eq.f32.partialorder %v983_v11, 8.507059e+37  ;;  %v1295_v51 = vld [vmem:[%s1763_s0 + $0x2e] sm:$0x3] }
 0x4a6   :  { %v1005_v20 = vor.u32 1.1754944e-38, %v1004_v6  ;;  %vm1003_vm3 = vcmp.eq.f32.partialorder %v1002_v13, 8.507059e+37 }
 0x4a7   :  { %v1416_v54 = vpop.eup %1415 }
 0x4a8   :  { %v1012_v55 = vadd.f32 1.0, %v1416_v54 }
 0x4a9   :  { %v1418_v56 = vpop.eup %1417 }
 0x4aa   :  { %v1420_v58 = vpop.eup %1419  ;;  %v975_v59 = vmul.f32 %v1418_v56, %v973_v49  ;;  %1421 = vrcp.f32 %v1012_v55  ;;  %vm980_vm9 = vweird.f32 %v1418_v56  ;;  %v1024_v33 = vand.u32 2147483648, %v1012_v55 }
 0x4ab   :  { %v994_v60 = vmul.f32 %v1420_v58, %v992_v50  ;;  %1423 = vtanh.f32 %v953_v57  ;;  %vm999_vm10 = vweird.f32 %v1420_v58  ;;  %vm981_vm13 = vmor %vm979_vm11, %vm980_vm9  ;;  %vm1018_vm5 = vweird.f32 %v1012_v55 }
 0x4ac   :  { %v976_v61 = vsub.f32 1.0, %v975_v59  ;;  %vm1000_vm15 = vmor %vm998_vm12, %vm999_vm10  ;;  %v1022_v35 = vand.u32 2147483647, %v1012_v55  ;;  %v1025_v22 = vor.u32 1.1754944e-38, %v1024_v33 }
 0x4ad   :  { %v995_v62 = vsub.f32 1.0, %v994_v60 }
 0x4ae   :  { %v977_v10 = vmul.f32 %v1418_v56, %v976_v61  ;;  %vm1023_vm7 = vcmp.eq.f32.partialorder %v1022_v35, 8.507059e+37 }
 0x4af   :  { %v996_v12 = vmul.f32 %v1420_v58, %v995_v62 }
 0x4b0   :  { %v1422_v14 = vpop.eup %1421  ;;  %v978_v16 = vadd.f32 %v1418_v56, %v977_v10 }
 0x4b1   :  { %v997_v18 = vadd.f32 %v1420_v58, %v996_v12  ;;  %v1014_v19 = vmul.f32 %v1422_v14, %v1012_v55  ;;  %v1424_v23 = vpop.eup %1423  ;;  %vm1019_vm4 = vweird.f32 %v1422_v14 }
 0x4b2   :  { %v982_v21 = vsel %vm981_vm13, %v1418_v56, %v978_v16  ;;  %vm1020_vm6 = vmor %vm1018_vm5, %vm1019_vm4 }
 0x4b3   :  { %v987_v24 = vsel %vm984_vm2, %v986_v17, %v982_v21  ;;  %v1001_v0 = vsel %vm1000_vm15, %v1420_v58, %v997_v18  ;;  %v1015_v25 = vsub.f32 1.0, %v1014_v19 }
 0x4b4   :  { %v1006_v26 = vsel %vm1003_vm3, %v1005_v20, %v1001_v0  ;;  %v1029_v27 = vmul.f32 %v1424_v23, %v987_v24 }
 0x4b5   :  { %v1028_v29 = vmul.f32 %v1006_v26, %v1709_v32  ;;  %v1016_v30 = vmul.f32 %v1422_v14, %v1015_v25  ;;  %v1291_v32 = vld [vmem:[%s1763_s0 + $0xe] sm:$0x3] }
 0x4b7   :  { %v1733_v15 = vadd.f32 %v1029_v27, %v1028_v29  ;;  %v1017_v31 = vadd.f32 %v1422_v14, %v1016_v30 }
 0x4b9   :  { %1425 = vtanh.f32 %v1733_v15  ;;  %v1021_v36 = vsel %vm1020_vm6, %v1422_v14, %v1017_v31 }
 0x4ba   :  { %v1026_v38 = vsel %vm1023_vm7, %v1025_v22, %v1021_v36 }
 0x4bf   :  { %v1426_v37 = vpop.eup %1425 }
 0x4c0   :  { %v1032_v39 = vmul.f32 %v1426_v37, %v1026_v38 }
 0x4c2   :  { %v1033_v40 = vpack.c.bf16 %v1032_v39, %v1032_v39 }
 0x4c4   :  { %1290 = vst.msk [vmem:[%s1765_s2 + $0x6] sm:$0x1] %vm236_vm14, %v1033_v40  ;;  %1292 = vmatmul.msk.bf16.vlgmr.msrb.gmra.mxu0 %vm70_vm1, %v1033_v40  ;;  %1294 = vmatmul.msk.bf16.vlgmr.msrb.gmra.mxu1 %vm70_vm1, %v1033_v40 }
 0x4c5   :  { %1296 = vmatmul.msk.bf16.vlgmr.msrb.gmra.mxu2 %vm70_vm1, %v1033_v40  ;;  %1298 = vmatmul.msk.bf16.vlgmr.msrb.gmra.mxu3 %vm70_vm1, %v1033_v40 }
 0x541   :  { %v1050_v34 = vpop.f32.mrf.mxu0  ;;  %v1066_v42 = vpop.f32.mrf.mxu1 }
 0x542   :  { %v1054_v28 = vadd.f32 %v1291_v32, %v1050_v34  ;;  %v1070_v1 = vadd.f32 %v1293_v41, %v1066_v42 }
 0x544   :  { %v1299_v2 = vmul.f32 -1.442695, %v1054_v28  ;;  %v1300_v3 = vmul.f32 -1.442695, %v1070_v1 }
 0x546   :  { %1427 = vpow2.f32 %v1299_v2 }
 0x547   :  { %1429 = vpow2.f32 %v1300_v3 }
 0x548   :  { %v1082_v7 = vpop.f32.mrf.mxu2  ;;  %v1098_v44 = vpop.f32.mrf.mxu3 }
 0x549   :  { %v1102_v4 = vadd.f32 %v1297_v43, %v1098_v44  ;;  %v1052_v5 = vpop.f32.mrf.mxu0  ;;  %v1068_v8 = vpop.f32.mrf.mxu1  ;;  %v1086_v55 = vadd.f32 %v1295_v51, %v1082_v7 }
 0x54b   :  { %v1301_v9 = vmul.f32 -1.442695, %v1102_v4 }
 0x54c   :  { %v1428_v45 = vpop.eup %1427 }
 0x54d   :  { %v1430_v46 = vpop.eup %1429  ;;  %v1106_v47 = vadd.f32 1.0, %v1428_v45  ;;  %1431 = vpow2.f32 %v1301_v9 }
 0x54e   :  { %v1125_v48 = vadd.f32 1.0, %v1430_v46 }
 0x54f   :  { %1433 = vrcp.f32 %v1106_v47  ;;  %v1118_v61 = vand.u32 2147483648, %v1106_v47  ;;  %v1116_v6 = vand.u32 2147483647, %v1106_v47  ;;  %vm1112_vm9 = vweird.f32 %v1106_v47 }
 0x550   :  { %1435 = vrcp.f32 %v1125_v48  ;;  %v1084_v49 = vpop.f32.mrf.mxu2  ;;  %v1100_v50 = vpop.f32.mrf.mxu3  ;;  %v1137_v62 = vand.u32 2147483648, %v1125_v48  ;;  %v1135_v11 = vand.u32 2147483647, %v1125_v48  ;;  %vm1131_vm10 = vweird.f32 %v1125_v48 }
 0x551   :  { %v1119_v14 = vor.u32 1.1754944e-38, %v1118_v61  ;;  %vm1117_vm13 = vcmp.eq.f32.partialorder %v1116_v6, 8.507059e+37 }
 0x552   :  { %v1138_v18 = vor.u32 1.1754944e-38, %v1137_v62  ;;  %vm1136_vm15 = vcmp.eq.f32.partialorder %v1135_v11, 8.507059e+37 }
 0x553   :  { %v1432_v52 = vpop.eup %1431 }
 0x554   :  { %v1145_v53 = vadd.f32 1.0, %v1432_v52 }
 0x555   :  { %v1434_v54 = vpop.eup %1433 }
 0x556   :  { %v1436_v56 = vpop.eup %1435  ;;  %v1108_v57 = vmul.f32 %v1434_v54, %v1106_v47  ;;  %1437 = vrcp.f32 %v1145_v53  ;;  %vm1113_vm1 = vweird.f32 %v1434_v54  ;;  %v1157_v31 = vand.u32 2147483648, %v1145_v53 }
 0x557   :  { %v1127_v58 = vmul.f32 %v1436_v56, %v1125_v48  ;;  %1439 = vtanh.f32 %v1086_v55  ;;  %vm1132_vm8 = vweird.f32 %v1436_v56  ;;  %vm1114_vm11 = vmor %vm1112_vm9, %vm1113_vm1  ;;  %vm1151_vm3 = vweird.f32 %v1145_v53 }
 0x558   :  { %v1109_v59 = vsub.f32 1.0, %v1108_v57  ;;  %vm1133_vm12 = vmor %vm1131_vm10, %vm1132_vm8  ;;  %v1155_v33 = vand.u32 2147483647, %v1145_v53  ;;  %v1158_v36 = vor.u32 1.1754944e-38, %v1157_v31 }
 0x559   :  { %v1128_v60 = vsub.f32 1.0, %v1127_v58 }
 0x55a   :  { %v1110_v63 = vmul.f32 %v1434_v54, %v1109_v59  ;;  %vm1156_vm5 = vcmp.eq.f32.partialorder %v1155_v33, 8.507059e+37 }
 0x55b   :  { %v1129_v10 = vmul.f32 %v1436_v56, %v1128_v60 }
 0x55c   :  { %v1438_v12 = vpop.eup %1437  ;;  %v1111_v13 = vadd.f32 %v1434_v54, %v1110_v63 }
 0x55d   :  { %v1130_v16 = vadd.f32 %v1436_v56, %v1129_v10  ;;  %v1147_v17 = vmul.f32 %v1438_v12, %v1145_v53  ;;  %v1440_v20 = vpop.eup %1439  ;;  %vm1152_vm2 = vweird.f32 %v1438_v12 }
 0x55e   :  { %v1115_v19 = vsel %vm1114_vm11, %v1434_v54, %v1111_v13  ;;  %vm1153_vm4 = vmor %vm1151_vm3, %vm1152_vm2 }
 0x55f   :  { %v1120_v21 = vsel %vm1117_vm13, %v1119_v14, %v1115_v19  ;;  %v1134_v23 = vsel %vm1133_vm12, %v1436_v56, %v1130_v16  ;;  %v1148_v24 = vsub.f32 1.0, %v1147_v17 }
 0x560   :  { %v1139_v0 = vsel %vm1136_vm15, %v1138_v18, %v1134_v23  ;;  %v1162_v25 = vmul.f32 %v1440_v20, %v1120_v21 }
 0x561   :  { %v1161_v26 = vmul.f32 %v1139_v0, %v1733_v15  ;;  %v1149_v27 = vmul.f32 %v1438_v12, %v1148_v24 }
 0x563   :  { %v1163_v29 = vadd.f32 %v1162_v25, %v1161_v26  ;;  %v1150_v30 = vadd.f32 %v1438_v12, %v1149_v27 }
 0x565   :  { %1441 = vtanh.f32 %v1163_v29  ;;  %1171 = vst.msk [vmem:[#allocation3] sm:$0x3] %vm32_vm0, %v1163_v29  ;;  %v1154_v35 = vsel %vm1153_vm4, %v1438_v12, %v1150_v30 }
 0x566   :  { %v1159_v37 = vsel %vm1156_vm5, %v1158_v36, %v1154_v35 }
 0x56b   :  { %v1442_v22 = vpop.eup %1441 }
 0x56c   :  { %v1165_v38 = vmul.f32 %v1442_v22, %v1159_v37 }
 0x56e   :  { %v1166_v39 = vpack.c.bf16 %v1165_v38, %v1165_v38  ;;  %1170 = vst.msk [vmem:[#allocation2] sm:$0x3] %vm32_vm0, %v1165_v38 }
 0x570   :  { %1302 = vst.msk [vmem:[%s1765_s2 + $0x7] sm:$0x1] %vm236_vm14, %v1166_v39 }
 0x571   :  { %1176 = vsyncpa [#allocation5], 1 }

// kernel: lstm_model_forward.7
= control target key start
LH: loop header
LB: loop body
LE: loop exit
PB: predicated region body
PF: predicated region fallthrough
CT: control target
= control target key end

     0   :  { %7 = vsyncpa [#allocation5], 0  ;;  %s1446_s12 = smov [#allocation4]   ;;  %s1447_s14 = smov 64   ;;  %s1712_s0 = inlined_call_operand.vmem [shape: f32[4,8,2,32], index: 0, kind: input, shape index: {}]   ;;  %s1713_s1 = inlined_call_operand.hbm [shape: bf16[4,32,32], index: 1, kind: input, shape index: {}]   ;;  %s1714_s2 = inlined_call_operand.vmem [shape: f32[2,32], index: 2, kind: output, shape index: {}]  }
   0x1   :  { %s14_s11 = sshll.u32 %s1713_s1, 4  ;;  %s16_s13 = sshll.u32 %s1446_s12, 4  ;;  %s15_s11 = int_to_ptr.hbm [resolvable:$true] %s14_s11  ;;  %s17_s13 = int_to_ptr.vmem [resolvable:$true] %s16_s13 }
   0x2   :  { %s1448_s15 = smov 4  }
   0x3   :  { %22 = dma.hbm_to_vmem [thread:$0]  %s15_s11, 1024, %s17_s13, [#allocation5], %s1447_s14, %s1447_s14, %s1448_s15  }
   0x4   :  { %1444 = dma.done.wait [#allocation5], 1024  }
   0x5   :  { %1445 = vsyncadd [#allocation5], 4294966272  ;;  %vm32_vm0 = vcmask 254976   ;;  %v1449_v0 = vmov 0.0   ;;  %v1470_v1 = vld [vmem:[#allocation4 + $0x8] sm:$0xff]  ;;  %v1472_v2 = vld [vmem:[#allocation4 + $0x18] sm:$0xff] }
   0x6   :  { %33 = vst.msk [vmem:[#allocation2] sm:$0x3] %vm32_vm0, %v1449_v0  ;;  %v1474_v3 = vld [vmem:[#allocation4 + $0x38] sm:$0xff]  ;;  %v1476_v4 = vld [vmem:[#allocation4] sm:$0xff]  ;;  %80 = vmatpush.bf16.msra.mxu0 %v1470_v1  ;;  %108 = vmatpush.bf16.msra.mxu1 %v1472_v2  ;;  %v1480_v5 = vld [vmem:[#allocation4 + $0x10] sm:$0xff]  ;;  %vm70_vm1 = vcmask 261120  }
   0x7   :  { %34 = vst.msk [vmem:[#allocation3] sm:$0x3] %vm32_vm0, %v1449_v0  ;;  %v1482_v7 = vld [vmem:[#allocation4 + $0x28] sm:$0xff]  ;;  %164 = vmatpush.bf16.msra.mxu3 %v1474_v3  ;;  %v1485_v8 = vld [vmem:[#allocation4 + $0x30] sm:$0xff]  ;;  %v1488_v9 = vld [vmem:[#allocation4 + $0x20] sm:$0xff] }
   0x8   :  { %136 = vmatpush.bf16.msra.mxu2 %v1482_v7  ;;  %v57_v11 = vld [vmem:[%s1712_s0] sm:$0x3]  ;;  %v1170_v12 = vld [vmem:[%s1712_s0 + $0x10] sm:$0x3] }
   0x9   :  { %v1190_v19 = vld [vmem:[%s1712_s0 + $0x30] sm:$0x3]  ;;  %v1180_v30 = vld [vmem:[%s1712_s0 + $0x20] sm:$0x3] }
   0xa   :  { %81 = vmatpush.bf16.msra.mxu0 %v1476_v4  ;;  %109 = vmatpush.bf16.msra.mxu1 %v1480_v5 }
   0xb   :  { %165 = vmatpush.bf16.msra.mxu3 %v1485_v8 }
   0xc   :  { %137 = vmatpush.bf16.msra.mxu2 %v1488_v9 }
   0xd   :  { %v54_v6 = vld [vmem:[#allocation2] sm:$0x3] }
   0xe   :  { %v56_v10 = vpack.c.bf16 %v54_v6, %v54_v6  ;;  %247 = vmatpush.bf16.msrb.mxu0 %v1470_v1  ;;  %263 = vmatpush.bf16.msrb.mxu1 %v1472_v2  ;;  %v55_v55 = vld [vmem:[#allocation3] sm:$0x3] }
   0xf   :  { %295 = vmatpush.bf16.msrb.mxu3 %v1474_v3 }
  0x10   :  { %1169 = vmatmul.msk.bf16.vlgmr.msra.gmra.mxu0 %vm70_vm1, %v56_v10  ;;  %1179 = vmatmul.msk.bf16.vlgmr.msra.gmra.mxu1 %vm70_vm1, %v56_v10 }
  0x11   :  { %1199 = vmatmul.msk.bf16.vlgmr.msra.gmra.mxu3 %vm70_vm1, %v56_v10  ;;  %279 = vmatpush.bf16.msrb.mxu2 %v1482_v7 }
  0x12   :  { %1189 = vmatmul.msk.bf16.vlgmr.msra.gmra.mxu2 %vm70_vm1, %v56_v10  ;;  %248 = vmatpush.bf16.msrb.mxu0 %v1476_v4 }
  0x13   :  { %264 = vmatpush.bf16.msrb.mxu1 %v1480_v5  ;;  %296 = vmatpush.bf16.msrb.mxu3 %v1485_v8 }
  0x15   :  { %280 = vmatpush.bf16.msrb.mxu2 %v1488_v9 }
  0x16   :  { %378 = vmatpush.bf16.msra.mxu0 %v1470_v1 }
  0x17   :  { %394 = vmatpush.bf16.msra.mxu1 %v1472_v2  ;;  %426 = vmatpush.bf16.msra.mxu3 %v1474_v3 }
  0x19   :  { %410 = vmatpush.bf16.msra.mxu2 %v1482_v7 }
  0x1a   :  { %379 = vmatpush.bf16.msra.mxu0 %v1476_v4 }
  0x1b   :  { %395 = vmatpush.bf16.msra.mxu1 %v1480_v5  ;;  %427 = vmatpush.bf16.msra.mxu3 %v1485_v8 }
  0x1d   :  { %411 = vmatpush.bf16.msra.mxu2 %v1488_v9 }
  0x8d   :  { %v83_v13 = vpop.f32.mrf.mxu0  ;;  %v111_v14 = vpop.f32.mrf.mxu1 }
  0x8e   :  { %v87_v15 = vadd.f32 %v83_v13, %v57_v11  ;;  %v115_v16 = vadd.f32 %v1170_v12, %v111_v14 }
  0x90   :  { %v1200_v17 = vmul.f32 -1.442695, %v87_v15  ;;  %v1201_v18 = vmul.f32 -1.442695, %v115_v16 }
  0x92   :  { %1292 = vpow2.f32 %v1200_v17 }
  0x93   :  { %1294 = vpow2.f32 %v1201_v18  ;;  %v1203_v18 = vld [vmem:[%s1712_s0 + $0x2] sm:$0x3] }
  0x94   :  { %v167_v20 = vpop.f32.mrf.mxu3 }
  0x95   :  { %v171_v21 = vadd.f32 %v1190_v19, %v167_v20  ;;  %v85_v22 = vpop.f32.mrf.mxu0  ;;  %v113_v23 = vpop.f32.mrf.mxu1  ;;  %v1205_v19 = vld [vmem:[%s1712_s0 + $0x12] sm:$0x3] }
  0x96   :  { %v139_v24 = vpop.f32.mrf.mxu2 }
  0x97   :  { %v1202_v25 = vmul.f32 -1.442695, %v171_v21  ;;  %v143_v34 = vadd.f32 %v1180_v30, %v139_v24 }
  0x98   :  { %v1293_v26 = vpop.eup %1292 }
  0x99   :  { %v1295_v27 = vpop.eup %1294  ;;  %v175_v28 = vadd.f32 1.0, %v1293_v26  ;;  %1296 = vpow2.f32 %v1202_v25  ;;  %v1209_v26 = vld [vmem:[%s1712_s0 + $0x32] sm:$0x3] }
  0x9a   :  { %v194_v29 = vadd.f32 1.0, %v1295_v27 }
  0x9b   :  { %1298 = vrcp.f32 %v175_v28  ;;  %v187_v42 = vand.u32 2147483648, %v175_v28  ;;  %v185_v45 = vand.u32 2147483647, %v175_v28  ;;  %vm181_vm4 = vweird.f32 %v175_v28 }
  0x9c   :  { %1300 = vrcp.f32 %v194_v29  ;;  %v169_v31 = vpop.f32.mrf.mxu3  ;;  %v206_v43 = vand.u32 2147483648, %v194_v29  ;;  %v204_v47 = vand.u32 2147483647, %v194_v29  ;;  %vm200_vm5 = vweird.f32 %v194_v29 }
  0x9d   :  { %v188_v52 = vor.u32 1.1754944e-38, %v187_v42  ;;  %vm186_vm8 = vcmp.eq.f32.partialorder %v185_v45, 8.507059e+37 }
  0x9e   :  { %v141_v32 = vpop.f32.mrf.mxu2  ;;  %v207_v54 = vor.u32 1.1754944e-38, %v206_v43  ;;  %vm205_vm9 = vcmp.eq.f32.partialorder %v204_v47, 8.507059e+37 }
  0x9f   :  { %v1297_v33 = vpop.eup %1296 }
  0xa0   :  { %v214_v35 = vadd.f32 1.0, %v1297_v33 }
  0xa1   :  { %v1299_v36 = vpop.eup %1298 }
  0xa2   :  { %v1301_v37 = vpop.eup %1300  ;;  %v177_v38 = vmul.f32 %v1299_v36, %v175_v28  ;;  %1302 = vrcp.f32 %v214_v35  ;;  %vm182_vm2 = vweird.f32 %v1299_v36  ;;  %v226_v10 = vand.u32 2147483648, %v214_v35 }
  0xa3   :  { %v196_v39 = vmul.f32 %v1301_v37, %v194_v29  ;;  %1304 = vtanh.f32 %v143_v34  ;;  %vm201_vm3 = vweird.f32 %v1301_v37  ;;  %vm183_vm6 = vmor %vm181_vm4, %vm182_vm2  ;;  %vm220_vm11 = vweird.f32 %v214_v35 }
  0xa4   :  { %v178_v40 = vsub.f32 1.0, %v177_v38  ;;  %vm202_vm7 = vmor %vm200_vm5, %vm201_vm3  ;;  %v224_v11 = vand.u32 2147483647, %v214_v35  ;;  %v227_v13 = vor.u32 1.1754944e-38, %v226_v10 }
  0xa5   :  { %v197_v41 = vsub.f32 1.0, %v196_v39  ;;  %v1207_v39 = vld [vmem:[%s1712_s0 + $0x22] sm:$0x3] }
  0xa6   :  { %v179_v44 = vmul.f32 %v1299_v36, %v178_v40  ;;  %vm225_vm13 = vcmp.eq.f32.partialorder %v224_v11, 8.507059e+37 }
  0xa7   :  { %v198_v46 = vmul.f32 %v1301_v37, %v197_v41 }
  0xa8   :  { %v1303_v48 = vpop.eup %1302  ;;  %v180_v49 = vadd.f32 %v1299_v36, %v179_v44 }
  0xa9   :  { %v1305_v50 = vpop.eup %1304  ;;  %v216_v51 = vmul.f32 %v1303_v48, %v214_v35  ;;  %v199_v53 = vadd.f32 %v1301_v37, %v198_v46  ;;  %vm221_vm10 = vweird.f32 %v1303_v48 }
  0xaa   :  { %v184_v56 = vsel %vm183_vm6, %v1299_v36, %v180_v49  ;;  %vm222_vm12 = vmor %vm220_vm11, %vm221_vm10 }
  0xab   :  { %v217_v57 = vsub.f32 1.0, %v216_v51  ;;  %v189_v58 = vsel %vm186_vm8, %v188_v52, %v184_v56  ;;  %v203_v59 = vsel %vm202_vm7, %v1301_v37, %v199_v53 }
  0xac   :  { %v208_v60 = vsel %vm205_vm9, %v207_v54, %v203_v59  ;;  %v231_v61 = vmul.f32 %v1305_v50, %v189_v58 }
  0xad   :  { %v230_v62 = vmul.f32 %v208_v60, %v55_v55  ;;  %v218_v63 = vmul.f32 %v1303_v48, %v217_v57 }
  0xaf   :  { %v1526_v0 = vadd.f32 %v231_v61, %v230_v62  ;;  %v219_v6 = vadd.f32 %v1303_v48, %v218_v63 }
  0xb1   :  { %1306 = vtanh.f32 %v1526_v0  ;;  %v223_v12 = vsel %vm222_vm12, %v1303_v48, %v219_v6 }
  0xb2   :  { %v228_v15 = vsel %vm225_vm13, %v227_v13, %v223_v12 }
  0xb7   :  { %v1307_v14 = vpop.eup %1306 }
  0xb8   :  { %v234_v16 = vmul.f32 %v1307_v14, %v228_v15 }
  0xba   :  { %v235_v17 = vpack.c.bf16 %v234_v16, %v234_v16 }
  0xbc   :  { %1204 = vmatmul.msk.bf16.vlgmr.msrb.gmra.mxu0 %vm70_vm1, %v235_v17  ;;  %1206 = vmatmul.msk.bf16.vlgmr.msrb.gmra.mxu1 %vm70_vm1, %v235_v17 }
  0xbd   :  { %1208 = vmatmul.msk.bf16.vlgmr.msrb.gmra.mxu2 %vm70_vm1, %v235_v17  ;;  %1210 = vmatmul.msk.bf16.vlgmr.msrb.gmra.mxu3 %vm70_vm1, %v235_v17 }
  0xbe   :  { %509 = vmatpush.bf16.msrb.mxu0 %v1470_v1  ;;  %525 = vmatpush.bf16.msrb.mxu1 %v1472_v2 }
  0xbf   :  { %557 = vmatpush.bf16.msrb.mxu3 %v1474_v3  ;;  %541 = vmatpush.bf16.msrb.mxu2 %v1482_v7 }
  0xc2   :  { %510 = vmatpush.bf16.msrb.mxu0 %v1476_v4  ;;  %526 = vmatpush.bf16.msrb.mxu1 %v1480_v5 }
  0xc3   :  { %542 = vmatpush.bf16.msrb.mxu2 %v1488_v9  ;;  %558 = vmatpush.bf16.msrb.mxu3 %v1485_v8 }
 0x139   :  { %v250_v20 = vpop.f32.mrf.mxu0  ;;  %v266_v21 = vpop.f32.mrf.mxu1 }
 0x13a   :  { %v254_v22 = vadd.f32 %v1203_v18, %v250_v20  ;;  %v270_v23 = vadd.f32 %v1205_v19, %v266_v21 }
 0x13c   :  { %v1211_v24 = vmul.f32 -1.442695, %v254_v22  ;;  %v1212_v25 = vmul.f32 -1.442695, %v270_v23 }
 0x13e   :  { %1308 = vpow2.f32 %v1211_v24 }
 0x13f   :  { %1310 = vpow2.f32 %v1212_v25  ;;  %v1216_v25 = vld [vmem:[%s1712_s0 + $0x14] sm:$0x3] }
 0x140   :  { %v282_v27 = vpop.f32.mrf.mxu2  ;;  %v298_v28 = vpop.f32.mrf.mxu3 }
 0x141   :  { %v302_v29 = vadd.f32 %v1209_v26, %v298_v28  ;;  %v252_v30 = vpop.f32.mrf.mxu0  ;;  %v268_v31 = vpop.f32.mrf.mxu1  ;;  %v286_v43 = vadd.f32 %v1207_v39, %v282_v27 }
 0x143   :  { %v1213_v32 = vmul.f32 -1.442695, %v302_v29 }
 0x144   :  { %v1309_v33 = vpop.eup %1308 }
 0x145   :  { %v1311_v34 = vpop.eup %1310  ;;  %v306_v35 = vadd.f32 1.0, %v1309_v33  ;;  %1312 = vpow2.f32 %v1213_v32  ;;  %v1220_v32 = vld [vmem:[%s1712_s0 + $0x34] sm:$0x3] }
 0x146   :  { %v325_v36 = vadd.f32 1.0, %v1311_v34 }
 0x147   :  { %1314 = vrcp.f32 %v306_v35  ;;  %v318_v49 = vand.u32 2147483648, %v306_v35  ;;  %v316_v52 = vand.u32 2147483647, %v306_v35  ;;  %vm312_vm2 = vweird.f32 %v306_v35 }
 0x148   :  { %1316 = vrcp.f32 %v325_v36  ;;  %v284_v37 = vpop.f32.mrf.mxu2  ;;  %v300_v38 = vpop.f32.mrf.mxu3  ;;  %v337_v50 = vand.u32 2147483648, %v325_v36  ;;  %v335_v54 = vand.u32 2147483647, %v325_v36  ;;  %vm331_vm3 = vweird.f32 %v325_v36 }
 0x149   :  { %v319_v57 = vor.u32 1.1754944e-38, %v318_v49  ;;  %vm317_vm6 = vcmp.eq.f32.partialorder %v316_v52, 8.507059e+37 }
 0x14a   :  { %v338_v60 = vor.u32 1.1754944e-38, %v337_v50  ;;  %vm336_vm7 = vcmp.eq.f32.partialorder %v335_v54, 8.507059e+37 }
 0x14b   :  { %v1313_v40 = vpop.eup %1312 }
 0x14c   :  { %v345_v41 = vadd.f32 1.0, %v1313_v40 }
 0x14d   :  { %v1315_v42 = vpop.eup %1314 }
 0x14e   :  { %v1317_v44 = vpop.eup %1316  ;;  %v308_v45 = vmul.f32 %v1315_v42, %v306_v35  ;;  %1318 = vrcp.f32 %v345_v41  ;;  %vm313_vm14 = vweird.f32 %v1315_v42  ;;  %v357_v17 = vand.u32 2147483648, %v345_v41 }
 0x14f   :  { %v327_v46 = vmul.f32 %v1317_v44, %v325_v36  ;;  %1320 = vtanh.f32 %v286_v43  ;;  %vm332_vm15 = vweird.f32 %v1317_v44  ;;  %vm314_vm4 = vmor %vm312_vm2, %vm313_vm14  ;;  %vm351_vm9 = vweird.f32 %v345_v41 }
 0x150   :  { %v309_v47 = vsub.f32 1.0, %v308_v45  ;;  %vm333_vm5 = vmor %vm331_vm3, %vm332_vm15  ;;  %v355_v18 = vand.u32 2147483647, %v345_v41  ;;  %v358_v20 = vor.u32 1.1754944e-38, %v357_v17  ;;  %v1218_v45 = vld [vmem:[%s1712_s0 + $0x24] sm:$0x3] }
 0x151   :  { %v328_v48 = vsub.f32 1.0, %v327_v46 }
 0x152   :  { %v310_v51 = vmul.f32 %v1315_v42, %v309_v47  ;;  %vm356_vm11 = vcmp.eq.f32.partialorder %v355_v18, 8.507059e+37 }
 0x153   :  { %v329_v53 = vmul.f32 %v1317_v44, %v328_v48 }
 0x154   :  { %v1319_v55 = vpop.eup %1318  ;;  %v311_v56 = vadd.f32 %v1315_v42, %v310_v51 }
 0x155   :  { %v330_v58 = vadd.f32 %v1317_v44, %v329_v53  ;;  %v347_v59 = vmul.f32 %v1319_v55, %v345_v41  ;;  %v1321_v62 = vpop.eup %1320  ;;  %vm352_vm8 = vweird.f32 %v1319_v55 }
 0x156   :  { %v315_v61 = vsel %vm314_vm4, %v1315_v42, %v311_v56  ;;  %vm353_vm10 = vmor %vm351_vm9, %vm352_vm8 }
 0x157   :  { %v320_v63 = vsel %vm317_vm6, %v319_v57, %v315_v61  ;;  %v334_v6 = vsel %vm333_vm5, %v1317_v44, %v330_v58  ;;  %v348_v10 = vsub.f32 1.0, %v347_v59 }
 0x158   :  { %v339_v11 = vsel %vm336_vm7, %v338_v60, %v334_v6  ;;  %v362_v12 = vmul.f32 %v1321_v62, %v320_v63 }
 0x159   :  { %v361_v13 = vmul.f32 %v339_v11, %v1526_v0  ;;  %v349_v14 = vmul.f32 %v1319_v55, %v348_v10  ;;  %v1214_v0 = vld [vmem:[%s1712_s0 + $0x4] sm:$0x3] }
 0x15b   :  { %v1554_v15 = vadd.f32 %v362_v12, %v361_v13  ;;  %v350_v16 = vadd.f32 %v1319_v55, %v349_v14 }
 0x15d   :  { %1322 = vtanh.f32 %v1554_v15  ;;  %v354_v19 = vsel %vm353_vm10, %v1319_v55, %v350_v16 }
 0x15e   :  { %v359_v22 = vsel %vm356_vm11, %v358_v20, %v354_v19 }
 0x163   :  { %v1323_v21 = vpop.eup %1322 }
 0x164   :  { %v365_v23 = vmul.f32 %v1323_v21, %v359_v22 }
 0x166   :  { %v366_v24 = vpack.c.bf16 %v365_v23, %v365_v23 }
 0x168   :  { %1215 = vmatmul.msk.bf16.vlgmr.msra.gmra.mxu0 %vm70_vm1, %v366_v24  ;;  %1217 = vmatmul.msk.bf16.vlgmr.msra.gmra.mxu1 %vm70_vm1, %v366_v24 }
 0x169   :  { %1219 = vmatmul.msk.bf16.vlgmr.msra.gmra.mxu2 %vm70_vm1, %v366_v24  ;;  %1221 = vmatmul.msk.bf16.vlgmr.msra.gmra.mxu3 %vm70_vm1, %v366_v24 }
 0x16a   :  { %640 = vmatpush.bf16.msra.mxu0 %v1470_v1  ;;  %656 = vmatpush.bf16.msra.mxu1 %v1472_v2 }
 0x16b   :  { %688 = vmatpush.bf16.msra.mxu3 %v1474_v3  ;;  %672 = vmatpush.bf16.msra.mxu2 %v1482_v7 }
 0x16e   :  { %641 = vmatpush.bf16.msra.mxu0 %v1476_v4  ;;  %657 = vmatpush.bf16.msra.mxu1 %v1480_v5 }
 0x16f   :  { %673 = vmatpush.bf16.msra.mxu2 %v1488_v9  ;;  %689 = vmatpush.bf16.msra.mxu3 %v1485_v8 }
 0x1e5   :  { %v381_v26 = vpop.f32.mrf.mxu0  ;;  %v397_v27 = vpop.f32.mrf.mxu1 }
 0x1e6   :  { %v385_v28 = vadd.f32 %v1214_v0, %v381_v26  ;;  %v401_v29 = vadd.f32 %v1216_v25, %v397_v27 }
 0x1e8   :  { %v1222_v30 = vmul.f32 -1.442695, %v385_v28  ;;  %v1223_v31 = vmul.f32 -1.442695, %v401_v29 }
 0x1ea   :  { %1324 = vpow2.f32 %v1222_v30 }
 0x1eb   :  { %1326 = vpow2.f32 %v1223_v31  ;;  %v1227_v31 = vld [vmem:[%s1712_s0 + $0x16] sm:$0x3] }
 0x1ec   :  { %v413_v33 = vpop.f32.mrf.mxu2  ;;  %v429_v34 = vpop.f32.mrf.mxu3 }
 0x1ed   :  { %v433_v35 = vadd.f32 %v1220_v32, %v429_v34  ;;  %v383_v36 = vpop.f32.mrf.mxu0  ;;  %v399_v37 = vpop.f32.mrf.mxu1  ;;  %v417_v49 = vadd.f32 %v1218_v45, %v413_v33 }
 0x1ef   :  { %v1224_v38 = vmul.f32 -1.442695, %v433_v35 }
 0x1f0   :  { %v1325_v39 = vpop.eup %1324 }
 0x1f1   :  { %v1327_v40 = vpop.eup %1326  ;;  %v437_v41 = vadd.f32 1.0, %v1325_v39  ;;  %1328 = vpow2.f32 %v1224_v38  ;;  %v1231_v38 = vld [vmem:[%s1712_s0 + $0x36] sm:$0x3] }
 0x1f2   :  { %v456_v42 = vadd.f32 1.0, %v1327_v40 }
 0x1f3   :  { %1330 = vrcp.f32 %v437_v41  ;;  %v449_v55 = vand.u32 2147483648, %v437_v41  ;;  %v447_v58 = vand.u32 2147483647, %v437_v41  ;;  %vm443_vm14 = vweird.f32 %v437_v41 }
 0x1f4   :  { %1332 = vrcp.f32 %v456_v42  ;;  %v415_v43 = vpop.f32.mrf.mxu2  ;;  %v431_v44 = vpop.f32.mrf.mxu3  ;;  %v468_v56 = vand.u32 2147483648, %v456_v42  ;;  %v466_v60 = vand.u32 2147483647, %v456_v42  ;;  %vm462_vm15 = vweird.f32 %v456_v42 }
 0x1f5   :  { %v450_v63 = vor.u32 1.1754944e-38, %v449_v55  ;;  %vm448_vm4 = vcmp.eq.f32.partialorder %v447_v58, 8.507059e+37 }
 0x1f6   :  { %v469_v11 = vor.u32 1.1754944e-38, %v468_v56  ;;  %vm467_vm5 = vcmp.eq.f32.partialorder %v466_v60, 8.507059e+37 }
 0x1f7   :  { %v1329_v46 = vpop.eup %1328 }
 0x1f8   :  { %v476_v47 = vadd.f32 1.0, %v1329_v46 }
 0x1f9   :  { %v1331_v48 = vpop.eup %1330 }
 0x1fa   :  { %v1333_v50 = vpop.eup %1332  ;;  %v439_v51 = vmul.f32 %v1331_v48, %v437_v41  ;;  %1334 = vrcp.f32 %v476_v47  ;;  %vm444_vm12 = vweird.f32 %v1331_v48  ;;  %v488_v24 = vand.u32 2147483648, %v476_v47 }
 0x1fb   :  { %v458_v52 = vmul.f32 %v1333_v50, %v456_v42  ;;  %1336 = vtanh.f32 %v417_v49  ;;  %vm463_vm13 = vweird.f32 %v1333_v50  ;;  %vm445_vm2 = vmor %vm443_vm14, %vm444_vm12  ;;  %vm482_vm7 = vweird.f32 %v476_v47 }
 0x1fc   :  { %v440_v53 = vsub.f32 1.0, %v439_v51  ;;  %vm464_vm3 = vmor %vm462_vm15, %vm463_vm13  ;;  %v486_v0 = vand.u32 2147483647, %v476_v47  ;;  %v489_v26 = vor.u32 1.1754944e-38, %v488_v24  ;;  %v1229_v51 = vld [vmem:[%s1712_s0 + $0x26] sm:$0x3] }
 0x1fd   :  { %v459_v54 = vsub.f32 1.0, %v458_v52 }
 0x1fe   :  { %v441_v57 = vmul.f32 %v1331_v48, %v440_v53  ;;  %vm487_vm9 = vcmp.eq.f32.partialorder %v486_v0, 8.507059e+37 }
 0x1ff   :  { %v460_v59 = vmul.f32 %v1333_v50, %v459_v54 }
 0x200   :  { %v1335_v61 = vpop.eup %1334  ;;  %v442_v62 = vadd.f32 %v1331_v48, %v441_v57 }
 0x201   :  { %v461_v6 = vadd.f32 %v1333_v50, %v460_v59  ;;  %v478_v10 = vmul.f32 %v1335_v61, %v476_v47  ;;  %v1337_v13 = vpop.eup %1336  ;;  %vm483_vm6 = vweird.f32 %v1335_v61 }
 0x202   :  { %v446_v12 = vsel %vm445_vm2, %v1331_v48, %v442_v62  ;;  %vm484_vm8 = vmor %vm482_vm7, %vm483_vm6 }
 0x203   :  { %v451_v14 = vsel %vm448_vm4, %v450_v63, %v446_v12  ;;  %v465_v16 = vsel %vm464_vm3, %v1333_v50, %v461_v6  ;;  %v479_v17 = vsub.f32 1.0, %v478_v10 }
 0x204   :  { %v470_v18 = vsel %vm467_vm5, %v469_v11, %v465_v16  ;;  %v493_v19 = vmul.f32 %v1337_v13, %v451_v14 }
 0x205   :  { %v492_v20 = vmul.f32 %v470_v18, %v1554_v15  ;;  %v480_v21 = vmul.f32 %v1335_v61, %v479_v17  ;;  %v1225_v15 = vld [vmem:[%s1712_s0 + $0x6] sm:$0x3] }
 0x207   :  { %v1582_v22 = vadd.f32 %v493_v19, %v492_v20  ;;  %v481_v23 = vadd.f32 %v1335_v61, %v480_v21 }
 0x209   :  { %1338 = vtanh.f32 %v1582_v22  ;;  %v485_v25 = vsel %vm484_vm8, %v1335_v61, %v481_v23 }
 0x20a   :  { %v490_v28 = vsel %vm487_vm9, %v489_v26, %v485_v25 }
 0x20f   :  { %v1339_v27 = vpop.eup %1338 }
 0x210   :  { %v496_v29 = vmul.f32 %v1339_v27, %v490_v28 }
 0x212   :  { %v497_v30 = vpack.c.bf16 %v496_v29, %v496_v29 }
 0x214   :  { %1226 = vmatmul.msk.bf16.vlgmr.msrb.gmra.mxu0 %vm70_vm1, %v497_v30  ;;  %1228 = vmatmul.msk.bf16.vlgmr.msrb.gmra.mxu1 %vm70_vm1, %v497_v30 }
 0x215   :  { %1230 = vmatmul.msk.bf16.vlgmr.msrb.gmra.mxu2 %vm70_vm1, %v497_v30  ;;  %1232 = vmatmul.msk.bf16.vlgmr.msrb.gmra.mxu3 %vm70_vm1, %v497_v30 }
 0x216   :  { %771 = vmatpush.bf16.msrb.mxu0 %v1470_v1  ;;  %787 = vmatpush.bf16.msrb.mxu1 %v1472_v2 }
 0x217   :  { %819 = vmatpush.bf16.msrb.mxu3 %v1474_v3  ;;  %803 = vmatpush.bf16.msrb.mxu2 %v1482_v7 }
 0x21a   :  { %772 = vmatpush.bf16.msrb.mxu0 %v1476_v4  ;;  %788 = vmatpush.bf16.msrb.mxu1 %v1480_v5 }
 0x21b   :  { %804 = vmatpush.bf16.msrb.mxu2 %v1488_v9  ;;  %820 = vmatpush.bf16.msrb.mxu3 %v1485_v8 }
 0x291   :  { %v512_v32 = vpop.f32.mrf.mxu0  ;;  %v528_v33 = vpop.f32.mrf.mxu1 }
 0x292   :  { %v516_v34 = vadd.f32 %v1225_v15, %v512_v32  ;;  %v532_v35 = vadd.f32 %v1227_v31, %v528_v33 }
 0x294   :  { %v1233_v36 = vmul.f32 -1.442695, %v516_v34  ;;  %v1234_v37 = vmul.f32 -1.442695, %v532_v35 }
 0x296   :  { %1340 = vpow2.f32 %v1233_v36 }
 0x297   :  { %1342 = vpow2.f32 %v1234_v37  ;;  %v1238_v37 = vld [vmem:[%s1712_s0 + $0x18] sm:$0x3] }
 0x298   :  { %v544_v39 = vpop.f32.mrf.mxu2  ;;  %v560_v40 = vpop.f32.mrf.mxu3 }
 0x299   :  { %v564_v41 = vadd.f32 %v1231_v38, %v560_v40  ;;  %v514_v42 = vpop.f32.mrf.mxu0  ;;  %v530_v43 = vpop.f32.mrf.mxu1  ;;  %v548_v55 = vadd.f32 %v1229_v51, %v544_v39 }
 0x29b   :  { %v1235_v44 = vmul.f32 -1.442695, %v564_v41 }
 0x29c   :  { %v1341_v45 = vpop.eup %1340 }
 0x29d   :  { %v1343_v46 = vpop.eup %1342  ;;  %v568_v47 = vadd.f32 1.0, %v1341_v45  ;;  %1344 = vpow2.f32 %v1235_v44  ;;  %v1242_v44 = vld [vmem:[%s1712_s0 + $0x38] sm:$0x3] }
 0x29e   :  { %v587_v48 = vadd.f32 1.0, %v1343_v46 }
 0x29f   :  { %1346 = vrcp.f32 %v568_v47  ;;  %v580_v61 = vand.u32 2147483648, %v568_v47  ;;  %v578_v6 = vand.u32 2147483647, %v568_v47  ;;  %vm574_vm12 = vweird.f32 %v568_v47 }
 0x2a0   :  { %1348 = vrcp.f32 %v587_v48  ;;  %v546_v49 = vpop.f32.mrf.mxu2  ;;  %v562_v50 = vpop.f32.mrf.mxu3  ;;  %v599_v62 = vand.u32 2147483648, %v587_v48  ;;  %v597_v11 = vand.u32 2147483647, %v587_v48  ;;  %vm593_vm13 = vweird.f32 %v587_v48 }
 0x2a1   :  { %v581_v14 = vor.u32 1.1754944e-38, %v580_v61  ;;  %vm579_vm2 = vcmp.eq.f32.partialorder %v578_v6, 8.507059e+37 }
 0x2a2   :  { %v600_v18 = vor.u32 1.1754944e-38, %v599_v62  ;;  %vm598_vm3 = vcmp.eq.f32.partialorder %v597_v11, 8.507059e+37 }
 0x2a3   :  { %v1345_v52 = vpop.eup %1344 }
 0x2a4   :  { %v607_v53 = vadd.f32 1.0, %v1345_v52 }
 0x2a5   :  { %v1347_v54 = vpop.eup %1346 }
 0x2a6   :  { %v1349_v56 = vpop.eup %1348  ;;  %v570_v57 = vmul.f32 %v1347_v54, %v568_v47  ;;  %1350 = vrcp.f32 %v607_v53  ;;  %vm575_vm10 = vweird.f32 %v1347_v54  ;;  %v619_v30 = vand.u32 2147483648, %v607_v53 }
 0x2a7   :  { %v589_v58 = vmul.f32 %v1349_v56, %v587_v48  ;;  %1352 = vtanh.f32 %v548_v55  ;;  %vm594_vm11 = vweird.f32 %v1349_v56  ;;  %vm576_vm14 = vmor %vm574_vm12, %vm575_vm10  ;;  %vm613_vm5 = vweird.f32 %v607_v53 }
 0x2a8   :  { %v571_v59 = vsub.f32 1.0, %v570_v57  ;;  %vm595_vm15 = vmor %vm593_vm13, %vm594_vm11  ;;  %v617_v15 = vand.u32 2147483647, %v607_v53  ;;  %v620_v32 = vor.u32 1.1754944e-38, %v619_v30  ;;  %v1240_v57 = vld [vmem:[%s1712_s0 + $0x28] sm:$0x3] }
 0x2a9   :  { %v590_v60 = vsub.f32 1.0, %v589_v58 }
 0x2aa   :  { %v572_v63 = vmul.f32 %v1347_v54, %v571_v59  ;;  %vm618_vm7 = vcmp.eq.f32.partialorder %v617_v15, 8.507059e+37 }
 0x2ab   :  { %v591_v10 = vmul.f32 %v1349_v56, %v590_v60 }
 0x2ac   :  { %v1351_v12 = vpop.eup %1350  ;;  %v573_v13 = vadd.f32 %v1347_v54, %v572_v63 }
 0x2ad   :  { %v592_v16 = vadd.f32 %v1349_v56, %v591_v10  ;;  %v609_v17 = vmul.f32 %v1351_v12, %v607_v53  ;;  %v1353_v20 = vpop.eup %1352  ;;  %vm614_vm4 = vweird.f32 %v1351_v12 }
 0x2ae   :  { %v577_v19 = vsel %vm576_vm14, %v1347_v54, %v573_v13  ;;  %vm615_vm6 = vmor %vm613_vm5, %vm614_vm4 }
 0x2af   :  { %v582_v21 = vsel %vm579_vm2, %v581_v14, %v577_v19  ;;  %v596_v23 = vsel %vm595_vm15, %v1349_v56, %v592_v16  ;;  %v610_v24 = vsub.f32 1.0, %v609_v17 }
 0x2b0   :  { %v601_v0 = vsel %vm598_vm3, %v600_v18, %v596_v23  ;;  %v624_v25 = vmul.f32 %v1353_v20, %v582_v21 }
 0x2b1   :  { %v623_v26 = vmul.f32 %v601_v0, %v1582_v22  ;;  %v611_v27 = vmul.f32 %v1351_v12, %v610_v24  ;;  %v1236_v22 = vld [vmem:[%s1712_s0 + $0x8] sm:$0x3] }
 0x2b3   :  { %v1610_v28 = vadd.f32 %v624_v25, %v623_v26  ;;  %v612_v29 = vadd.f32 %v1351_v12, %v611_v27 }
 0x2b5   :  { %1354 = vtanh.f32 %v1610_v28  ;;  %v616_v31 = vsel %vm615_vm6, %v1351_v12, %v612_v29 }
 0x2b6   :  { %v621_v34 = vsel %vm618_vm7, %v620_v32, %v616_v31 }
 0x2bb   :  { %v1355_v33 = vpop.eup %1354 }
 0x2bc   :  { %v627_v35 = vmul.f32 %v1355_v33, %v621_v34 }
 0x2be   :  { %v628_v36 = vpack.c.bf16 %v627_v35, %v627_v35 }
 0x2c0   :  { %1237 = vmatmul.msk.bf16.vlgmr.msra.gmra.mxu0 %vm70_vm1, %v628_v36  ;;  %1239 = vmatmul.msk.bf16.vlgmr.msra.gmra.mxu1 %vm70_vm1, %v628_v36 }
 0x2c1   :  { %1241 = vmatmul.msk.bf16.vlgmr.msra.gmra.mxu2 %vm70_vm1, %v628_v36  ;;  %1243 = vmatmul.msk.bf16.vlgmr.msra.gmra.mxu3 %vm70_vm1, %v628_v36 }
 0x2c2   :  { %902 = vmatpush.bf16.msra.mxu0 %v1470_v1  ;;  %918 = vmatpush.bf16.msra.mxu1 %v1472_v2 }
 0x2c3   :  { %950 = vmatpush.bf16.msra.mxu3 %v1474_v3  ;;  %934 = vmatpush.bf16.msra.mxu2 %v1482_v7 }
 0x2c6   :  { %903 = vmatpush.bf16.msra.mxu0 %v1476_v4  ;;  %919 = vmatpush.bf16.msra.mxu1 %v1480_v5 }
 0x2c7   :  { %935 = vmatpush.bf16.msra.mxu2 %v1488_v9  ;;  %951 = vmatpush.bf16.msra.mxu3 %v1485_v8 }
 0x33d   :  { %v643_v38 = vpop.f32.mrf.mxu0  ;;  %v659_v39 = vpop.f32.mrf.mxu1 }
 0x33e   :  { %v647_v40 = vadd.f32 %v1236_v22, %v643_v38  ;;  %v663_v41 = vadd.f32 %v1238_v37, %v659_v39 }
 0x340   :  { %v1244_v42 = vmul.f32 -1.442695, %v647_v40  ;;  %v1245_v43 = vmul.f32 -1.442695, %v663_v41 }
 0x342   :  { %1356 = vpow2.f32 %v1244_v42 }
 0x343   :  { %1358 = vpow2.f32 %v1245_v43 }
 0x344   :  { %v675_v45 = vpop.f32.mrf.mxu2  ;;  %v691_v46 = vpop.f32.mrf.mxu3 }
 0x345   :  { %v695_v47 = vadd.f32 %v1242_v44, %v691_v46  ;;  %v645_v48 = vpop.f32.mrf.mxu0  ;;  %v661_v49 = vpop.f32.mrf.mxu1  ;;  %v679_v61 = vadd.f32 %v1240_v57, %v675_v45 }
 0x347   :  { %v1246_v50 = vmul.f32 -1.442695, %v695_v47 }
 0x348   :  { %v1357_v51 = vpop.eup %1356 }
 0x349   :  { %v1359_v52 = vpop.eup %1358  ;;  %v699_v53 = vadd.f32 1.0, %v1357_v51  ;;  %1360 = vpow2.f32 %v1246_v50 }
 0x34a   :  { %v718_v54 = vadd.f32 1.0, %v1359_v52 }
 0x34b   :  { %1362 = vrcp.f32 %v699_v53  ;;  %v711_v12 = vand.u32 2147483648, %v699_v53  ;;  %v709_v16 = vand.u32 2147483647, %v699_v53  ;;  %vm705_vm10 = vweird.f32 %v699_v53 }
 0x34c   :  { %1364 = vrcp.f32 %v718_v54  ;;  %v677_v55 = vpop.f32.mrf.mxu2  ;;  %v693_v56 = vpop.f32.mrf.mxu3  ;;  %v730_v13 = vand.u32 2147483648, %v718_v54  ;;  %v728_v18 = vand.u32 2147483647, %v718_v54  ;;  %vm724_vm11 = vweird.f32 %v718_v54 }
 0x34d   :  { %v712_v21 = vor.u32 1.1754944e-38, %v711_v12  ;;  %vm710_vm14 = vcmp.eq.f32.partialorder %v709_v16, 8.507059e+37  ;;  %v1251_v55 = vld [vmem:[%s1712_s0 + $0x2a] sm:$0x3] }
 0x34e   :  { %v731_v0 = vor.u32 1.1754944e-38, %v730_v13  ;;  %vm729_vm15 = vcmp.eq.f32.partialorder %v728_v18, 8.507059e+37 }
 0x34f   :  { %v1361_v58 = vpop.eup %1360 }
 0x350   :  { %v738_v59 = vadd.f32 1.0, %v1361_v58 }
 0x351   :  { %v1363_v60 = vpop.eup %1362 }
 0x352   :  { %v1365_v62 = vpop.eup %1364  ;;  %v701_v63 = vmul.f32 %v1363_v60, %v699_v53  ;;  %1366 = vrcp.f32 %v738_v59  ;;  %vm706_vm8 = vweird.f32 %v1363_v60  ;;  %v750_v36 = vand.u32 2147483648, %v738_v59 }
 0x353   :  { %v720_v6 = vmul.f32 %v1365_v62, %v718_v54  ;;  %1368 = vtanh.f32 %v679_v61  ;;  %vm725_vm9 = vweird.f32 %v1365_v62  ;;  %vm707_vm12 = vmor %vm705_vm10, %vm706_vm8  ;;  %vm744_vm3 = vweird.f32 %v738_v59 }
 0x354   :  { %v702_v10 = vsub.f32 1.0, %v701_v63  ;;  %vm726_vm13 = vmor %vm724_vm11, %vm725_vm9  ;;  %v748_v22 = vand.u32 2147483647, %v738_v59  ;;  %v751_v38 = vor.u32 1.1754944e-38, %v750_v36 }
 0x355   :  { %v721_v11 = vsub.f32 1.0, %v720_v6 }
 0x356   :  { %v703_v14 = vmul.f32 %v1363_v60, %v702_v10  ;;  %vm749_vm5 = vcmp.eq.f32.partialorder %v748_v22, 8.507059e+37 }
 0x357   :  { %v722_v17 = vmul.f32 %v1365_v62, %v721_v11 }
 0x358   :  { %v1367_v19 = vpop.eup %1366  ;;  %v704_v20 = vadd.f32 %v1363_v60, %v703_v14 }
 0x359   :  { %v723_v23 = vadd.f32 %v1365_v62, %v722_v17  ;;  %v740_v24 = vmul.f32 %v1367_v19, %v738_v59  ;;  %v1369_v26 = vpop.eup %1368  ;;  %vm745_vm2 = vweird.f32 %v1367_v19 }
 0x35a   :  { %v708_v25 = vsel %vm707_vm12, %v1363_v60, %v704_v20  ;;  %vm746_vm4 = vmor %vm744_vm3, %vm745_vm2 }
 0x35b   :  { %v713_v27 = vsel %vm710_vm14, %v712_v21, %v708_v25  ;;  %v727_v29 = vsel %vm726_vm13, %v1365_v62, %v723_v23  ;;  %v741_v30 = vsub.f32 1.0, %v740_v24 }
 0x35c   :  { %v732_v15 = vsel %vm729_vm15, %v731_v0, %v727_v29  ;;  %v755_v31 = vmul.f32 %v1369_v26, %v713_v27 }
 0x35d   :  { %v754_v32 = vmul.f32 %v732_v15, %v1610_v28  ;;  %v742_v33 = vmul.f32 %v1367_v19, %v741_v30  ;;  %v1247_v28 = vld [vmem:[%s1712_s0 + $0xa] sm:$0x3] }
 0x35f   :  { %v1638_v34 = vadd.f32 %v755_v31, %v754_v32  ;;  %v743_v35 = vadd.f32 %v1367_v19, %v742_v33 }
 0x361   :  { %1370 = vtanh.f32 %v1638_v34  ;;  %v747_v37 = vsel %vm746_vm4, %v1367_v19, %v743_v35 }
 0x362   :  { %v752_v40 = vsel %vm749_vm5, %v751_v38, %v747_v37 }
 0x367   :  { %v1371_v39 = vpop.eup %1370 }
 0x368   :  { %v758_v41 = vmul.f32 %v1371_v39, %v752_v40 }
 0x36a   :  { %v759_v42 = vpack.c.bf16 %v758_v41, %v758_v41 }
 0x36c   :  { %1248 = vmatmul.msk.bf16.vlgmr.msrb.gmra.mxu0 %vm70_vm1, %v759_v42  ;;  %1250 = vmatmul.msk.bf16.vlgmr.msrb.gmra.mxu1 %vm70_vm1, %v759_v42 }
 0x36d   :  { %1252 = vmatmul.msk.bf16.vlgmr.msrb.gmra.mxu2 %vm70_vm1, %v759_v42  ;;  %1254 = vmatmul.msk.bf16.vlgmr.msrb.gmra.mxu3 %vm70_vm1, %v759_v42  ;;  %v1260_v42 = vld [vmem:[%s1712_s0 + $0x1c] sm:$0x3] }
 0x36e   :  { %1033 = vmatpush.bf16.msrb.mxu0 %v1470_v1  ;;  %1049 = vmatpush.bf16.msrb.mxu1 %v1472_v2  ;;  %v1249_v1 = vld [vmem:[%s1712_s0 + $0x1a] sm:$0x3] }
 0x36f   :  { %1081 = vmatpush.bf16.msrb.mxu3 %v1474_v3  ;;  %1065 = vmatpush.bf16.msrb.mxu2 %v1482_v7 }
 0x372   :  { %1034 = vmatpush.bf16.msrb.mxu0 %v1476_v4  ;;  %1050 = vmatpush.bf16.msrb.mxu1 %v1480_v5  ;;  %v1253_v5 = vld [vmem:[%s1712_s0 + $0x3a] sm:$0x3] }
 0x373   :  { %1066 = vmatpush.bf16.msrb.mxu2 %v1488_v9  ;;  %1082 = vmatpush.bf16.msrb.mxu3 %v1485_v8 }
 0x3e9   :  { %v774_v2 = vpop.f32.mrf.mxu0  ;;  %v790_v3 = vpop.f32.mrf.mxu1 }
 0x3ea   :  { %v778_v43 = vadd.f32 %v1247_v28, %v774_v2  ;;  %v794_v7 = vadd.f32 %v1249_v1, %v790_v3 }
 0x3ec   :  { %v1255_v44 = vmul.f32 -1.442695, %v778_v43  ;;  %v1256_v4 = vmul.f32 -1.442695, %v794_v7 }
 0x3ee   :  { %1372 = vpow2.f32 %v1255_v44  ;;  %v1264_v44 = vld [vmem:[%s1712_s0 + $0x3c] sm:$0x3] }
 0x3ef   :  { %1374 = vpow2.f32 %v1256_v4 }
 0x3f0   :  { %v806_v8 = vpop.f32.mrf.mxu2  ;;  %v822_v9 = vpop.f32.mrf.mxu3 }
 0x3f1   :  { %v826_v45 = vadd.f32 %v1253_v5, %v822_v9  ;;  %v776_v46 = vpop.f32.mrf.mxu0  ;;  %v792_v47 = vpop.f32.mrf.mxu1  ;;  %v810_v59 = vadd.f32 %v1251_v55, %v806_v8 }
 0x3f3   :  { %v1257_v48 = vmul.f32 -1.442695, %v826_v45 }
 0x3f4   :  { %v1373_v49 = vpop.eup %1372 }
 0x3f5   :  { %v1375_v50 = vpop.eup %1374  ;;  %v830_v51 = vadd.f32 1.0, %v1373_v49  ;;  %1376 = vpow2.f32 %v1257_v48 }
 0x3f6   :  { %v849_v52 = vadd.f32 1.0, %v1375_v50 }
 0x3f7   :  { %1378 = vrcp.f32 %v830_v51  ;;  %v842_v10 = vand.u32 2147483648, %v830_v51  ;;  %v840_v13 = vand.u32 2147483647, %v830_v51  ;;  %vm836_vm8 = vweird.f32 %v830_v51 }
 0x3f8   :  { %1380 = vrcp.f32 %v849_v52  ;;  %v808_v53 = vpop.f32.mrf.mxu2  ;;  %v824_v54 = vpop.f32.mrf.mxu3  ;;  %v861_v11 = vand.u32 2147483648, %v849_v52  ;;  %v859_v16 = vand.u32 2147483647, %v849_v52  ;;  %vm855_vm9 = vweird.f32 %v849_v52 }
 0x3f9   :  { %v843_v19 = vor.u32 1.1754944e-38, %v842_v10  ;;  %vm841_vm12 = vcmp.eq.f32.partialorder %v840_v13, 8.507059e+37  ;;  %v1262_v53 = vld [vmem:[%s1712_s0 + $0x2c] sm:$0x3] }
 0x3fa   :  { %v862_v23 = vor.u32 1.1754944e-38, %v861_v11  ;;  %vm860_vm13 = vcmp.eq.f32.partialorder %v859_v16, 8.507059e+37 }
 0x3fb   :  { %v1377_v56 = vpop.eup %1376 }
 0x3fc   :  { %v869_v57 = vadd.f32 1.0, %v1377_v56 }
 0x3fd   :  { %v1379_v58 = vpop.eup %1378 }
 0x3fe   :  { %v1381_v60 = vpop.eup %1380  ;;  %v832_v61 = vmul.f32 %v1379_v58, %v830_v51  ;;  %1382 = vrcp.f32 %v869_v57  ;;  %vm837_vm6 = vweird.f32 %v1379_v58  ;;  %v881_v35 = vand.u32 2147483648, %v869_v57 }
 0x3ff   :  { %v851_v62 = vmul.f32 %v1381_v60, %v849_v52  ;;  %1384 = vtanh.f32 %v810_v59  ;;  %vm856_vm7 = vweird.f32 %v1381_v60  ;;  %vm838_vm10 = vmor %vm836_vm8, %vm837_vm6  ;;  %vm875_vm15 = vweird.f32 %v869_v57 }
 0x400   :  { %v833_v63 = vsub.f32 1.0, %v832_v61  ;;  %vm857_vm11 = vmor %vm855_vm9, %vm856_vm7  ;;  %v879_v36 = vand.u32 2147483647, %v869_v57  ;;  %v882_v37 = vor.u32 1.1754944e-38, %v881_v35 }
 0x401   :  { %v852_v6 = vsub.f32 1.0, %v851_v62 }
 0x402   :  { %v834_v12 = vmul.f32 %v1379_v58, %v833_v63  ;;  %vm880_vm3 = vcmp.eq.f32.partialorder %v879_v36, 8.507059e+37 }
 0x403   :  { %v853_v14 = vmul.f32 %v1381_v60, %v852_v6 }
 0x404   :  { %v1383_v17 = vpop.eup %1382  ;;  %v835_v18 = vadd.f32 %v1379_v58, %v834_v12 }
 0x405   :  { %v854_v20 = vadd.f32 %v1381_v60, %v853_v14  ;;  %v871_v21 = vmul.f32 %v1383_v17, %v869_v57  ;;  %v1385_v0 = vpop.eup %1384  ;;  %vm876_vm14 = vweird.f32 %v1383_v17 }
 0x406   :  { %v839_v24 = vsel %vm838_vm10, %v1379_v58, %v835_v18  ;;  %vm877_vm2 = vmor %vm875_vm15, %vm876_vm14 }
 0x407   :  { %v844_v25 = vsel %vm841_vm12, %v843_v19, %v839_v24  ;;  %v858_v26 = vsel %vm857_vm11, %v1381_v60, %v854_v20  ;;  %v872_v27 = vsub.f32 1.0, %v871_v21 }
 0x408   :  { %v863_v29 = vsel %vm860_vm13, %v862_v23, %v858_v26  ;;  %v886_v30 = vmul.f32 %v1385_v0, %v844_v25 }
 0x409   :  { %v885_v15 = vmul.f32 %v863_v29, %v1638_v34  ;;  %v873_v31 = vmul.f32 %v1383_v17, %v872_v27  ;;  %v1258_v34 = vld [vmem:[%s1712_s0 + $0xc] sm:$0x3] }
 0x40b   :  { %v1666_v32 = vadd.f32 %v886_v30, %v885_v15  ;;  %v874_v33 = vadd.f32 %v1383_v17, %v873_v31 }
 0x40d   :  { %1386 = vtanh.f32 %v1666_v32  ;;  %v878_v22 = vsel %vm877_vm2, %v1383_v17, %v874_v33 }
 0x40e   :  { %v883_v39 = vsel %vm880_vm3, %v882_v37, %v878_v22 }
 0x413   :  { %v1387_v38 = vpop.eup %1386 }
 0x414   :  { %v889_v40 = vmul.f32 %v1387_v38, %v883_v39 }
 0x416   :  { %v890_v41 = vpack.c.bf16 %v889_v40, %v889_v40 }
 0x418   :  { %1259 = vmatmul.msk.bf16.vlgmr.msra.gmra.mxu0 %vm70_vm1, %v890_v41  ;;  %1261 = vmatmul.msk.bf16.vlgmr.msra.gmra.mxu1 %vm70_vm1, %v890_v41 }
 0x419   :  { %1263 = vmatmul.msk.bf16.vlgmr.msra.gmra.mxu2 %vm70_vm1, %v890_v41  ;;  %1265 = vmatmul.msk.bf16.vlgmr.msra.gmra.mxu3 %vm70_vm1, %v890_v41  ;;  %v1271_v41 = vld [vmem:[%s1712_s0 + $0x1e] sm:$0x3] }
 0x495   :  { %v905_v28 = vpop.f32.mrf.mxu0  ;;  %v921_v1 = vpop.f32.mrf.mxu1 }
 0x496   :  { %v909_v2 = vadd.f32 %v1258_v34, %v905_v28  ;;  %v925_v3 = vadd.f32 %v1260_v42, %v921_v1 }
 0x498   :  { %v1266_v43 = vmul.f32 -1.442695, %v909_v2  ;;  %v1267_v7 = vmul.f32 -1.442695, %v925_v3 }
 0x49a   :  { %1388 = vpow2.f32 %v1266_v43  ;;  %v1275_v43 = vld [vmem:[%s1712_s0 + $0x3e] sm:$0x3] }
 0x49b   :  { %1390 = vpow2.f32 %v1267_v7 }
 0x49c   :  { %v937_v4 = vpop.f32.mrf.mxu2  ;;  %v953_v5 = vpop.f32.mrf.mxu3 }
 0x49d   :  { %v957_v8 = vadd.f32 %v1264_v44, %v953_v5  ;;  %v907_v9 = vpop.f32.mrf.mxu0  ;;  %v923_v45 = vpop.f32.mrf.mxu1  ;;  %v941_v57 = vadd.f32 %v1262_v53, %v937_v4 }
 0x49f   :  { %v1268_v46 = vmul.f32 -1.442695, %v957_v8 }
 0x4a0   :  { %v1389_v47 = vpop.eup %1388 }
 0x4a1   :  { %v1391_v48 = vpop.eup %1390  ;;  %v961_v49 = vadd.f32 1.0, %v1389_v47  ;;  %1392 = vpow2.f32 %v1268_v46 }
 0x4a2   :  { %v980_v50 = vadd.f32 1.0, %v1391_v48 }
 0x4a3   :  { %1394 = vrcp.f32 %v961_v49  ;;  %v973_v63 = vand.u32 2147483648, %v961_v49  ;;  %v971_v11 = vand.u32 2147483647, %v961_v49  ;;  %vm967_vm6 = vweird.f32 %v961_v49 }
 0x4a4   :  { %1396 = vrcp.f32 %v980_v50  ;;  %v939_v51 = vpop.f32.mrf.mxu2  ;;  %v955_v52 = vpop.f32.mrf.mxu3  ;;  %v992_v6 = vand.u32 2147483648, %v980_v50  ;;  %v990_v13 = vand.u32 2147483647, %v980_v50  ;;  %vm986_vm7 = vweird.f32 %v980_v50 }
 0x4a5   :  { %v974_v17 = vor.u32 1.1754944e-38, %v973_v63  ;;  %vm972_vm10 = vcmp.eq.f32.partialorder %v971_v11, 8.507059e+37  ;;  %v1273_v51 = vld [vmem:[%s1712_s0 + $0x2e] sm:$0x3] }
 0x4a6   :  { %v993_v20 = vor.u32 1.1754944e-38, %v992_v6  ;;  %vm991_vm11 = vcmp.eq.f32.partialorder %v990_v13, 8.507059e+37 }
 0x4a7   :  { %v1393_v54 = vpop.eup %1392 }
 0x4a8   :  { %v1000_v55 = vadd.f32 1.0, %v1393_v54 }
 0x4a9   :  { %v1395_v56 = vpop.eup %1394 }
 0x4aa   :  { %v1397_v58 = vpop.eup %1396  ;;  %v963_v59 = vmul.f32 %v1395_v56, %v961_v49  ;;  %1398 = vrcp.f32 %v1000_v55  ;;  %vm968_vm4 = vweird.f32 %v1395_v56  ;;  %v1012_v33 = vand.u32 2147483648, %v1000_v55 }
 0x4ab   :  { %v982_v60 = vmul.f32 %v1397_v58, %v980_v50  ;;  %1400 = vtanh.f32 %v941_v57  ;;  %vm987_vm5 = vweird.f32 %v1397_v58  ;;  %vm969_vm8 = vmor %vm967_vm6, %vm968_vm4  ;;  %vm1006_vm13 = vweird.f32 %v1000_v55 }
 0x4ac   :  { %v964_v61 = vsub.f32 1.0, %v963_v59  ;;  %vm988_vm9 = vmor %vm986_vm7, %vm987_vm5  ;;  %v1010_v35 = vand.u32 2147483647, %v1000_v55  ;;  %v1013_v22 = vor.u32 1.1754944e-38, %v1012_v33 }
 0x4ad   :  { %v983_v62 = vsub.f32 1.0, %v982_v60 }
 0x4ae   :  { %v965_v10 = vmul.f32 %v1395_v56, %v964_v61  ;;  %vm1011_vm15 = vcmp.eq.f32.partialorder %v1010_v35, 8.507059e+37 }
 0x4af   :  { %v984_v12 = vmul.f32 %v1397_v58, %v983_v62 }
 0x4b0   :  { %v1399_v14 = vpop.eup %1398  ;;  %v966_v16 = vadd.f32 %v1395_v56, %v965_v10 }
 0x4b1   :  { %v985_v18 = vadd.f32 %v1397_v58, %v984_v12  ;;  %v1002_v19 = vmul.f32 %v1399_v14, %v1000_v55  ;;  %v1401_v23 = vpop.eup %1400  ;;  %vm1007_vm12 = vweird.f32 %v1399_v14 }
 0x4b2   :  { %v970_v21 = vsel %vm969_vm8, %v1395_v56, %v966_v16  ;;  %vm1008_vm14 = vmor %vm1006_vm13, %vm1007_vm12 }
 0x4b3   :  { %v975_v24 = vsel %vm972_vm10, %v974_v17, %v970_v21  ;;  %v989_v0 = vsel %vm988_vm9, %v1397_v58, %v985_v18  ;;  %v1003_v25 = vsub.f32 1.0, %v1002_v19 }
 0x4b4   :  { %v994_v26 = vsel %vm991_vm11, %v993_v20, %v989_v0  ;;  %v1017_v27 = vmul.f32 %v1401_v23, %v975_v24 }
 0x4b5   :  { %v1016_v29 = vmul.f32 %v994_v26, %v1666_v32  ;;  %v1004_v30 = vmul.f32 %v1399_v14, %v1003_v25  ;;  %v1269_v32 = vld [vmem:[%s1712_s0 + $0xe] sm:$0x3] }
 0x4b7   :  { %v1686_v15 = vadd.f32 %v1017_v27, %v1016_v29  ;;  %v1005_v31 = vadd.f32 %v1399_v14, %v1004_v30 }
 0x4b9   :  { %1402 = vtanh.f32 %v1686_v15  ;;  %v1009_v36 = vsel %vm1008_vm14, %v1399_v14, %v1005_v31 }
 0x4ba   :  { %v1014_v38 = vsel %vm1011_vm15, %v1013_v22, %v1009_v36 }
 0x4bf   :  { %v1403_v37 = vpop.eup %1402 }
 0x4c0   :  { %v1020_v39 = vmul.f32 %v1403_v37, %v1014_v38 }
 0x4c2   :  { %v1021_v40 = vpack.c.bf16 %v1020_v39, %v1020_v39 }
 0x4c4   :  { %1270 = vmatmul.msk.bf16.vlgmr.msrb.gmra.mxu0 %vm70_vm1, %v1021_v40  ;;  %1272 = vmatmul.msk.bf16.vlgmr.msrb.gmra.mxu1 %vm70_vm1, %v1021_v40 }
 0x4c5   :  { %1274 = vmatmul.msk.bf16.vlgmr.msrb.gmra.mxu2 %vm70_vm1, %v1021_v40  ;;  %1276 = vmatmul.msk.bf16.vlgmr.msrb.gmra.mxu3 %vm70_vm1, %v1021_v40 }
 0x541   :  { %v1036_v34 = vpop.f32.mrf.mxu0  ;;  %v1052_v42 = vpop.f32.mrf.mxu1 }
 0x542   :  { %v1040_v28 = vadd.f32 %v1269_v32, %v1036_v34  ;;  %v1056_v1 = vadd.f32 %v1271_v41, %v1052_v42 }
 0x544   :  { %v1277_v2 = vmul.f32 -1.442695, %v1040_v28  ;;  %v1278_v3 = vmul.f32 -1.442695, %v1056_v1 }
 0x546   :  { %1404 = vpow2.f32 %v1277_v2 }
 0x547   :  { %1406 = vpow2.f32 %v1278_v3 }
 0x548   :  { %v1068_v7 = vpop.f32.mrf.mxu2  ;;  %v1084_v44 = vpop.f32.mrf.mxu3 }
 0x549   :  { %v1088_v4 = vadd.f32 %v1275_v43, %v1084_v44  ;;  %v1038_v5 = vpop.f32.mrf.mxu0  ;;  %v1054_v8 = vpop.f32.mrf.mxu1  ;;  %v1072_v55 = vadd.f32 %v1273_v51, %v1068_v7 }
 0x54b   :  { %v1279_v9 = vmul.f32 -1.442695, %v1088_v4 }
 0x54c   :  { %v1405_v45 = vpop.eup %1404 }
 0x54d   :  { %v1407_v46 = vpop.eup %1406  ;;  %v1092_v47 = vadd.f32 1.0, %v1405_v45  ;;  %1408 = vpow2.f32 %v1279_v9 }
 0x54e   :  { %v1111_v48 = vadd.f32 1.0, %v1407_v46 }
 0x54f   :  { %1410 = vrcp.f32 %v1092_v47  ;;  %v1104_v61 = vand.u32 2147483648, %v1092_v47  ;;  %v1102_v6 = vand.u32 2147483647, %v1092_v47  ;;  %vm1098_vm3 = vweird.f32 %v1092_v47 }
 0x550   :  { %1412 = vrcp.f32 %v1111_v48  ;;  %v1070_v49 = vpop.f32.mrf.mxu2  ;;  %v1086_v50 = vpop.f32.mrf.mxu3  ;;  %v1123_v62 = vand.u32 2147483648, %v1111_v48  ;;  %v1121_v11 = vand.u32 2147483647, %v1111_v48  ;;  %vm1117_vm4 = vweird.f32 %v1111_v48 }
 0x551   :  { %v1105_v14 = vor.u32 1.1754944e-38, %v1104_v61  ;;  %vm1103_vm7 = vcmp.eq.f32.partialorder %v1102_v6, 8.507059e+37 }
 0x552   :  { %v1124_v18 = vor.u32 1.1754944e-38, %v1123_v62  ;;  %vm1122_vm8 = vcmp.eq.f32.partialorder %v1121_v11, 8.507059e+37 }
 0x553   :  { %v1409_v52 = vpop.eup %1408 }
 0x554   :  { %v1131_v53 = vadd.f32 1.0, %v1409_v52 }
 0x555   :  { %v1411_v54 = vpop.eup %1410 }
 0x556   :  { %v1413_v56 = vpop.eup %1412  ;;  %v1094_v57 = vmul.f32 %v1411_v54, %v1092_v47  ;;  %1414 = vrcp.f32 %v1131_v53  ;;  %vm1099_vm1 = vweird.f32 %v1411_v54  ;;  %v1143_v31 = vand.u32 2147483648, %v1131_v53 }
 0x557   :  { %v1113_v58 = vmul.f32 %v1413_v56, %v1111_v48  ;;  %1416 = vtanh.f32 %v1072_v55  ;;  %vm1118_vm2 = vweird.f32 %v1413_v56  ;;  %vm1100_vm5 = vmor %vm1098_vm3, %vm1099_vm1  ;;  %vm1137_vm10 = vweird.f32 %v1131_v53 }
 0x558   :  { %v1095_v59 = vsub.f32 1.0, %v1094_v57  ;;  %vm1119_vm6 = vmor %vm1117_vm4, %vm1118_vm2  ;;  %v1141_v33 = vand.u32 2147483647, %v1131_v53  ;;  %v1144_v36 = vor.u32 1.1754944e-38, %v1143_v31 }
 0x559   :  { %v1114_v60 = vsub.f32 1.0, %v1113_v58 }
 0x55a   :  { %v1096_v63 = vmul.f32 %v1411_v54, %v1095_v59  ;;  %vm1142_vm12 = vcmp.eq.f32.partialorder %v1141_v33, 8.507059e+37 }
 0x55b   :  { %v1115_v10 = vmul.f32 %v1413_v56, %v1114_v60 }
 0x55c   :  { %v1415_v12 = vpop.eup %1414  ;;  %v1097_v13 = vadd.f32 %v1411_v54, %v1096_v63 }
 0x55d   :  { %v1116_v16 = vadd.f32 %v1413_v56, %v1115_v10  ;;  %v1133_v17 = vmul.f32 %v1415_v12, %v1131_v53  ;;  %v1417_v20 = vpop.eup %1416  ;;  %vm1138_vm9 = vweird.f32 %v1415_v12 }
 0x55e   :  { %v1101_v19 = vsel %vm1100_vm5, %v1411_v54, %v1097_v13  ;;  %vm1139_vm11 = vmor %vm1137_vm10, %vm1138_vm9 }
 0x55f   :  { %v1106_v21 = vsel %vm1103_vm7, %v1105_v14, %v1101_v19  ;;  %v1120_v23 = vsel %vm1119_vm6, %v1413_v56, %v1116_v16  ;;  %v1134_v24 = vsub.f32 1.0, %v1133_v17 }
 0x560   :  { %v1125_v0 = vsel %vm1122_vm8, %v1124_v18, %v1120_v23  ;;  %v1148_v25 = vmul.f32 %v1417_v20, %v1106_v21 }
 0x561   :  { %v1147_v26 = vmul.f32 %v1125_v0, %v1686_v15  ;;  %v1135_v27 = vmul.f32 %v1415_v12, %v1134_v24 }
 0x563   :  { %v1149_v29 = vadd.f32 %v1148_v25, %v1147_v26  ;;  %v1136_v30 = vadd.f32 %v1415_v12, %v1135_v27 }
 0x565   :  { %1418 = vtanh.f32 %v1149_v29  ;;  %1154 = vst.msk [vmem:[#allocation3] sm:$0x3] %vm32_vm0, %v1149_v29  ;;  %v1140_v35 = vsel %vm1139_vm11, %v1415_v12, %v1136_v30 }
 0x566   :  { %v1145_v37 = vsel %vm1142_vm12, %v1144_v36, %v1140_v35 }
 0x56b   :  { %v1419_v22 = vpop.eup %1418 }
 0x56c   :  { %v1151_v38 = vmul.f32 %v1419_v22, %v1145_v37 }
 0x56e   :  { %1153 = vst.msk [vmem:[#allocation2] sm:$0x3] %vm32_vm0, %v1151_v38 }
 0x56f   :  { %1155 = vst.msk [vmem:[%s1714_s2] sm:$0x3] %vm32_vm0, %v1151_v38 }
 0x570   :  { %1160 = vsyncpa [#allocation5], 1 }

</bundles_post_ra>
